<compile_context>
chip_gen: v7x
topology: tpu7x:2x2x1
jax: 0.10.0
libtpu: 0.0.40
codegen_flags: <defaults>
</compile_context>

<pallas_src>
import math
import functools

import jax
import jax.numpy as jnp
from jax.experimental import pallas as pl
from jax.experimental.pallas import tpu as pltpu


def _round_up(x, m):
    return (x + m - 1) // m * m


# ----------------------------- exact GELU (in-kernel) -----------------------------
# XLA's f32 erf rational polynomial (pure VPU mul/add/div) -> matches nn.GELU().
_ERF_ALPHA = (-2.72614225801306e-10, 2.77068142495902e-08, -2.10102402082508e-06,
              -5.69250639462346e-05, -7.34990630326855e-04, -2.95459980854025e-03,
              -1.60960333262415e-02)
_ERF_BETA = (-1.45660718464996e-05, -2.13374055278905e-04, -1.68282697438203e-03,
             -7.37332916720468e-03, -1.42647390514189e-02)


def _gelu_exact(x):
    t = jnp.clip(x * (1.0 / math.sqrt(2.0)), -4.0, 4.0)
    t2 = t * t
    p = _ERF_ALPHA[0]
    for c in _ERF_ALPHA[1:]:
        p = p * t2 + c
    q = _ERF_BETA[0]
    for c in _ERF_BETA[1:]:
        q = q * t2 + c
    erf = t * p / q
    return 0.5 * x * (1.0 + erf)


# ----------------------------- fused TimesBlock kernel -----------------------------
#
# For a period p the PyTorch reference reshapes the (padded) sequence to an
# (H, W) = (length//p, p) grid and runs two same-padded KxK convs.  On the
# flat time axis this is: out[t] = sum_{dh,dw} valid(t,dh,dw) * in[t + dh*p + dw]
# with valid <=> 0 <= t//p + dh < H  and  0 <= t%p + dw < p.  That lets the
# period be a *runtime* scalar (scalar prefetch) instead of a static shape.

def make_times_block_kernel(B, T, N, Cff, K, Lmax, HALO, TOPK):
    P = (K - 1) // 2
    BL = B * Lmax          # batch folded into the matmul M dimension

    def kernel(periods_ref, hs_ref,                     # scalar prefetch (SMEM)
               x_ref, w1_ref, b1_ref, w2_ref, b2_ref, sm_ref,   # inputs (VMEM)
               o_ref,                                   # output, resident across grid
               xbuf_ref, midbuf_ref, acc_ref):          # VMEM scratch
        i = pl.program_id(0)
        nper = pl.num_programs(0)
        p = periods_ref[i]          # period (int32 scalar)
        H = hs_ref[i]               # rows of the (H, p) grid = ceil(T / p)

        # ---- once per block: stage x with zero padding/halo (x is constant
        #      across the period axis, so this DMA/zero-fill happens once). ----
        @pl.when(i == 0)
        def _init():
            xbuf_ref[...] = jnp.zeros(xbuf_ref.shape, xbuf_ref.dtype)
            midbuf_ref[...] = jnp.zeros(midbuf_ref.shape, midbuf_ref.dtype)
            for b in range(B):
                base = HALO + b * Lmax                  # 8-aligned static offset
                xbuf_ref[base:base + T, :] = x_ref[b]

        # ---- (h, w) grid coordinates of every flat time position ----------------
        t = jax.lax.broadcasted_iota(jnp.int32, (Lmax, 1), 0)
        pv = jnp.full((Lmax, 1), p, jnp.int32)
        hh = (t.astype(jnp.float32) / pv.astype(jnp.float32)).astype(jnp.int32)
        ww = t - hh * pv
        hh = jnp.concatenate([hh] * B, axis=0)          # (B*Lmax, 1)
        ww = jnp.concatenate([ww] * B, axis=0)

        def conv_taps(buf_ref, w_ref, cout):
            # K*K accumulated MXU dots against per-tap (Cin, Cout) weights
            # (no im2col patch, no lane-axis concatenates).
            acc = jnp.zeros((BL, cout), jnp.float32)
            for kh in range(K):
                for kw in range(K):
                    dh, dw = kh - P, kw - P
                    off = dh * p + dw                   # dynamic tap offset
                    seg = buf_ref[pl.ds(HALO + off, BL), :]
                    valid = ((hh + dh >= 0) & (hh + dh < H) &
                             (ww + dw >= 0) & (ww + dw < p))
                    seg = jnp.where(valid, seg, 0.0)
                    acc = acc + jnp.dot(seg, w_ref[kh * K + kw],
                                        preferred_element_type=jnp.float32)
            return acc

        # ---- conv1 (d_model -> d_ff) + exact GELU -------------------------------
        h1 = _gelu_exact(conv_taps(xbuf_ref, w1_ref, Cff) + b1_ref[...])
        midbuf_ref[HALO:HALO + BL, :] = h1              # aligned slab store

        # ---- conv2 (d_ff -> d_model) --------------------------------------------
        y = conv_taps(midbuf_ref, w2_ref, N) + b2_ref[...]      # (B*Lmax, N)

        # ---- crop to T, softmax-weight, residual accumulate (VMEM resident) -----
        y = jnp.concatenate([y[b * Lmax:b * Lmax + T, :] for b in range(B)],
                            axis=0).reshape(B, T, N)
        lane = jax.lax.broadcasted_iota(jnp.int32, (B, TOPK), 1)
        wsel = jnp.sum(jnp.where(lane == i, sm_ref[...], 0.0),
                       axis=1, keepdims=True)                    # (B, 1)
        y = y * wsel[:, :, None]

        @pl.when(i == 0)
        def _first():
            acc_ref[...] = x_ref[...] + y               # residual folded in

        @pl.when(i > 0)
        def _rest():
            acc_ref[...] = acc_ref[...] + y

        @pl.when(i == nper - 1)
        def _store():
            # lane-dense store: last dim T*N (multiple of 128); single flush.
            o_ref[...] = acc_ref[...].reshape(B, T * N)

    return kernel


def times_block_apply(x, blk, periods, hs, sm, *, K):
    B, T, N = x.shape
    Cff = blk['w1'].shape[-1]
    TOPK = periods.shape[0]
    P = (K - 1) // 2
    Lmax = _round_up(2 * T, 8)            # length = ceil(T/p)*p <= 2T-1 for p<=T
    HALO = _round_up(P * (T + 1), 8)      # max |dh*p + dw|, rounded to sublane mult

    kernel = make_times_block_kernel(B, T, N, Cff, K, Lmax, HALO, TOPK)
    out = pl.pallas_call(
        kernel,
        out_shape=jax.ShapeDtypeStruct((B, T * N), x.dtype),
        grid_spec=pltpu.PrefetchScalarGridSpec(
            num_scalar_prefetch=2,
            grid=(TOPK,),                              # fused top_k period loop
            in_specs=[
                pl.BlockSpec((B, T, N), lambda i, pr, hr: (0, 0, 0)),
                pl.BlockSpec((K * K, N, Cff), lambda i, pr, hr: (0, 0, 0)),
                pl.BlockSpec((1, Cff), lambda i, pr, hr: (0, 0)),
                pl.BlockSpec((K * K, Cff, N), lambda i, pr, hr: (0, 0, 0)),
                pl.BlockSpec((1, N), lambda i, pr, hr: (0, 0)),
                pl.BlockSpec((B, TOPK), lambda i, pr, hr: (0, 0)),
            ],
            out_specs=pl.BlockSpec((B, T * N), lambda i, pr, hr: (0, 0)),
            scratch_shapes=[
                pltpu.VMEM((B * Lmax + 2 * HALO, N), jnp.float32),   # x + halo
                pltpu.VMEM((B * Lmax + 2 * HALO, Cff), jnp.float32), # mid + halo
                pltpu.VMEM((B, T, N), jnp.float32),                  # accumulator
            ],
        ),
        # Reduction over periods -> "arbitrary".  (On v7x one could add a
        # leading 2-wide "parallel" batch axis to use both TensorCores.)
        compiler_params=pltpu.CompilerParams(dimension_semantics=("arbitrary",)),
    )(periods, hs, x, blk['w1'], blk['b1'], blk['w2'], blk['b2'], sm)
    return out.reshape(B, T, N)           # free: same HBM layout


# ----------------------------- final projection kernel -----------------------------

def linear_kernel(x_ref, w_ref, b_ref, o_ref):
    o_ref[...] = (jnp.dot(x_ref[...], w_ref[...],
                          preferred_element_type=jnp.float32)
                  + b_ref[...]).astype(o_ref.dtype)


def linear_proj(x2, w, b):
    """x2: (B, Din) -> (B, n).  Single program, one MXU dot (no per-batch grid)."""
    B, Din = x2.shape
    n = w.shape[1]
    return pl.pallas_call(
        linear_kernel,
        out_shape=jax.ShapeDtypeStruct((B, n), x2.dtype),
        grid=(1,),
        in_specs=[pl.BlockSpec((B, Din), lambda i: (0, 0)),
                  pl.BlockSpec((Din, n), lambda i: (0, 0)),
                  pl.BlockSpec((1, n), lambda i: (0, 0))],
        out_specs=pl.BlockSpec((B, n), lambda i: (0, 0)),
    )(x2, w, b.reshape(1, n))


# ----------------------------- JAX glue (FFT / embedding) -----------------------------
# TODO(synk): FFT_for_Period (rfft + top_k) and the tiny token/positional
# embedding stay in plain JAX (no Pallas FFT primitive); they are fully
# on-device, so the whole forward jits end-to-end with NO host sync.

def fft_for_period(x, k):
    T = x.shape[1]
    xf = jnp.fft.rfft(x, axis=1)
    amp = jnp.abs(xf).mean(axis=0).mean(axis=-1)
    amp = amp.at[0].set(0.0)
    _, top = jax.lax.top_k(amp, k)
    periods = jnp.clip(T // jnp.maximum(top, 1), 1, T).astype(jnp.int32)
    period_weight = jnp.abs(xf).mean(axis=-1)[:, top]            # (B, k)
    return periods, period_weight


def data_embedding(x, conv1d_w, d_model):
    # Circular-padded Conv1d(1, d_model, k=3, no bias) + sinusoidal PE.
    B, T, _ = x.shape
    xs = x[..., 0]
    xp = jnp.concatenate([xs[:, -1:], xs, xs[:, :1]], axis=1)    # circular pad
    taps = jnp.stack([xp[:, j:j + T] for j in range(3)], axis=-1)
    ve = jnp.einsum('btj,dj->btd', taps, conv1d_w[:, 0, :])
    pos = jnp.arange(T, dtype=jnp.float32)[:, None]
    div = jnp.exp(jnp.arange(0, d_model, 2, dtype=jnp.float32)
                  * -(math.log(10000.0) / d_model))
    pe = jnp.zeros((T, d_model), jnp.float32)
    pe = pe.at[:, 0::2].set(jnp.sin(pos * div))
    pe = pe.at[:, 1::2].set(jnp.cos(pos * div))
    return ve + pe[None]                       # dropout: eval mode => identity


def times_block(x, blk, top_k, K):
    T = x.shape[1]
    periods, pw = fft_for_period(x, top_k)
    hs = ((T + periods - 1) // periods).astype(jnp.int32)        # rows per period
    sm = jax.nn.softmax(pw, axis=1).astype(x.dtype)              # F.softmax(dim=1)
    return times_block_apply(x, blk, periods, hs, sm, K=K)


def times_model_forward(x, params, config):
    K = 2 * config['num_kernels'] - 1
    x = data_embedding(x, params['token_conv_w'], config['d_model'])
    for blk in params['blocks']:
        x = times_block(x, blk, config['top_k'], K)
    B = x.shape[0]
    return linear_proj(x.reshape(B, -1), params['proj_w'], params['proj_b'])


# ----------------------------- parameter init (matches PyTorch) -----------------------------

def init_inception(key, cin, cout, num_kernels):
    # Fold the num_kernels parallel same-padded convs (mean-pooled) into one
    # KxK conv (exact, since convolution is linear and biases are zero), laid
    # out per-tap as (K*K, Cin, Cout) in (kh, kw) row-major order.
    K = 2 * num_kernels - 1
    keys = jax.random.split(key, num_kernels)
    w_sum = jnp.zeros((cout, cin, K, K), jnp.float32)
    for i in range(num_kernels):
        k = 2 * i + 1
        std = math.sqrt(2.0 / (cout * k * k))     # kaiming_normal_ fan_out, relu
        wi = jax.random.normal(keys[i], (cout, cin, k, k), jnp.float32) * std
        off = (K - k) // 2
        w_sum = w_sum.at[:, :, off:off + k, off:off + k].add(wi)
    w_mean = w_sum / num_kernels
    w_taps = jnp.transpose(w_mean, (2, 3, 1, 0)).reshape(K * K, cin, cout)
    return w_taps, jnp.zeros((1, cout), jnp.float32)


def init_params(key, config):
    d_model, d_ff, nk = config['d_model'], config['d_ff'], config['num_kernels']
    T, n_cat = config['seg_len'], len(config['categories'])
    keys = jax.random.split(key, 2 + 2 * config['n_layers'])
    # TokenEmbedding Conv1d(1, d_model, 3): kaiming fan_in leaky_relu -> std=sqrt(2/3)
    token_w = jax.random.normal(keys[0], (d_model, 1, 3), jnp.float32) * math.sqrt(2.0 / 3.0)
    blocks = []
    for l in range(config['n_layers']):
        w1, b1 = init_inception(keys[2 + 2 * l], d_model, d_ff, nk)
        w2, b2 = init_inception(keys[3 + 2 * l], d_ff, d_model, nk)
        blocks.append(dict(w1=w1, b1=b1, w2=w2, b2=b2))
    din = d_model * T
    bound = 1.0 / math.sqrt(din)
    proj_w = jax.random.uniform(keys[1], (din, n_cat), jnp.float32, -bound, bound)
    proj_b = jax.random.uniform(jax.random.fold_in(keys[1], 1),
                                (n_cat,), jnp.float32, -bound, bound)
    return dict(token_conv_w=token_w, blocks=blocks,
                proj_w=proj_w, proj_b=proj_b)


# ----------------------------- main -----------------------------

if __name__ == "__main__":
    config = dict(seg_len=16, d_model=16, d_ff=16, num_kernels=2, top_k=2,
                  n_layers=2, drop_out=0.1, categories=[0, 1, 2, 3])
    key = jax.random.PRNGKey(0)
    pk, xk = jax.random.split(key)
    params = init_params(pk, config)
    x = jax.random.normal(xk, (2, config['seg_len'], 1), jnp.float32)

    fwd = jax.jit(functools.partial(times_model_forward, config=config))
    out = jax.block_until_ready(fwd(x, params))
    assert out.shape == (2, len(config['categories'])), out.shape
    assert bool(jnp.all(jnp.isfinite(out)))
    print("KERNEL_OK")
</pallas_src>

<mosaic_0001>
module attributes {stable_mosaic.version = 11 : i64} {
  func.func @kernel(%arg0: i32, %arg1: memref<2xi32, #tpu.memory_space<smem>>, %arg2: memref<2xi32, #tpu.memory_space<smem>>, %arg3: memref<2x16x16xf32, #tpu.memory_space<vmem>>, %arg4: memref<9x16x16xf32, #tpu.memory_space<vmem>>, %arg5: memref<1x16xf32, #tpu.memory_space<vmem>>, %arg6: memref<9x16x16xf32, #tpu.memory_space<vmem>>, %arg7: memref<1x16xf32, #tpu.memory_space<vmem>>, %arg8: memref<2x2xf32, #tpu.memory_space<vmem>>, %arg9: memref<2x256xf32, #tpu.memory_space<vmem>>, %arg10: memref<112x16xf32, #tpu.memory_space<vmem>>, %arg11: memref<112x16xf32, #tpu.memory_space<vmem>>, %arg12: memref<2x16x16xf32, #tpu.memory_space<vmem>>) attributes {dimension_semantics = [#tpu.dimension_semantics<arbitrary>], iteration_bounds = array<i64: 2>, scalar_prefetch = 2 : i64, scratch_operands = 3 : i64, tpu.core_type = #tpu.core_type<tc>, window_params = [{pipeline_mode = #tpu.pipeline_mode<synchronous>, transform_indices = @transform_0, window_bounds = array<i64: 2, 16, 16>}, {pipeline_mode = #tpu.pipeline_mode<synchronous>, transform_indices = @transform_1, window_bounds = array<i64: 9, 16, 16>}, {pipeline_mode = #tpu.pipeline_mode<synchronous>, transform_indices = @transform_2, window_bounds = array<i64: 1, 16>}, {pipeline_mode = #tpu.pipeline_mode<synchronous>, transform_indices = @transform_3, window_bounds = array<i64: 9, 16, 16>}, {pipeline_mode = #tpu.pipeline_mode<synchronous>, transform_indices = @transform_4, window_bounds = array<i64: 1, 16>}, {pipeline_mode = #tpu.pipeline_mode<synchronous>, transform_indices = @transform_5, window_bounds = array<i64: 2, 2>}, {pipeline_mode = #tpu.pipeline_mode<synchronous>, transform_indices = @transform_6, window_bounds = array<i64: 2, 256>}]} {
    %0 = arith.index_cast %arg0 : i32 to index
    %1 = memref.load %arg1[%0] : memref<2xi32, #tpu.memory_space<smem>>
    %2 = arith.index_cast %arg0 : i32 to index
    %3 = memref.load %arg2[%2] : memref<2xi32, #tpu.memory_space<smem>>
    %c0_i32 = arith.constant 0 : i32
    %4 = arith.cmpi eq, %arg0, %c0_i32 : i32
    %5 = arith.extui %4 : i1 to i32
    %c0_i32_0 = arith.constant 0 : i32
    %6 = arith.cmpi ne, %5, %c0_i32_0 : i32
    scf.if %6 {
      %cst_292 = arith.constant 0.000000e+00 : f32
      %672 = vector.broadcast %cst_292 : f32 to vector<112x16xf32>
      %c0_293 = arith.constant 0 : index
      %c0_294 = arith.constant 0 : index
      %673 = vector.load %arg10[%c0_293, %c0_294] : memref<112x16xf32, #tpu.memory_space<vmem>>, vector<112x16xf32>
      tpu.vector_store %arg10[%c0_293, %c0_294], %672 {strides = array<i32>} : memref<112x16xf32, #tpu.memory_space<vmem>>, vector<112x16xf32>,
      %cst_295 = arith.constant 0.000000e+00 : f32
      %674 = vector.broadcast %cst_295 : f32 to vector<112x16xf32>
      %c0_296 = arith.constant 0 : index
      %c0_297 = arith.constant 0 : index
      %675 = vector.load %arg11[%c0_296, %c0_297] : memref<112x16xf32, #tpu.memory_space<vmem>>, vector<112x16xf32>
      tpu.vector_store %arg11[%c0_296, %c0_297], %674 {strides = array<i32>} : memref<112x16xf32, #tpu.memory_space<vmem>>, vector<112x16xf32>,
      %c0_298 = arith.constant 0 : index
      %c0_299 = arith.constant 0 : index
      %c0_300 = arith.constant 0 : index
      %676 = vector.load %arg3[%c0_298, %c0_299, %c0_300] : memref<2x16x16xf32, #tpu.memory_space<vmem>>, vector<1x16x16xf32>
      %677 = vector.shape_cast %676 : vector<1x16x16xf32> to vector<16x16xf32>
      %c24_301 = arith.constant 24 : index
      %c0_302 = arith.constant 0 : index
      %678 = vector.load %arg10[%c24_301, %c0_302] : memref<112x16xf32, #tpu.memory_space<vmem>>, vector<16x16xf32>
      tpu.vector_store %arg10[%c24_301, %c0_302], %677 {strides = array<i32>} : memref<112x16xf32, #tpu.memory_space<vmem>>, vector<16x16xf32>,
      %c1_303 = arith.constant 1 : index
      %c0_304 = arith.constant 0 : index
      %c0_305 = arith.constant 0 : index
      %679 = vector.load %arg3[%c1_303, %c0_304, %c0_305] : memref<2x16x16xf32, #tpu.memory_space<vmem>>, vector<1x16x16xf32>
      %680 = vector.shape_cast %679 : vector<1x16x16xf32> to vector<16x16xf32>
      %c56 = arith.constant 56 : index
      %c0_306 = arith.constant 0 : index
      %681 = vector.load %arg10[%c56, %c0_306] : memref<112x16xf32, #tpu.memory_space<vmem>>, vector<16x16xf32>
      tpu.vector_store %arg10[%c56, %c0_306], %680 {strides = array<i32>} : memref<112x16xf32, #tpu.memory_space<vmem>>, vector<16x16xf32>,
    } else {
    }
    %7 = tpu.iota {dimensions = array<i32: 0>} : vector<32x1xi32>
    %8 = vector.broadcast %1 : i32 to vector<32x1xi32>
    %9 = arith.sitofp %7 : vector<32x1xi32> to vector<32x1xf32>
    %10 = arith.sitofp %8 : vector<32x1xi32> to vector<32x1xf32>
    %11 = arith.divf %9, %10 : vector<32x1xf32>
    %12 = arith.fptosi %11 : vector<32x1xf32> to vector<32x1xi32>
    %13 = arith.muli %12, %8 : vector<32x1xi32>
    %14 = arith.subi %7, %13 : vector<32x1xi32>
    %15 = tpu.concatenate %12, %12 in 0 : vector<32x1xi32>, vector<32x1xi32> -> vector<64x1xi32>
    %16 = tpu.concatenate %14, %14 in 0 : vector<32x1xi32>, vector<32x1xi32> -> vector<64x1xi32>
    %cst = arith.constant 0.000000e+00 : f32
    %17 = vector.broadcast %cst : f32 to vector<64x16xf32>
    %c-1_i32 = arith.constant -1 : i32
    %18 = arith.muli %c-1_i32, %1 : i32
    %c-1_i32_1 = arith.constant -1 : i32
    %19 = arith.addi %18, %c-1_i32_1 : i32
    %c24_i32 = arith.constant 24 : i32
    %20 = arith.addi %c24_i32, %19 : i32
    %21 = arith.index_cast %20 : i32 to index
    %c0 = arith.constant 0 : index
    %22 = vector.load %arg10[%21, %c0] : memref<112x16xf32, #tpu.memory_space<vmem>>, vector<64x16xf32>
    %c-1_i32_2 = arith.constant -1 : i32
    %23 = vector.broadcast %c-1_i32_2 : i32 to vector<64x1xi32>
    %24 = arith.addi %15, %23 : vector<64x1xi32>
    %c0_i32_3 = arith.constant 0 : i32
    %25 = vector.broadcast %c0_i32_3 : i32 to vector<64x1xi32>
    %26 = arith.cmpi sge, %24, %25 : vector<64x1xi32>
    %c-1_i32_4 = arith.constant -1 : i32
    %27 = vector.broadcast %c-1_i32_4 : i32 to vector<64x1xi32>
    %28 = arith.addi %15, %27 : vector<64x1xi32>
    %29 = vector.broadcast %3 : i32 to vector<64x1xi32>
    %30 = arith.cmpi slt, %28, %29 : vector<64x1xi32>
    %31 = arith.andi %26, %30 : vector<64x1xi1>
    %c-1_i32_5 = arith.constant -1 : i32
    %32 = vector.broadcast %c-1_i32_5 : i32 to vector<64x1xi32>
    %33 = arith.addi %16, %32 : vector<64x1xi32>
    %c0_i32_6 = arith.constant 0 : i32
    %34 = vector.broadcast %c0_i32_6 : i32 to vector<64x1xi32>
    %35 = arith.cmpi sge, %33, %34 : vector<64x1xi32>
    %36 = arith.andi %31, %35 : vector<64x1xi1>
    %c-1_i32_7 = arith.constant -1 : i32
    %37 = vector.broadcast %c-1_i32_7 : i32 to vector<64x1xi32>
    %38 = arith.addi %16, %37 : vector<64x1xi32>
    %39 = vector.broadcast %1 : i32 to vector<64x1xi32>
    %40 = arith.cmpi slt, %38, %39 : vector<64x1xi32>
    %41 = arith.andi %36, %40 : vector<64x1xi1>
    %cst_8 = arith.constant 0.000000e+00 : f32
    %42 = vector.shape_cast %41 : vector<64x1xi1> to vector<64x1xi1>
    %43 = vector.broadcast %42 : vector<64x1xi1> to vector<64x16xi1>
    %44 = vector.broadcast %cst_8 : f32 to vector<64x16xf32>
    %45 = arith.select %43, %22, %44 : vector<64x16xi1>, vector<64x16xf32>
    %c0_9 = arith.constant 0 : index
    %c0_10 = arith.constant 0 : index
    %c0_11 = arith.constant 0 : index
    %46 = vector.load %arg4[%c0_9, %c0_10, %c0_11] : memref<9x16x16xf32, #tpu.memory_space<vmem>>, vector<1x16x16xf32>
    %47 = vector.shape_cast %46 : vector<1x16x16xf32> to vector<16x16xf32>
    %cst_12 = arith.constant dense<0.000000e+00> : vector<64x16xf32>
    %48 = tpu.matmul %45, %47, %cst_12 {dimension_numbers = #tpu.dot_dimension_numbers<[1], [0], [0], [1], [0, 0, 1, 1], [], []>} : vector<64x16xf32>, vector<16x16xf32>, vector<64x16xf32> -> vector<64x16xf32>
    %49 = arith.addf %17, %48 : vector<64x16xf32>
    %c-1_i32_13 = arith.constant -1 : i32
    %50 = arith.muli %c-1_i32_13, %1 : i32
    %c0_i32_14 = arith.constant 0 : i32
    %51 = arith.addi %50, %c0_i32_14 : i32
    %c24_i32_15 = arith.constant 24 : i32
    %52 = arith.addi %c24_i32_15, %51 : i32
    %53 = arith.index_cast %52 : i32 to index
    %c0_16 = arith.constant 0 : index
    %54 = vector.load %arg10[%53, %c0_16] : memref<112x16xf32, #tpu.memory_space<vmem>>, vector<64x16xf32>
    %c-1_i32_17 = arith.constant -1 : i32
    %55 = vector.broadcast %c-1_i32_17 : i32 to vector<64x1xi32>
    %56 = arith.addi %15, %55 : vector<64x1xi32>
    %c0_i32_18 = arith.constant 0 : i32
    %57 = vector.broadcast %c0_i32_18 : i32 to vector<64x1xi32>
    %58 = arith.cmpi sge, %56, %57 : vector<64x1xi32>
    %c-1_i32_19 = arith.constant -1 : i32
    %59 = vector.broadcast %c-1_i32_19 : i32 to vector<64x1xi32>
    %60 = arith.addi %15, %59 : vector<64x1xi32>
    %61 = vector.broadcast %3 : i32 to vector<64x1xi32>
    %62 = arith.cmpi slt, %60, %61 : vector<64x1xi32>
    %63 = arith.andi %58, %62 : vector<64x1xi1>
    %c0_i32_20 = arith.constant 0 : i32
    %64 = vector.broadcast %c0_i32_20 : i32 to vector<64x1xi32>
    %65 = arith.addi %16, %64 : vector<64x1xi32>
    %c0_i32_21 = arith.constant 0 : i32
    %66 = vector.broadcast %c0_i32_21 : i32 to vector<64x1xi32>
    %67 = arith.cmpi sge, %65, %66 : vector<64x1xi32>
    %68 = arith.andi %63, %67 : vector<64x1xi1>
    %c0_i32_22 = arith.constant 0 : i32
    %69 = vector.broadcast %c0_i32_22 : i32 to vector<64x1xi32>
    %70 = arith.addi %16, %69 : vector<64x1xi32>
    %71 = vector.broadcast %1 : i32 to vector<64x1xi32>
    %72 = arith.cmpi slt, %70, %71 : vector<64x1xi32>
    %73 = arith.andi %68, %72 : vector<64x1xi1>
    %cst_23 = arith.constant 0.000000e+00 : f32
    %74 = vector.shape_cast %73 : vector<64x1xi1> to vector<64x1xi1>
    %75 = vector.broadcast %74 : vector<64x1xi1> to vector<64x16xi1>
    %76 = vector.broadcast %cst_23 : f32 to vector<64x16xf32>
    %77 = arith.select %75, %54, %76 : vector<64x16xi1>, vector<64x16xf32>
    %c1 = arith.constant 1 : index
    %c0_24 = arith.constant 0 : index
    %c0_25 = arith.constant 0 : index
    %78 = vector.load %arg4[%c1, %c0_24, %c0_25] : memref<9x16x16xf32, #tpu.memory_space<vmem>>, vector<1x16x16xf32>
    %79 = vector.shape_cast %78 : vector<1x16x16xf32> to vector<16x16xf32>
    %cst_26 = arith.constant dense<0.000000e+00> : vector<64x16xf32>
    %80 = tpu.matmul %77, %79, %cst_26 {dimension_numbers = #tpu.dot_dimension_numbers<[1], [0], [0], [1], [0, 0, 1, 1], [], []>} : vector<64x16xf32>, vector<16x16xf32>, vector<64x16xf32> -> vector<64x16xf32>
    %81 = arith.addf %49, %80 : vector<64x16xf32>
    %c-1_i32_27 = arith.constant -1 : i32
    %82 = arith.muli %c-1_i32_27, %1 : i32
    %c1_i32 = arith.constant 1 : i32
    %83 = arith.addi %82, %c1_i32 : i32
    %c24_i32_28 = arith.constant 24 : i32
    %84 = arith.addi %c24_i32_28, %83 : i32
    %85 = arith.index_cast %84 : i32 to index
    %c0_29 = arith.constant 0 : index
    %86 = vector.load %arg10[%85, %c0_29] : memref<112x16xf32, #tpu.memory_space<vmem>>, vector<64x16xf32>
    %c-1_i32_30 = arith.constant -1 : i32
    %87 = vector.broadcast %c-1_i32_30 : i32 to vector<64x1xi32>
    %88 = arith.addi %15, %87 : vector<64x1xi32>
    %c0_i32_31 = arith.constant 0 : i32
    %89 = vector.broadcast %c0_i32_31 : i32 to vector<64x1xi32>
    %90 = arith.cmpi sge, %88, %89 : vector<64x1xi32>
    %c-1_i32_32 = arith.constant -1 : i32
    %91 = vector.broadcast %c-1_i32_32 : i32 to vector<64x1xi32>
    %92 = arith.addi %15, %91 : vector<64x1xi32>
    %93 = vector.broadcast %3 : i32 to vector<64x1xi32>
    %94 = arith.cmpi slt, %92, %93 : vector<64x1xi32>
    %95 = arith.andi %90, %94 : vector<64x1xi1>
    %c1_i32_33 = arith.constant 1 : i32
    %96 = vector.broadcast %c1_i32_33 : i32 to vector<64x1xi32>
    %97 = arith.addi %16, %96 : vector<64x1xi32>
    %c0_i32_34 = arith.constant 0 : i32
    %98 = vector.broadcast %c0_i32_34 : i32 to vector<64x1xi32>
    %99 = arith.cmpi sge, %97, %98 : vector<64x1xi32>
    %100 = arith.andi %95, %99 : vector<64x1xi1>
    %c1_i32_35 = arith.constant 1 : i32
    %101 = vector.broadcast %c1_i32_35 : i32 to vector<64x1xi32>
    %102 = arith.addi %16, %101 : vector<64x1xi32>
    %103 = vector.broadcast %1 : i32 to vector<64x1xi32>
    %104 = arith.cmpi slt, %102, %103 : vector<64x1xi32>
    %105 = arith.andi %100, %104 : vector<64x1xi1>
    %cst_36 = arith.constant 0.000000e+00 : f32
    %106 = vector.shape_cast %105 : vector<64x1xi1> to vector<64x1xi1>
    %107 = vector.broadcast %106 : vector<64x1xi1> to vector<64x16xi1>
    %108 = vector.broadcast %cst_36 : f32 to vector<64x16xf32>
    %109 = arith.select %107, %86, %108 : vector<64x16xi1>, vector<64x16xf32>
    %c2 = arith.constant 2 : index
    %c0_37 = arith.constant 0 : index
    %c0_38 = arith.constant 0 : index
    %110 = vector.load %arg4[%c2, %c0_37, %c0_38] : memref<9x16x16xf32, #tpu.memory_space<vmem>>, vector<1x16x16xf32>
    %111 = vector.shape_cast %110 : vector<1x16x16xf32> to vector<16x16xf32>
    %cst_39 = arith.constant dense<0.000000e+00> : vector<64x16xf32>
    %112 = tpu.matmul %109, %111, %cst_39 {dimension_numbers = #tpu.dot_dimension_numbers<[1], [0], [0], [1], [0, 0, 1, 1], [], []>} : vector<64x16xf32>, vector<16x16xf32>, vector<64x16xf32> -> vector<64x16xf32>
    %113 = arith.addf %81, %112 : vector<64x16xf32>
    %c0_i32_40 = arith.constant 0 : i32
    %114 = arith.muli %c0_i32_40, %1 : i32
    %c-1_i32_41 = arith.constant -1 : i32
    %115 = arith.addi %114, %c-1_i32_41 : i32
    %c24_i32_42 = arith.constant 24 : i32
    %116 = arith.addi %c24_i32_42, %115 : i32
    %117 = arith.index_cast %116 : i32 to index
    %c0_43 = arith.constant 0 : index
    %118 = vector.load %arg10[%117, %c0_43] : memref<112x16xf32, #tpu.memory_space<vmem>>, vector<64x16xf32>
    %c0_i32_44 = arith.constant 0 : i32
    %119 = vector.broadcast %c0_i32_44 : i32 to vector<64x1xi32>
    %120 = arith.addi %15, %119 : vector<64x1xi32>
    %c0_i32_45 = arith.constant 0 : i32
    %121 = vector.broadcast %c0_i32_45 : i32 to vector<64x1xi32>
    %122 = arith.cmpi sge, %120, %121 : vector<64x1xi32>
    %c0_i32_46 = arith.constant 0 : i32
    %123 = vector.broadcast %c0_i32_46 : i32 to vector<64x1xi32>
    %124 = arith.addi %15, %123 : vector<64x1xi32>
    %125 = vector.broadcast %3 : i32 to vector<64x1xi32>
    %126 = arith.cmpi slt, %124, %125 : vector<64x1xi32>
    %127 = arith.andi %122, %126 : vector<64x1xi1>
    %c-1_i32_47 = arith.constant -1 : i32
    %128 = vector.broadcast %c-1_i32_47 : i32 to vector<64x1xi32>
    %129 = arith.addi %16, %128 : vector<64x1xi32>
    %c0_i32_48 = arith.constant 0 : i32
    %130 = vector.broadcast %c0_i32_48 : i32 to vector<64x1xi32>
    %131 = arith.cmpi sge, %129, %130 : vector<64x1xi32>
    %132 = arith.andi %127, %131 : vector<64x1xi1>
    %c-1_i32_49 = arith.constant -1 : i32
    %133 = vector.broadcast %c-1_i32_49 : i32 to vector<64x1xi32>
    %134 = arith.addi %16, %133 : vector<64x1xi32>
    %135 = vector.broadcast %1 : i32 to vector<64x1xi32>
    %136 = arith.cmpi slt, %134, %135 : vector<64x1xi32>
    %137 = arith.andi %132, %136 : vector<64x1xi1>
    %cst_50 = arith.constant 0.000000e+00 : f32
    %138 = vector.shape_cast %137 : vector<64x1xi1> to vector<64x1xi1>
    %139 = vector.broadcast %138 : vector<64x1xi1> to vector<64x16xi1>
    %140 = vector.broadcast %cst_50 : f32 to vector<64x16xf32>
    %141 = arith.select %139, %118, %140 : vector<64x16xi1>, vector<64x16xf32>
    %c3 = arith.constant 3 : index
    %c0_51 = arith.constant 0 : index
    %c0_52 = arith.constant 0 : index
    %142 = vector.load %arg4[%c3, %c0_51, %c0_52] : memref<9x16x16xf32, #tpu.memory_space<vmem>>, vector<1x16x16xf32>
    %143 = vector.shape_cast %142 : vector<1x16x16xf32> to vector<16x16xf32>
    %cst_53 = arith.constant dense<0.000000e+00> : vector<64x16xf32>
    %144 = tpu.matmul %141, %143, %cst_53 {dimension_numbers = #tpu.dot_dimension_numbers<[1], [0], [0], [1], [0, 0, 1, 1], [], []>} : vector<64x16xf32>, vector<16x16xf32>, vector<64x16xf32> -> vector<64x16xf32>
    %145 = arith.addf %113, %144 : vector<64x16xf32>
    %c0_i32_54 = arith.constant 0 : i32
    %146 = arith.muli %c0_i32_54, %1 : i32
    %c0_i32_55 = arith.constant 0 : i32
    %147 = arith.addi %146, %c0_i32_55 : i32
    %c24_i32_56 = arith.constant 24 : i32
    %148 = arith.addi %c24_i32_56, %147 : i32
    %149 = arith.index_cast %148 : i32 to index
    %c0_57 = arith.constant 0 : index
    %150 = vector.load %arg10[%149, %c0_57] : memref<112x16xf32, #tpu.memory_space<vmem>>, vector<64x16xf32>
    %c0_i32_58 = arith.constant 0 : i32
    %151 = vector.broadcast %c0_i32_58 : i32 to vector<64x1xi32>
    %152 = arith.addi %15, %151 : vector<64x1xi32>
    %c0_i32_59 = arith.constant 0 : i32
    %153 = vector.broadcast %c0_i32_59 : i32 to vector<64x1xi32>
    %154 = arith.cmpi sge, %152, %153 : vector<64x1xi32>
    %c0_i32_60 = arith.constant 0 : i32
    %155 = vector.broadcast %c0_i32_60 : i32 to vector<64x1xi32>
    %156 = arith.addi %15, %155 : vector<64x1xi32>
    %157 = vector.broadcast %3 : i32 to vector<64x1xi32>
    %158 = arith.cmpi slt, %156, %157 : vector<64x1xi32>
    %159 = arith.andi %154, %158 : vector<64x1xi1>
    %c0_i32_61 = arith.constant 0 : i32
    %160 = vector.broadcast %c0_i32_61 : i32 to vector<64x1xi32>
    %161 = arith.addi %16, %160 : vector<64x1xi32>
    %c0_i32_62 = arith.constant 0 : i32
    %162 = vector.broadcast %c0_i32_62 : i32 to vector<64x1xi32>
    %163 = arith.cmpi sge, %161, %162 : vector<64x1xi32>
    %164 = arith.andi %159, %163 : vector<64x1xi1>
    %c0_i32_63 = arith.constant 0 : i32
    %165 = vector.broadcast %c0_i32_63 : i32 to vector<64x1xi32>
    %166 = arith.addi %16, %165 : vector<64x1xi32>
    %167 = vector.broadcast %1 : i32 to vector<64x1xi32>
    %168 = arith.cmpi slt, %166, %167 : vector<64x1xi32>
    %169 = arith.andi %164, %168 : vector<64x1xi1>
    %cst_64 = arith.constant 0.000000e+00 : f32
    %170 = vector.shape_cast %169 : vector<64x1xi1> to vector<64x1xi1>
    %171 = vector.broadcast %170 : vector<64x1xi1> to vector<64x16xi1>
    %172 = vector.broadcast %cst_64 : f32 to vector<64x16xf32>
    %173 = arith.select %171, %150, %172 : vector<64x16xi1>, vector<64x16xf32>
    %c4 = arith.constant 4 : index
    %c0_65 = arith.constant 0 : index
    %c0_66 = arith.constant 0 : index
    %174 = vector.load %arg4[%c4, %c0_65, %c0_66] : memref<9x16x16xf32, #tpu.memory_space<vmem>>, vector<1x16x16xf32>
    %175 = vector.shape_cast %174 : vector<1x16x16xf32> to vector<16x16xf32>
    %cst_67 = arith.constant dense<0.000000e+00> : vector<64x16xf32>
    %176 = tpu.matmul %173, %175, %cst_67 {dimension_numbers = #tpu.dot_dimension_numbers<[1], [0], [0], [1], [0, 0, 1, 1], [], []>} : vector<64x16xf32>, vector<16x16xf32>, vector<64x16xf32> -> vector<64x16xf32>
    %177 = arith.addf %145, %176 : vector<64x16xf32>
    %c0_i32_68 = arith.constant 0 : i32
    %178 = arith.muli %c0_i32_68, %1 : i32
    %c1_i32_69 = arith.constant 1 : i32
    %179 = arith.addi %178, %c1_i32_69 : i32
    %c24_i32_70 = arith.constant 24 : i32
    %180 = arith.addi %c24_i32_70, %179 : i32
    %181 = arith.index_cast %180 : i32 to index
    %c0_71 = arith.constant 0 : index
    %182 = vector.load %arg10[%181, %c0_71] : memref<112x16xf32, #tpu.memory_space<vmem>>, vector<64x16xf32>
    %c0_i32_72 = arith.constant 0 : i32
    %183 = vector.broadcast %c0_i32_72 : i32 to vector<64x1xi32>
    %184 = arith.addi %15, %183 : vector<64x1xi32>
    %c0_i32_73 = arith.constant 0 : i32
    %185 = vector.broadcast %c0_i32_73 : i32 to vector<64x1xi32>
    %186 = arith.cmpi sge, %184, %185 : vector<64x1xi32>
    %c0_i32_74 = arith.constant 0 : i32
    %187 = vector.broadcast %c0_i32_74 : i32 to vector<64x1xi32>
    %188 = arith.addi %15, %187 : vector<64x1xi32>
    %189 = vector.broadcast %3 : i32 to vector<64x1xi32>
    %190 = arith.cmpi slt, %188, %189 : vector<64x1xi32>
    %191 = arith.andi %186, %190 : vector<64x1xi1>
    %c1_i32_75 = arith.constant 1 : i32
    %192 = vector.broadcast %c1_i32_75 : i32 to vector<64x1xi32>
    %193 = arith.addi %16, %192 : vector<64x1xi32>
    %c0_i32_76 = arith.constant 0 : i32
    %194 = vector.broadcast %c0_i32_76 : i32 to vector<64x1xi32>
    %195 = arith.cmpi sge, %193, %194 : vector<64x1xi32>
    %196 = arith.andi %191, %195 : vector<64x1xi1>
    %c1_i32_77 = arith.constant 1 : i32
    %197 = vector.broadcast %c1_i32_77 : i32 to vector<64x1xi32>
    %198 = arith.addi %16, %197 : vector<64x1xi32>
    %199 = vector.broadcast %1 : i32 to vector<64x1xi32>
    %200 = arith.cmpi slt, %198, %199 : vector<64x1xi32>
    %201 = arith.andi %196, %200 : vector<64x1xi1>
    %cst_78 = arith.constant 0.000000e+00 : f32
    %202 = vector.shape_cast %201 : vector<64x1xi1> to vector<64x1xi1>
    %203 = vector.broadcast %202 : vector<64x1xi1> to vector<64x16xi1>
    %204 = vector.broadcast %cst_78 : f32 to vector<64x16xf32>
    %205 = arith.select %203, %182, %204 : vector<64x16xi1>, vector<64x16xf32>
    %c5 = arith.constant 5 : index
    %c0_79 = arith.constant 0 : index
    %c0_80 = arith.constant 0 : index
    %206 = vector.load %arg4[%c5, %c0_79, %c0_80] : memref<9x16x16xf32, #tpu.memory_space<vmem>>, vector<1x16x16xf32>
    %207 = vector.shape_cast %206 : vector<1x16x16xf32> to vector<16x16xf32>
    %cst_81 = arith.constant dense<0.000000e+00> : vector<64x16xf32>
    %208 = tpu.matmul %205, %207, %cst_81 {dimension_numbers = #tpu.dot_dimension_numbers<[1], [0], [0], [1], [0, 0, 1, 1], [], []>} : vector<64x16xf32>, vector<16x16xf32>, vector<64x16xf32> -> vector<64x16xf32>
    %209 = arith.addf %177, %208 : vector<64x16xf32>
    %c1_i32_82 = arith.constant 1 : i32
    %210 = arith.muli %c1_i32_82, %1 : i32
    %c-1_i32_83 = arith.constant -1 : i32
    %211 = arith.addi %210, %c-1_i32_83 : i32
    %c24_i32_84 = arith.constant 24 : i32
    %212 = arith.addi %c24_i32_84, %211 : i32
    %213 = arith.index_cast %212 : i32 to index
    %c0_85 = arith.constant 0 : index
    %214 = vector.load %arg10[%213, %c0_85] : memref<112x16xf32, #tpu.memory_space<vmem>>, vector<64x16xf32>
    %c1_i32_86 = arith.constant 1 : i32
    %215 = vector.broadcast %c1_i32_86 : i32 to vector<64x1xi32>
    %216 = arith.addi %15, %215 : vector<64x1xi32>
    %c0_i32_87 = arith.constant 0 : i32
    %217 = vector.broadcast %c0_i32_87 : i32 to vector<64x1xi32>
    %218 = arith.cmpi sge, %216, %217 : vector<64x1xi32>
    %c1_i32_88 = arith.constant 1 : i32
    %219 = vector.broadcast %c1_i32_88 : i32 to vector<64x1xi32>
    %220 = arith.addi %15, %219 : vector<64x1xi32>
    %221 = vector.broadcast %3 : i32 to vector<64x1xi32>
    %222 = arith.cmpi slt, %220, %221 : vector<64x1xi32>
    %223 = arith.andi %218, %222 : vector<64x1xi1>
    %c-1_i32_89 = arith.constant -1 : i32
    %224 = vector.broadcast %c-1_i32_89 : i32 to vector<64x1xi32>
    %225 = arith.addi %16, %224 : vector<64x1xi32>
    %c0_i32_90 = arith.constant 0 : i32
    %226 = vector.broadcast %c0_i32_90 : i32 to vector<64x1xi32>
    %227 = arith.cmpi sge, %225, %226 : vector<64x1xi32>
    %228 = arith.andi %223, %227 : vector<64x1xi1>
    %c-1_i32_91 = arith.constant -1 : i32
    %229 = vector.broadcast %c-1_i32_91 : i32 to vector<64x1xi32>
    %230 = arith.addi %16, %229 : vector<64x1xi32>
    %231 = vector.broadcast %1 : i32 to vector<64x1xi32>
    %232 = arith.cmpi slt, %230, %231 : vector<64x1xi32>
    %233 = arith.andi %228, %232 : vector<64x1xi1>
    %cst_92 = arith.constant 0.000000e+00 : f32
    %234 = vector.shape_cast %233 : vector<64x1xi1> to vector<64x1xi1>
    %235 = vector.broadcast %234 : vector<64x1xi1> to vector<64x16xi1>
    %236 = vector.broadcast %cst_92 : f32 to vector<64x16xf32>
    %237 = arith.select %235, %214, %236 : vector<64x16xi1>, vector<64x16xf32>
    %c6 = arith.constant 6 : index
    %c0_93 = arith.constant 0 : index
    %c0_94 = arith.constant 0 : index
    %238 = vector.load %arg4[%c6, %c0_93, %c0_94] : memref<9x16x16xf32, #tpu.memory_space<vmem>>, vector<1x16x16xf32>
    %239 = vector.shape_cast %238 : vector<1x16x16xf32> to vector<16x16xf32>
    %cst_95 = arith.constant dense<0.000000e+00> : vector<64x16xf32>
    %240 = tpu.matmul %237, %239, %cst_95 {dimension_numbers = #tpu.dot_dimension_numbers<[1], [0], [0], [1], [0, 0, 1, 1], [], []>} : vector<64x16xf32>, vector<16x16xf32>, vector<64x16xf32> -> vector<64x16xf32>
    %241 = arith.addf %209, %240 : vector<64x16xf32>
    %c1_i32_96 = arith.constant 1 : i32
    %242 = arith.muli %c1_i32_96, %1 : i32
    %c0_i32_97 = arith.constant 0 : i32
    %243 = arith.addi %242, %c0_i32_97 : i32
    %c24_i32_98 = arith.constant 24 : i32
    %244 = arith.addi %c24_i32_98, %243 : i32
    %245 = arith.index_cast %244 : i32 to index
    %c0_99 = arith.constant 0 : index
    %246 = vector.load %arg10[%245, %c0_99] : memref<112x16xf32, #tpu.memory_space<vmem>>, vector<64x16xf32>
    %c1_i32_100 = arith.constant 1 : i32
    %247 = vector.broadcast %c1_i32_100 : i32 to vector<64x1xi32>
    %248 = arith.addi %15, %247 : vector<64x1xi32>
    %c0_i32_101 = arith.constant 0 : i32
    %249 = vector.broadcast %c0_i32_101 : i32 to vector<64x1xi32>
    %250 = arith.cmpi sge, %248, %249 : vector<64x1xi32>
    %c1_i32_102 = arith.constant 1 : i32
    %251 = vector.broadcast %c1_i32_102 : i32 to vector<64x1xi32>
    %252 = arith.addi %15, %251 : vector<64x1xi32>
    %253 = vector.broadcast %3 : i32 to vector<64x1xi32>
    %254 = arith.cmpi slt, %252, %253 : vector<64x1xi32>
    %255 = arith.andi %250, %254 : vector<64x1xi1>
    %c0_i32_103 = arith.constant 0 : i32
    %256 = vector.broadcast %c0_i32_103 : i32 to vector<64x1xi32>
    %257 = arith.addi %16, %256 : vector<64x1xi32>
    %c0_i32_104 = arith.constant 0 : i32
    %258 = vector.broadcast %c0_i32_104 : i32 to vector<64x1xi32>
    %259 = arith.cmpi sge, %257, %258 : vector<64x1xi32>
    %260 = arith.andi %255, %259 : vector<64x1xi1>
    %c0_i32_105 = arith.constant 0 : i32
    %261 = vector.broadcast %c0_i32_105 : i32 to vector<64x1xi32>
    %262 = arith.addi %16, %261 : vector<64x1xi32>
    %263 = vector.broadcast %1 : i32 to vector<64x1xi32>
    %264 = arith.cmpi slt, %262, %263 : vector<64x1xi32>
    %265 = arith.andi %260, %264 : vector<64x1xi1>
    %cst_106 = arith.constant 0.000000e+00 : f32
    %266 = vector.shape_cast %265 : vector<64x1xi1> to vector<64x1xi1>
    %267 = vector.broadcast %266 : vector<64x1xi1> to vector<64x16xi1>
    %268 = vector.broadcast %cst_106 : f32 to vector<64x16xf32>
    %269 = arith.select %267, %246, %268 : vector<64x16xi1>, vector<64x16xf32>
    %c7 = arith.constant 7 : index
    %c0_107 = arith.constant 0 : index
    %c0_108 = arith.constant 0 : index
    %270 = vector.load %arg4[%c7, %c0_107, %c0_108] : memref<9x16x16xf32, #tpu.memory_space<vmem>>, vector<1x16x16xf32>
    %271 = vector.shape_cast %270 : vector<1x16x16xf32> to vector<16x16xf32>
    %cst_109 = arith.constant dense<0.000000e+00> : vector<64x16xf32>
    %272 = tpu.matmul %269, %271, %cst_109 {dimension_numbers = #tpu.dot_dimension_numbers<[1], [0], [0], [1], [0, 0, 1, 1], [], []>} : vector<64x16xf32>, vector<16x16xf32>, vector<64x16xf32> -> vector<64x16xf32>
    %273 = arith.addf %241, %272 : vector<64x16xf32>
    %c1_i32_110 = arith.constant 1 : i32
    %274 = arith.muli %c1_i32_110, %1 : i32
    %c1_i32_111 = arith.constant 1 : i32
    %275 = arith.addi %274, %c1_i32_111 : i32
    %c24_i32_112 = arith.constant 24 : i32
    %276 = arith.addi %c24_i32_112, %275 : i32
    %277 = arith.index_cast %276 : i32 to index
    %c0_113 = arith.constant 0 : index
    %278 = vector.load %arg10[%277, %c0_113] : memref<112x16xf32, #tpu.memory_space<vmem>>, vector<64x16xf32>
    %c1_i32_114 = arith.constant 1 : i32
    %279 = vector.broadcast %c1_i32_114 : i32 to vector<64x1xi32>
    %280 = arith.addi %15, %279 : vector<64x1xi32>
    %c0_i32_115 = arith.constant 0 : i32
    %281 = vector.broadcast %c0_i32_115 : i32 to vector<64x1xi32>
    %282 = arith.cmpi sge, %280, %281 : vector<64x1xi32>
    %c1_i32_116 = arith.constant 1 : i32
    %283 = vector.broadcast %c1_i32_116 : i32 to vector<64x1xi32>
    %284 = arith.addi %15, %283 : vector<64x1xi32>
    %285 = vector.broadcast %3 : i32 to vector<64x1xi32>
    %286 = arith.cmpi slt, %284, %285 : vector<64x1xi32>
    %287 = arith.andi %282, %286 : vector<64x1xi1>
    %c1_i32_117 = arith.constant 1 : i32
    %288 = vector.broadcast %c1_i32_117 : i32 to vector<64x1xi32>
    %289 = arith.addi %16, %288 : vector<64x1xi32>
    %c0_i32_118 = arith.constant 0 : i32
    %290 = vector.broadcast %c0_i32_118 : i32 to vector<64x1xi32>
    %291 = arith.cmpi sge, %289, %290 : vector<64x1xi32>
    %292 = arith.andi %287, %291 : vector<64x1xi1>
    %c1_i32_119 = arith.constant 1 : i32
    %293 = vector.broadcast %c1_i32_119 : i32 to vector<64x1xi32>
    %294 = arith.addi %16, %293 : vector<64x1xi32>
    %295 = vector.broadcast %1 : i32 to vector<64x1xi32>
    %296 = arith.cmpi slt, %294, %295 : vector<64x1xi32>
    %297 = arith.andi %292, %296 : vector<64x1xi1>
    %cst_120 = arith.constant 0.000000e+00 : f32
    %298 = vector.shape_cast %297 : vector<64x1xi1> to vector<64x1xi1>
    %299 = vector.broadcast %298 : vector<64x1xi1> to vector<64x16xi1>
    %300 = vector.broadcast %cst_120 : f32 to vector<64x16xf32>
    %301 = arith.select %299, %278, %300 : vector<64x16xi1>, vector<64x16xf32>
    %c8 = arith.constant 8 : index
    %c0_121 = arith.constant 0 : index
    %c0_122 = arith.constant 0 : index
    %302 = vector.load %arg4[%c8, %c0_121, %c0_122] : memref<9x16x16xf32, #tpu.memory_space<vmem>>, vector<1x16x16xf32>
    %303 = vector.shape_cast %302 : vector<1x16x16xf32> to vector<16x16xf32>
    %cst_123 = arith.constant dense<0.000000e+00> : vector<64x16xf32>
    %304 = tpu.matmul %301, %303, %cst_123 {dimension_numbers = #tpu.dot_dimension_numbers<[1], [0], [0], [1], [0, 0, 1, 1], [], []>} : vector<64x16xf32>, vector<16x16xf32>, vector<64x16xf32> -> vector<64x16xf32>
    %305 = arith.addf %273, %304 : vector<64x16xf32>
    %c0_124 = arith.constant 0 : index
    %c0_125 = arith.constant 0 : index
    %306 = vector.load %arg5[%c0_124, %c0_125] : memref<1x16xf32, #tpu.memory_space<vmem>>, vector<1x16xf32>
    %307 = vector.broadcast %306 : vector<1x16xf32> to vector<64x16xf32>
    %308 = arith.addf %305, %307 : vector<64x16xf32>
    %cst_126 = arith.constant 0.707106769 : f32
    %309 = vector.broadcast %cst_126 : f32 to vector<64x16xf32>
    %310 = arith.mulf %308, %309 : vector<64x16xf32>
    %cst_127 = arith.constant -4.000000e+00 : f32
    %cst_128 = arith.constant 4.000000e+00 : f32
    %311 = vector.broadcast %cst_127 : f32 to vector<64x16xf32>
    %312 = arith.maximumf %311, %310 : vector<64x16xf32>
    %313 = vector.broadcast %cst_128 : f32 to vector<64x16xf32>
    %314 = arith.minimumf %313, %312 : vector<64x16xf32>
    %315 = arith.mulf %314, %314 : vector<64x16xf32>
    %cst_129 = arith.constant -2.72614237E-10 : f32
    %316 = vector.broadcast %cst_129 : f32 to vector<64x16xf32>
    %317 = arith.mulf %316, %315 : vector<64x16xf32>
    %cst_130 = arith.constant 2.77068146E-8 : f32
    %318 = vector.broadcast %cst_130 : f32 to vector<64x16xf32>
    %319 = arith.addf %317, %318 : vector<64x16xf32>
    %320 = arith.mulf %319, %315 : vector<64x16xf32>
    %cst_131 = arith.constant -2.10102394E-6 : f32
    %321 = vector.broadcast %cst_131 : f32 to vector<64x16xf32>
    %322 = arith.addf %320, %321 : vector<64x16xf32>
    %323 = arith.mulf %322, %315 : vector<64x16xf32>
    %cst_132 = arith.constant -5.69250624E-5 : f32
    %324 = vector.broadcast %cst_132 : f32 to vector<64x16xf32>
    %325 = arith.addf %323, %324 : vector<64x16xf32>
    %326 = arith.mulf %325, %315 : vector<64x16xf32>
    %cst_133 = arith.constant -7.34990637E-4 : f32
    %327 = vector.broadcast %cst_133 : f32 to vector<64x16xf32>
    %328 = arith.addf %326, %327 : vector<64x16xf32>
    %329 = arith.mulf %328, %315 : vector<64x16xf32>
    %cst_134 = arith.constant -2.954600e-03 : f32
    %330 = vector.broadcast %cst_134 : f32 to vector<64x16xf32>
    %331 = arith.addf %329, %330 : vector<64x16xf32>
    %332 = arith.mulf %331, %315 : vector<64x16xf32>
    %cst_135 = arith.constant -0.0160960332 : f32
    %333 = vector.broadcast %cst_135 : f32 to vector<64x16xf32>
    %334 = arith.addf %332, %333 : vector<64x16xf32>
    %cst_136 = arith.constant -1.45660715E-5 : f32
    %335 = vector.broadcast %cst_136 : f32 to vector<64x16xf32>
    %336 = arith.mulf %335, %315 : vector<64x16xf32>
    %cst_137 = arith.constant -2.13374049E-4 : f32
    %337 = vector.broadcast %cst_137 : f32 to vector<64x16xf32>
    %338 = arith.addf %336, %337 : vector<64x16xf32>
    %339 = arith.mulf %338, %315 : vector<64x16xf32>
    %cst_138 = arith.constant -0.00168282702 : f32
    %340 = vector.broadcast %cst_138 : f32 to vector<64x16xf32>
    %341 = arith.addf %339, %340 : vector<64x16xf32>
    %342 = arith.mulf %341, %315 : vector<64x16xf32>
    %cst_139 = arith.constant -0.00737332925 : f32
    %343 = vector.broadcast %cst_139 : f32 to vector<64x16xf32>
    %344 = arith.addf %342, %343 : vector<64x16xf32>
    %345 = arith.mulf %344, %315 : vector<64x16xf32>
    %cst_140 = arith.constant -0.0142647391 : f32
    %346 = vector.broadcast %cst_140 : f32 to vector<64x16xf32>
    %347 = arith.addf %345, %346 : vector<64x16xf32>
    %348 = arith.mulf %314, %334 : vector<64x16xf32>
    %349 = arith.divf %348, %347 : vector<64x16xf32>
    %cst_141 = arith.constant 5.000000e-01 : f32
    %350 = vector.broadcast %cst_141 : f32 to vector<64x16xf32>
    %351 = arith.mulf %350, %308 : vector<64x16xf32>
    %cst_142 = arith.constant 1.000000e+00 : f32
    %352 = vector.broadcast %cst_142 : f32 to vector<64x16xf32>
    %353 = arith.addf %352, %349 : vector<64x16xf32>
    %354 = arith.mulf %351, %353 : vector<64x16xf32>
    %c24 = arith.constant 24 : index
    %c0_143 = arith.constant 0 : index
    %355 = vector.load %arg11[%c24, %c0_143] : memref<112x16xf32, #tpu.memory_space<vmem>>, vector<64x16xf32>
    tpu.vector_store %arg11[%c24, %c0_143], %354 {strides = array<i32>} : memref<112x16xf32, #tpu.memory_space<vmem>>, vector<64x16xf32>,
    %cst_144 = arith.constant 0.000000e+00 : f32
    %356 = vector.broadcast %cst_144 : f32 to vector<64x16xf32>
    %c-1_i32_145 = arith.constant -1 : i32
    %357 = arith.muli %c-1_i32_145, %1 : i32
    %c-1_i32_146 = arith.constant -1 : i32
    %358 = arith.addi %357, %c-1_i32_146 : i32
    %c24_i32_147 = arith.constant 24 : i32
    %359 = arith.addi %c24_i32_147, %358 : i32
    %360 = arith.index_cast %359 : i32 to index
    %c0_148 = arith.constant 0 : index
    %361 = vector.load %arg11[%360, %c0_148] : memref<112x16xf32, #tpu.memory_space<vmem>>, vector<64x16xf32>
    %c-1_i32_149 = arith.constant -1 : i32
    %362 = vector.broadcast %c-1_i32_149 : i32 to vector<64x1xi32>
    %363 = arith.addi %15, %362 : vector<64x1xi32>
    %c0_i32_150 = arith.constant 0 : i32
    %364 = vector.broadcast %c0_i32_150 : i32 to vector<64x1xi32>
    %365 = arith.cmpi sge, %363, %364 : vector<64x1xi32>
    %c-1_i32_151 = arith.constant -1 : i32
    %366 = vector.broadcast %c-1_i32_151 : i32 to vector<64x1xi32>
    %367 = arith.addi %15, %366 : vector<64x1xi32>
    %368 = vector.broadcast %3 : i32 to vector<64x1xi32>
    %369 = arith.cmpi slt, %367, %368 : vector<64x1xi32>
    %370 = arith.andi %365, %369 : vector<64x1xi1>
    %c-1_i32_152 = arith.constant -1 : i32
    %371 = vector.broadcast %c-1_i32_152 : i32 to vector<64x1xi32>
    %372 = arith.addi %16, %371 : vector<64x1xi32>
    %c0_i32_153 = arith.constant 0 : i32
    %373 = vector.broadcast %c0_i32_153 : i32 to vector<64x1xi32>
    %374 = arith.cmpi sge, %372, %373 : vector<64x1xi32>
    %375 = arith.andi %370, %374 : vector<64x1xi1>
    %c-1_i32_154 = arith.constant -1 : i32
    %376 = vector.broadcast %c-1_i32_154 : i32 to vector<64x1xi32>
    %377 = arith.addi %16, %376 : vector<64x1xi32>
    %378 = vector.broadcast %1 : i32 to vector<64x1xi32>
    %379 = arith.cmpi slt, %377, %378 : vector<64x1xi32>
    %380 = arith.andi %375, %379 : vector<64x1xi1>
    %cst_155 = arith.constant 0.000000e+00 : f32
    %381 = vector.shape_cast %380 : vector<64x1xi1> to vector<64x1xi1>
    %382 = vector.broadcast %381 : vector<64x1xi1> to vector<64x16xi1>
    %383 = vector.broadcast %cst_155 : f32 to vector<64x16xf32>
    %384 = arith.select %382, %361, %383 : vector<64x16xi1>, vector<64x16xf32>
    %c0_156 = arith.constant 0 : index
    %c0_157 = arith.constant 0 : index
    %c0_158 = arith.constant 0 : index
    %385 = vector.load %arg6[%c0_156, %c0_157, %c0_158] : memref<9x16x16xf32, #tpu.memory_space<vmem>>, vector<1x16x16xf32>
    %386 = vector.shape_cast %385 : vector<1x16x16xf32> to vector<16x16xf32>
    %cst_159 = arith.constant dense<0.000000e+00> : vector<64x16xf32>
    %387 = tpu.matmul %384, %386, %cst_159 {dimension_numbers = #tpu.dot_dimension_numbers<[1], [0], [0], [1], [0, 0, 1, 1], [], []>} : vector<64x16xf32>, vector<16x16xf32>, vector<64x16xf32> -> vector<64x16xf32>
    %388 = arith.addf %356, %387 : vector<64x16xf32>
    %c-1_i32_160 = arith.constant -1 : i32
    %389 = arith.muli %c-1_i32_160, %1 : i32
    %c0_i32_161 = arith.constant 0 : i32
    %390 = arith.addi %389, %c0_i32_161 : i32
    %c24_i32_162 = arith.constant 24 : i32
    %391 = arith.addi %c24_i32_162, %390 : i32
    %392 = arith.index_cast %391 : i32 to index
    %c0_163 = arith.constant 0 : index
    %393 = vector.load %arg11[%392, %c0_163] : memref<112x16xf32, #tpu.memory_space<vmem>>, vector<64x16xf32>
    %c-1_i32_164 = arith.constant -1 : i32
    %394 = vector.broadcast %c-1_i32_164 : i32 to vector<64x1xi32>
    %395 = arith.addi %15, %394 : vector<64x1xi32>
    %c0_i32_165 = arith.constant 0 : i32
    %396 = vector.broadcast %c0_i32_165 : i32 to vector<64x1xi32>
    %397 = arith.cmpi sge, %395, %396 : vector<64x1xi32>
    %c-1_i32_166 = arith.constant -1 : i32
    %398 = vector.broadcast %c-1_i32_166 : i32 to vector<64x1xi32>
    %399 = arith.addi %15, %398 : vector<64x1xi32>
    %400 = vector.broadcast %3 : i32 to vector<64x1xi32>
    %401 = arith.cmpi slt, %399, %400 : vector<64x1xi32>
    %402 = arith.andi %397, %401 : vector<64x1xi1>
    %c0_i32_167 = arith.constant 0 : i32
    %403 = vector.broadcast %c0_i32_167 : i32 to vector<64x1xi32>
    %404 = arith.addi %16, %403 : vector<64x1xi32>
    %c0_i32_168 = arith.constant 0 : i32
    %405 = vector.broadcast %c0_i32_168 : i32 to vector<64x1xi32>
    %406 = arith.cmpi sge, %404, %405 : vector<64x1xi32>
    %407 = arith.andi %402, %406 : vector<64x1xi1>
    %c0_i32_169 = arith.constant 0 : i32
    %408 = vector.broadcast %c0_i32_169 : i32 to vector<64x1xi32>
    %409 = arith.addi %16, %408 : vector<64x1xi32>
    %410 = vector.broadcast %1 : i32 to vector<64x1xi32>
    %411 = arith.cmpi slt, %409, %410 : vector<64x1xi32>
    %412 = arith.andi %407, %411 : vector<64x1xi1>
    %cst_170 = arith.constant 0.000000e+00 : f32
    %413 = vector.shape_cast %412 : vector<64x1xi1> to vector<64x1xi1>
    %414 = vector.broadcast %413 : vector<64x1xi1> to vector<64x16xi1>
    %415 = vector.broadcast %cst_170 : f32 to vector<64x16xf32>
    %416 = arith.select %414, %393, %415 : vector<64x16xi1>, vector<64x16xf32>
    %c1_171 = arith.constant 1 : index
    %c0_172 = arith.constant 0 : index
    %c0_173 = arith.constant 0 : index
    %417 = vector.load %arg6[%c1_171, %c0_172, %c0_173] : memref<9x16x16xf32, #tpu.memory_space<vmem>>, vector<1x16x16xf32>
    %418 = vector.shape_cast %417 : vector<1x16x16xf32> to vector<16x16xf32>
    %cst_174 = arith.constant dense<0.000000e+00> : vector<64x16xf32>
    %419 = tpu.matmul %416, %418, %cst_174 {dimension_numbers = #tpu.dot_dimension_numbers<[1], [0], [0], [1], [0, 0, 1, 1], [], []>} : vector<64x16xf32>, vector<16x16xf32>, vector<64x16xf32> -> vector<64x16xf32>
    %420 = arith.addf %388, %419 : vector<64x16xf32>
    %c-1_i32_175 = arith.constant -1 : i32
    %421 = arith.muli %c-1_i32_175, %1 : i32
    %c1_i32_176 = arith.constant 1 : i32
    %422 = arith.addi %421, %c1_i32_176 : i32
    %c24_i32_177 = arith.constant 24 : i32
    %423 = arith.addi %c24_i32_177, %422 : i32
    %424 = arith.index_cast %423 : i32 to index
    %c0_178 = arith.constant 0 : index
    %425 = vector.load %arg11[%424, %c0_178] : memref<112x16xf32, #tpu.memory_space<vmem>>, vector<64x16xf32>
    %c-1_i32_179 = arith.constant -1 : i32
    %426 = vector.broadcast %c-1_i32_179 : i32 to vector<64x1xi32>
    %427 = arith.addi %15, %426 : vector<64x1xi32>
    %c0_i32_180 = arith.constant 0 : i32
    %428 = vector.broadcast %c0_i32_180 : i32 to vector<64x1xi32>
    %429 = arith.cmpi sge, %427, %428 : vector<64x1xi32>
    %c-1_i32_181 = arith.constant -1 : i32
    %430 = vector.broadcast %c-1_i32_181 : i32 to vector<64x1xi32>
    %431 = arith.addi %15, %430 : vector<64x1xi32>
    %432 = vector.broadcast %3 : i32 to vector<64x1xi32>
    %433 = arith.cmpi slt, %431, %432 : vector<64x1xi32>
    %434 = arith.andi %429, %433 : vector<64x1xi1>
    %c1_i32_182 = arith.constant 1 : i32
    %435 = vector.broadcast %c1_i32_182 : i32 to vector<64x1xi32>
    %436 = arith.addi %16, %435 : vector<64x1xi32>
    %c0_i32_183 = arith.constant 0 : i32
    %437 = vector.broadcast %c0_i32_183 : i32 to vector<64x1xi32>
    %438 = arith.cmpi sge, %436, %437 : vector<64x1xi32>
    %439 = arith.andi %434, %438 : vector<64x1xi1>
    %c1_i32_184 = arith.constant 1 : i32
    %440 = vector.broadcast %c1_i32_184 : i32 to vector<64x1xi32>
    %441 = arith.addi %16, %440 : vector<64x1xi32>
    %442 = vector.broadcast %1 : i32 to vector<64x1xi32>
    %443 = arith.cmpi slt, %441, %442 : vector<64x1xi32>
    %444 = arith.andi %439, %443 : vector<64x1xi1>
    %cst_185 = arith.constant 0.000000e+00 : f32
    %445 = vector.shape_cast %444 : vector<64x1xi1> to vector<64x1xi1>
    %446 = vector.broadcast %445 : vector<64x1xi1> to vector<64x16xi1>
    %447 = vector.broadcast %cst_185 : f32 to vector<64x16xf32>
    %448 = arith.select %446, %425, %447 : vector<64x16xi1>, vector<64x16xf32>
    %c2_186 = arith.constant 2 : index
    %c0_187 = arith.constant 0 : index
    %c0_188 = arith.constant 0 : index
    %449 = vector.load %arg6[%c2_186, %c0_187, %c0_188] : memref<9x16x16xf32, #tpu.memory_space<vmem>>, vector<1x16x16xf32>
    %450 = vector.shape_cast %449 : vector<1x16x16xf32> to vector<16x16xf32>
    %cst_189 = arith.constant dense<0.000000e+00> : vector<64x16xf32>
    %451 = tpu.matmul %448, %450, %cst_189 {dimension_numbers = #tpu.dot_dimension_numbers<[1], [0], [0], [1], [0, 0, 1, 1], [], []>} : vector<64x16xf32>, vector<16x16xf32>, vector<64x16xf32> -> vector<64x16xf32>
    %452 = arith.addf %420, %451 : vector<64x16xf32>
    %c0_i32_190 = arith.constant 0 : i32
    %453 = arith.muli %c0_i32_190, %1 : i32
    %c-1_i32_191 = arith.constant -1 : i32
    %454 = arith.addi %453, %c-1_i32_191 : i32
    %c24_i32_192 = arith.constant 24 : i32
    %455 = arith.addi %c24_i32_192, %454 : i32
    %456 = arith.index_cast %455 : i32 to index
    %c0_193 = arith.constant 0 : index
    %457 = vector.load %arg11[%456, %c0_193] : memref<112x16xf32, #tpu.memory_space<vmem>>, vector<64x16xf32>
    %c0_i32_194 = arith.constant 0 : i32
    %458 = vector.broadcast %c0_i32_194 : i32 to vector<64x1xi32>
    %459 = arith.addi %15, %458 : vector<64x1xi32>
    %c0_i32_195 = arith.constant 0 : i32
    %460 = vector.broadcast %c0_i32_195 : i32 to vector<64x1xi32>
    %461 = arith.cmpi sge, %459, %460 : vector<64x1xi32>
    %c0_i32_196 = arith.constant 0 : i32
    %462 = vector.broadcast %c0_i32_196 : i32 to vector<64x1xi32>
    %463 = arith.addi %15, %462 : vector<64x1xi32>
    %464 = vector.broadcast %3 : i32 to vector<64x1xi32>
    %465 = arith.cmpi slt, %463, %464 : vector<64x1xi32>
    %466 = arith.andi %461, %465 : vector<64x1xi1>
    %c-1_i32_197 = arith.constant -1 : i32
    %467 = vector.broadcast %c-1_i32_197 : i32 to vector<64x1xi32>
    %468 = arith.addi %16, %467 : vector<64x1xi32>
    %c0_i32_198 = arith.constant 0 : i32
    %469 = vector.broadcast %c0_i32_198 : i32 to vector<64x1xi32>
    %470 = arith.cmpi sge, %468, %469 : vector<64x1xi32>
    %471 = arith.andi %466, %470 : vector<64x1xi1>
    %c-1_i32_199 = arith.constant -1 : i32
    %472 = vector.broadcast %c-1_i32_199 : i32 to vector<64x1xi32>
    %473 = arith.addi %16, %472 : vector<64x1xi32>
    %474 = vector.broadcast %1 : i32 to vector<64x1xi32>
    %475 = arith.cmpi slt, %473, %474 : vector<64x1xi32>
    %476 = arith.andi %471, %475 : vector<64x1xi1>
    %cst_200 = arith.constant 0.000000e+00 : f32
    %477 = vector.shape_cast %476 : vector<64x1xi1> to vector<64x1xi1>
    %478 = vector.broadcast %477 : vector<64x1xi1> to vector<64x16xi1>
    %479 = vector.broadcast %cst_200 : f32 to vector<64x16xf32>
    %480 = arith.select %478, %457, %479 : vector<64x16xi1>, vector<64x16xf32>
    %c3_201 = arith.constant 3 : index
    %c0_202 = arith.constant 0 : index
    %c0_203 = arith.constant 0 : index
    %481 = vector.load %arg6[%c3_201, %c0_202, %c0_203] : memref<9x16x16xf32, #tpu.memory_space<vmem>>, vector<1x16x16xf32>
    %482 = vector.shape_cast %481 : vector<1x16x16xf32> to vector<16x16xf32>
    %cst_204 = arith.constant dense<0.000000e+00> : vector<64x16xf32>
    %483 = tpu.matmul %480, %482, %cst_204 {dimension_numbers = #tpu.dot_dimension_numbers<[1], [0], [0], [1], [0, 0, 1, 1], [], []>} : vector<64x16xf32>, vector<16x16xf32>, vector<64x16xf32> -> vector<64x16xf32>
    %484 = arith.addf %452, %483 : vector<64x16xf32>
    %c0_i32_205 = arith.constant 0 : i32
    %485 = arith.muli %c0_i32_205, %1 : i32
    %c0_i32_206 = arith.constant 0 : i32
    %486 = arith.addi %485, %c0_i32_206 : i32
    %c24_i32_207 = arith.constant 24 : i32
    %487 = arith.addi %c24_i32_207, %486 : i32
    %488 = arith.index_cast %487 : i32 to index
    %c0_208 = arith.constant 0 : index
    %489 = vector.load %arg11[%488, %c0_208] : memref<112x16xf32, #tpu.memory_space<vmem>>, vector<64x16xf32>
    %c0_i32_209 = arith.constant 0 : i32
    %490 = vector.broadcast %c0_i32_209 : i32 to vector<64x1xi32>
    %491 = arith.addi %15, %490 : vector<64x1xi32>
    %c0_i32_210 = arith.constant 0 : i32
    %492 = vector.broadcast %c0_i32_210 : i32 to vector<64x1xi32>
    %493 = arith.cmpi sge, %491, %492 : vector<64x1xi32>
    %c0_i32_211 = arith.constant 0 : i32
    %494 = vector.broadcast %c0_i32_211 : i32 to vector<64x1xi32>
    %495 = arith.addi %15, %494 : vector<64x1xi32>
    %496 = vector.broadcast %3 : i32 to vector<64x1xi32>
    %497 = arith.cmpi slt, %495, %496 : vector<64x1xi32>
    %498 = arith.andi %493, %497 : vector<64x1xi1>
    %c0_i32_212 = arith.constant 0 : i32
    %499 = vector.broadcast %c0_i32_212 : i32 to vector<64x1xi32>
    %500 = arith.addi %16, %499 : vector<64x1xi32>
    %c0_i32_213 = arith.constant 0 : i32
    %501 = vector.broadcast %c0_i32_213 : i32 to vector<64x1xi32>
    %502 = arith.cmpi sge, %500, %501 : vector<64x1xi32>
    %503 = arith.andi %498, %502 : vector<64x1xi1>
    %c0_i32_214 = arith.constant 0 : i32
    %504 = vector.broadcast %c0_i32_214 : i32 to vector<64x1xi32>
    %505 = arith.addi %16, %504 : vector<64x1xi32>
    %506 = vector.broadcast %1 : i32 to vector<64x1xi32>
    %507 = arith.cmpi slt, %505, %506 : vector<64x1xi32>
    %508 = arith.andi %503, %507 : vector<64x1xi1>
    %cst_215 = arith.constant 0.000000e+00 : f32
    %509 = vector.shape_cast %508 : vector<64x1xi1> to vector<64x1xi1>
    %510 = vector.broadcast %509 : vector<64x1xi1> to vector<64x16xi1>
    %511 = vector.broadcast %cst_215 : f32 to vector<64x16xf32>
    %512 = arith.select %510, %489, %511 : vector<64x16xi1>, vector<64x16xf32>
    %c4_216 = arith.constant 4 : index
    %c0_217 = arith.constant 0 : index
    %c0_218 = arith.constant 0 : index
    %513 = vector.load %arg6[%c4_216, %c0_217, %c0_218] : memref<9x16x16xf32, #tpu.memory_space<vmem>>, vector<1x16x16xf32>
    %514 = vector.shape_cast %513 : vector<1x16x16xf32> to vector<16x16xf32>
    %cst_219 = arith.constant dense<0.000000e+00> : vector<64x16xf32>
    %515 = tpu.matmul %512, %514, %cst_219 {dimension_numbers = #tpu.dot_dimension_numbers<[1], [0], [0], [1], [0, 0, 1, 1], [], []>} : vector<64x16xf32>, vector<16x16xf32>, vector<64x16xf32> -> vector<64x16xf32>
    %516 = arith.addf %484, %515 : vector<64x16xf32>
    %c0_i32_220 = arith.constant 0 : i32
    %517 = arith.muli %c0_i32_220, %1 : i32
    %c1_i32_221 = arith.constant 1 : i32
    %518 = arith.addi %517, %c1_i32_221 : i32
    %c24_i32_222 = arith.constant 24 : i32
    %519 = arith.addi %c24_i32_222, %518 : i32
    %520 = arith.index_cast %519 : i32 to index
    %c0_223 = arith.constant 0 : index
    %521 = vector.load %arg11[%520, %c0_223] : memref<112x16xf32, #tpu.memory_space<vmem>>, vector<64x16xf32>
    %c0_i32_224 = arith.constant 0 : i32
    %522 = vector.broadcast %c0_i32_224 : i32 to vector<64x1xi32>
    %523 = arith.addi %15, %522 : vector<64x1xi32>
    %c0_i32_225 = arith.constant 0 : i32
    %524 = vector.broadcast %c0_i32_225 : i32 to vector<64x1xi32>
    %525 = arith.cmpi sge, %523, %524 : vector<64x1xi32>
    %c0_i32_226 = arith.constant 0 : i32
    %526 = vector.broadcast %c0_i32_226 : i32 to vector<64x1xi32>
    %527 = arith.addi %15, %526 : vector<64x1xi32>
    %528 = vector.broadcast %3 : i32 to vector<64x1xi32>
    %529 = arith.cmpi slt, %527, %528 : vector<64x1xi32>
    %530 = arith.andi %525, %529 : vector<64x1xi1>
    %c1_i32_227 = arith.constant 1 : i32
    %531 = vector.broadcast %c1_i32_227 : i32 to vector<64x1xi32>
    %532 = arith.addi %16, %531 : vector<64x1xi32>
    %c0_i32_228 = arith.constant 0 : i32
    %533 = vector.broadcast %c0_i32_228 : i32 to vector<64x1xi32>
    %534 = arith.cmpi sge, %532, %533 : vector<64x1xi32>
    %535 = arith.andi %530, %534 : vector<64x1xi1>
    %c1_i32_229 = arith.constant 1 : i32
    %536 = vector.broadcast %c1_i32_229 : i32 to vector<64x1xi32>
    %537 = arith.addi %16, %536 : vector<64x1xi32>
    %538 = vector.broadcast %1 : i32 to vector<64x1xi32>
    %539 = arith.cmpi slt, %537, %538 : vector<64x1xi32>
    %540 = arith.andi %535, %539 : vector<64x1xi1>
    %cst_230 = arith.constant 0.000000e+00 : f32
    %541 = vector.shape_cast %540 : vector<64x1xi1> to vector<64x1xi1>
    %542 = vector.broadcast %541 : vector<64x1xi1> to vector<64x16xi1>
    %543 = vector.broadcast %cst_230 : f32 to vector<64x16xf32>
    %544 = arith.select %542, %521, %543 : vector<64x16xi1>, vector<64x16xf32>
    %c5_231 = arith.constant 5 : index
    %c0_232 = arith.constant 0 : index
    %c0_233 = arith.constant 0 : index
    %545 = vector.load %arg6[%c5_231, %c0_232, %c0_233] : memref<9x16x16xf32, #tpu.memory_space<vmem>>, vector<1x16x16xf32>
    %546 = vector.shape_cast %545 : vector<1x16x16xf32> to vector<16x16xf32>
    %cst_234 = arith.constant dense<0.000000e+00> : vector<64x16xf32>
    %547 = tpu.matmul %544, %546, %cst_234 {dimension_numbers = #tpu.dot_dimension_numbers<[1], [0], [0], [1], [0, 0, 1, 1], [], []>} : vector<64x16xf32>, vector<16x16xf32>, vector<64x16xf32> -> vector<64x16xf32>
    %548 = arith.addf %516, %547 : vector<64x16xf32>
    %c1_i32_235 = arith.constant 1 : i32
    %549 = arith.muli %c1_i32_235, %1 : i32
    %c-1_i32_236 = arith.constant -1 : i32
    %550 = arith.addi %549, %c-1_i32_236 : i32
    %c24_i32_237 = arith.constant 24 : i32
    %551 = arith.addi %c24_i32_237, %550 : i32
    %552 = arith.index_cast %551 : i32 to index
    %c0_238 = arith.constant 0 : index
    %553 = vector.load %arg11[%552, %c0_238] : memref<112x16xf32, #tpu.memory_space<vmem>>, vector<64x16xf32>
    %c1_i32_239 = arith.constant 1 : i32
    %554 = vector.broadcast %c1_i32_239 : i32 to vector<64x1xi32>
    %555 = arith.addi %15, %554 : vector<64x1xi32>
    %c0_i32_240 = arith.constant 0 : i32
    %556 = vector.broadcast %c0_i32_240 : i32 to vector<64x1xi32>
    %557 = arith.cmpi sge, %555, %556 : vector<64x1xi32>
    %c1_i32_241 = arith.constant 1 : i32
    %558 = vector.broadcast %c1_i32_241 : i32 to vector<64x1xi32>
    %559 = arith.addi %15, %558 : vector<64x1xi32>
    %560 = vector.broadcast %3 : i32 to vector<64x1xi32>
    %561 = arith.cmpi slt, %559, %560 : vector<64x1xi32>
    %562 = arith.andi %557, %561 : vector<64x1xi1>
    %c-1_i32_242 = arith.constant -1 : i32
    %563 = vector.broadcast %c-1_i32_242 : i32 to vector<64x1xi32>
    %564 = arith.addi %16, %563 : vector<64x1xi32>
    %c0_i32_243 = arith.constant 0 : i32
    %565 = vector.broadcast %c0_i32_243 : i32 to vector<64x1xi32>
    %566 = arith.cmpi sge, %564, %565 : vector<64x1xi32>
    %567 = arith.andi %562, %566 : vector<64x1xi1>
    %c-1_i32_244 = arith.constant -1 : i32
    %568 = vector.broadcast %c-1_i32_244 : i32 to vector<64x1xi32>
    %569 = arith.addi %16, %568 : vector<64x1xi32>
    %570 = vector.broadcast %1 : i32 to vector<64x1xi32>
    %571 = arith.cmpi slt, %569, %570 : vector<64x1xi32>
    %572 = arith.andi %567, %571 : vector<64x1xi1>
    %cst_245 = arith.constant 0.000000e+00 : f32
    %573 = vector.shape_cast %572 : vector<64x1xi1> to vector<64x1xi1>
    %574 = vector.broadcast %573 : vector<64x1xi1> to vector<64x16xi1>
    %575 = vector.broadcast %cst_245 : f32 to vector<64x16xf32>
    %576 = arith.select %574, %553, %575 : vector<64x16xi1>, vector<64x16xf32>
    %c6_246 = arith.constant 6 : index
    %c0_247 = arith.constant 0 : index
    %c0_248 = arith.constant 0 : index
    %577 = vector.load %arg6[%c6_246, %c0_247, %c0_248] : memref<9x16x16xf32, #tpu.memory_space<vmem>>, vector<1x16x16xf32>
    %578 = vector.shape_cast %577 : vector<1x16x16xf32> to vector<16x16xf32>
    %cst_249 = arith.constant dense<0.000000e+00> : vector<64x16xf32>
    %579 = tpu.matmul %576, %578, %cst_249 {dimension_numbers = #tpu.dot_dimension_numbers<[1], [0], [0], [1], [0, 0, 1, 1], [], []>} : vector<64x16xf32>, vector<16x16xf32>, vector<64x16xf32> -> vector<64x16xf32>
    %580 = arith.addf %548, %579 : vector<64x16xf32>
    %c1_i32_250 = arith.constant 1 : i32
    %581 = arith.muli %c1_i32_250, %1 : i32
    %c0_i32_251 = arith.constant 0 : i32
    %582 = arith.addi %581, %c0_i32_251 : i32
    %c24_i32_252 = arith.constant 24 : i32
    %583 = arith.addi %c24_i32_252, %582 : i32
    %584 = arith.index_cast %583 : i32 to index
    %c0_253 = arith.constant 0 : index
    %585 = vector.load %arg11[%584, %c0_253] : memref<112x16xf32, #tpu.memory_space<vmem>>, vector<64x16xf32>
    %c1_i32_254 = arith.constant 1 : i32
    %586 = vector.broadcast %c1_i32_254 : i32 to vector<64x1xi32>
    %587 = arith.addi %15, %586 : vector<64x1xi32>
    %c0_i32_255 = arith.constant 0 : i32
    %588 = vector.broadcast %c0_i32_255 : i32 to vector<64x1xi32>
    %589 = arith.cmpi sge, %587, %588 : vector<64x1xi32>
    %c1_i32_256 = arith.constant 1 : i32
    %590 = vector.broadcast %c1_i32_256 : i32 to vector<64x1xi32>
    %591 = arith.addi %15, %590 : vector<64x1xi32>
    %592 = vector.broadcast %3 : i32 to vector<64x1xi32>
    %593 = arith.cmpi slt, %591, %592 : vector<64x1xi32>
    %594 = arith.andi %589, %593 : vector<64x1xi1>
    %c0_i32_257 = arith.constant 0 : i32
    %595 = vector.broadcast %c0_i32_257 : i32 to vector<64x1xi32>
    %596 = arith.addi %16, %595 : vector<64x1xi32>
    %c0_i32_258 = arith.constant 0 : i32
    %597 = vector.broadcast %c0_i32_258 : i32 to vector<64x1xi32>
    %598 = arith.cmpi sge, %596, %597 : vector<64x1xi32>
    %599 = arith.andi %594, %598 : vector<64x1xi1>
    %c0_i32_259 = arith.constant 0 : i32
    %600 = vector.broadcast %c0_i32_259 : i32 to vector<64x1xi32>
    %601 = arith.addi %16, %600 : vector<64x1xi32>
    %602 = vector.broadcast %1 : i32 to vector<64x1xi32>
    %603 = arith.cmpi slt, %601, %602 : vector<64x1xi32>
    %604 = arith.andi %599, %603 : vector<64x1xi1>
    %cst_260 = arith.constant 0.000000e+00 : f32
    %605 = vector.shape_cast %604 : vector<64x1xi1> to vector<64x1xi1>
    %606 = vector.broadcast %605 : vector<64x1xi1> to vector<64x16xi1>
    %607 = vector.broadcast %cst_260 : f32 to vector<64x16xf32>
    %608 = arith.select %606, %585, %607 : vector<64x16xi1>, vector<64x16xf32>
    %c7_261 = arith.constant 7 : index
    %c0_262 = arith.constant 0 : index
    %c0_263 = arith.constant 0 : index
    %609 = vector.load %arg6[%c7_261, %c0_262, %c0_263] : memref<9x16x16xf32, #tpu.memory_space<vmem>>, vector<1x16x16xf32>
    %610 = vector.shape_cast %609 : vector<1x16x16xf32> to vector<16x16xf32>
    %cst_264 = arith.constant dense<0.000000e+00> : vector<64x16xf32>
    %611 = tpu.matmul %608, %610, %cst_264 {dimension_numbers = #tpu.dot_dimension_numbers<[1], [0], [0], [1], [0, 0, 1, 1], [], []>} : vector<64x16xf32>, vector<16x16xf32>, vector<64x16xf32> -> vector<64x16xf32>
    %612 = arith.addf %580, %611 : vector<64x16xf32>
    %c1_i32_265 = arith.constant 1 : i32
    %613 = arith.muli %c1_i32_265, %1 : i32
    %c1_i32_266 = arith.constant 1 : i32
    %614 = arith.addi %613, %c1_i32_266 : i32
    %c24_i32_267 = arith.constant 24 : i32
    %615 = arith.addi %c24_i32_267, %614 : i32
    %616 = arith.index_cast %615 : i32 to index
    %c0_268 = arith.constant 0 : index
    %617 = vector.load %arg11[%616, %c0_268] : memref<112x16xf32, #tpu.memory_space<vmem>>, vector<64x16xf32>
    %c1_i32_269 = arith.constant 1 : i32
    %618 = vector.broadcast %c1_i32_269 : i32 to vector<64x1xi32>
    %619 = arith.addi %15, %618 : vector<64x1xi32>
    %c0_i32_270 = arith.constant 0 : i32
    %620 = vector.broadcast %c0_i32_270 : i32 to vector<64x1xi32>
    %621 = arith.cmpi sge, %619, %620 : vector<64x1xi32>
    %c1_i32_271 = arith.constant 1 : i32
    %622 = vector.broadcast %c1_i32_271 : i32 to vector<64x1xi32>
    %623 = arith.addi %15, %622 : vector<64x1xi32>
    %624 = vector.broadcast %3 : i32 to vector<64x1xi32>
    %625 = arith.cmpi slt, %623, %624 : vector<64x1xi32>
    %626 = arith.andi %621, %625 : vector<64x1xi1>
    %c1_i32_272 = arith.constant 1 : i32
    %627 = vector.broadcast %c1_i32_272 : i32 to vector<64x1xi32>
    %628 = arith.addi %16, %627 : vector<64x1xi32>
    %c0_i32_273 = arith.constant 0 : i32
    %629 = vector.broadcast %c0_i32_273 : i32 to vector<64x1xi32>
    %630 = arith.cmpi sge, %628, %629 : vector<64x1xi32>
    %631 = arith.andi %626, %630 : vector<64x1xi1>
    %c1_i32_274 = arith.constant 1 : i32
    %632 = vector.broadcast %c1_i32_274 : i32 to vector<64x1xi32>
    %633 = arith.addi %16, %632 : vector<64x1xi32>
    %634 = vector.broadcast %1 : i32 to vector<64x1xi32>
    %635 = arith.cmpi slt, %633, %634 : vector<64x1xi32>
    %636 = arith.andi %631, %635 : vector<64x1xi1>
    %cst_275 = arith.constant 0.000000e+00 : f32
    %637 = vector.shape_cast %636 : vector<64x1xi1> to vector<64x1xi1>
    %638 = vector.broadcast %637 : vector<64x1xi1> to vector<64x16xi1>
    %639 = vector.broadcast %cst_275 : f32 to vector<64x16xf32>
    %640 = arith.select %638, %617, %639 : vector<64x16xi1>, vector<64x16xf32>
    %c8_276 = arith.constant 8 : index
    %c0_277 = arith.constant 0 : index
    %c0_278 = arith.constant 0 : index
    %641 = vector.load %arg6[%c8_276, %c0_277, %c0_278] : memref<9x16x16xf32, #tpu.memory_space<vmem>>, vector<1x16x16xf32>
    %642 = vector.shape_cast %641 : vector<1x16x16xf32> to vector<16x16xf32>
    %cst_279 = arith.constant dense<0.000000e+00> : vector<64x16xf32>
    %643 = tpu.matmul %640, %642, %cst_279 {dimension_numbers = #tpu.dot_dimension_numbers<[1], [0], [0], [1], [0, 0, 1, 1], [], []>} : vector<64x16xf32>, vector<16x16xf32>, vector<64x16xf32> -> vector<64x16xf32>
    %644 = arith.addf %612, %643 : vector<64x16xf32>
    %c0_280 = arith.constant 0 : index
    %c0_281 = arith.constant 0 : index
    %645 = vector.load %arg7[%c0_280, %c0_281] : memref<1x16xf32, #tpu.memory_space<vmem>>, vector<1x16xf32>
    %646 = vector.broadcast %645 : vector<1x16xf32> to vector<64x16xf32>
    %647 = arith.addf %644, %646 : vector<64x16xf32>
    %648 = vector.extract_strided_slice %647 {offsets = [0, 0], sizes = [16, 16], strides = [1, 1]} : vector<64x16xf32> to vector<16x16xf32>
    %649 = vector.extract_strided_slice %647 {offsets = [32, 0], sizes = [16, 16], strides = [1, 1]} : vector<64x16xf32> to vector<16x16xf32>
    %650 = tpu.concatenate %648, %649 in 0 : vector<16x16xf32>, vector<16x16xf32> -> vector<32x16xf32>
    %651 = vector.shape_cast %650 : vector<32x16xf32> to vector<2x16x16xf32>
    %652 = tpu.iota {dimensions = array<i32: 1>} : vector<2x2xi32>
    %653 = vector.broadcast %arg0 : i32 to vector<2x2xi32>
    %654 = arith.cmpi eq, %652, %653 : vector<2x2xi32>
    %c0_282 = arith.constant 0 : index
    %c0_283 = arith.constant 0 : index
    %655 = vector.load %arg8[%c0_282, %c0_283] : memref<2x2xf32, #tpu.memory_space<vmem>>, vector<2x2xf32>
    %cst_284 = arith.constant 0.000000e+00 : f32
    %656 = vector.broadcast %cst_284 : f32 to vector<2x2xf32>
    %657 = arith.select %654, %655, %656 : vector<2x2xi1>, vector<2x2xf32>
    %cst_285 = arith.constant dense<0.000000e+00> : vector<2xf32>
    %658 = vector.multi_reduction <add>, %657, %cst_285 [1] : vector<2x2xf32> to vector<2xf32>
    %659 = vector.shape_cast %658 : vector<2xf32> to vector<2x1xf32>
    %660 = vector.shape_cast %659 : vector<2x1xf32> to vector<2x1x1xf32>
    %661 = vector.broadcast %660 : vector<2x1x1xf32> to vector<2x16x16xf32>
    %662 = arith.mulf %651, %661 : vector<2x16x16xf32>
    %c0_i32_286 = arith.constant 0 : i32
    %663 = arith.cmpi eq, %arg0, %c0_i32_286 : i32
    %664 = arith.extui %663 : i1 to i32
    %c0_i32_287 = arith.constant 0 : i32
    %665 = arith.cmpi ne, %664, %c0_i32_287 : i32
    scf.if %665 {
      %c0_292 = arith.constant 0 : index
      %c0_293 = arith.constant 0 : index
      %c0_294 = arith.constant 0 : index
      %672 = vector.load %arg3[%c0_292, %c0_293, %c0_294] : memref<2x16x16xf32, #tpu.memory_space<vmem>>, vector<2x16x16xf32>
      %673 = arith.addf %672, %662 : vector<2x16x16xf32>
      %c0_295 = arith.constant 0 : index
      %c0_296 = arith.constant 0 : index
      %c0_297 = arith.constant 0 : index
      %674 = vector.load %arg12[%c0_295, %c0_296, %c0_297] : memref<2x16x16xf32, #tpu.memory_space<vmem>>, vector<2x16x16xf32>
      tpu.vector_store %arg12[%c0_295, %c0_296, %c0_297], %673 {strides = array<i32>} : memref<2x16x16xf32, #tpu.memory_space<vmem>>, vector<2x16x16xf32>,
    } else {
    }
    %c0_i32_288 = arith.constant 0 : i32
    %666 = arith.cmpi sgt, %arg0, %c0_i32_288 : i32
    %667 = arith.extui %666 : i1 to i32
    %c0_i32_289 = arith.constant 0 : i32
    %668 = arith.cmpi ne, %667, %c0_i32_289 : i32
    scf.if %668 {
      %c0_292 = arith.constant 0 : index
      %c0_293 = arith.constant 0 : index
      %c0_294 = arith.constant 0 : index
      %672 = vector.load %arg12[%c0_292, %c0_293, %c0_294] : memref<2x16x16xf32, #tpu.memory_space<vmem>>, vector<2x16x16xf32>
      %673 = arith.addf %672, %662 : vector<2x16x16xf32>
      %c0_295 = arith.constant 0 : index
      %c0_296 = arith.constant 0 : index
      %c0_297 = arith.constant 0 : index
      %674 = vector.load %arg12[%c0_295, %c0_296, %c0_297] : memref<2x16x16xf32, #tpu.memory_space<vmem>>, vector<2x16x16xf32>
      tpu.vector_store %arg12[%c0_295, %c0_296, %c0_297], %673 {strides = array<i32>} : memref<2x16x16xf32, #tpu.memory_space<vmem>>, vector<2x16x16xf32>,
    } else {
    }
    %c1_i32_290 = arith.constant 1 : i32
    %669 = arith.cmpi eq, %arg0, %c1_i32_290 : i32
    %670 = arith.extui %669 : i1 to i32
    %c0_i32_291 = arith.constant 0 : i32
    %671 = arith.cmpi ne, %670, %c0_i32_291 : i32
    scf.if %671 {
      %c0_292 = arith.constant 0 : index
      %c0_293 = arith.constant 0 : index
      %c0_294 = arith.constant 0 : index
      %672 = vector.load %arg12[%c0_292, %c0_293, %c0_294] : memref<2x16x16xf32, #tpu.memory_space<vmem>>, vector<2x16x16xf32>
      %673 = vector.shape_cast %672 : vector<2x16x16xf32> to vector<2x256xf32>
      %c0_295 = arith.constant 0 : index
      %c0_296 = arith.constant 0 : index
      %674 = vector.load %arg9[%c0_295, %c0_296] : memref<2x256xf32, #tpu.memory_space<vmem>>, vector<2x256xf32>
      tpu.vector_store %arg9[%c0_295, %c0_296], %673 {strides = array<i32>} : memref<2x256xf32, #tpu.memory_space<vmem>>, vector<2x256xf32>,
    } else {
    }
    return
  }
  func.func @transform_0(%arg0: i32, %arg1: memref<2xi32, #tpu.memory_space<smem>>, %arg2: memref<2xi32, #tpu.memory_space<smem>>) -> (i32, i32, i32) {
    %c0_i32 = arith.constant 0 : i32
    %c0_i32_0 = arith.constant 0 : i32
    %c0_i32_1 = arith.constant 0 : i32
    %c0_i32_2 = arith.constant 0 : i32
    return %c0_i32, %c0_i32_0, %c0_i32_1 : i32, i32, i32
  }
  func.func @transform_1(%arg0: i32, %arg1: memref<2xi32, #tpu.memory_space<smem>>, %arg2: memref<2xi32, #tpu.memory_space<smem>>) -> (i32, i32, i32) {
    %c0_i32 = arith.constant 0 : i32
    %c0_i32_0 = arith.constant 0 : i32
    %c0_i32_1 = arith.constant 0 : i32
    %c0_i32_2 = arith.constant 0 : i32
    return %c0_i32, %c0_i32_0, %c0_i32_1 : i32, i32, i32
  }
  func.func @transform_2(%arg0: i32, %arg1: memref<2xi32, #tpu.memory_space<smem>>, %arg2: memref<2xi32, #tpu.memory_space<smem>>) -> (i32, i32) {
    %c0_i32 = arith.constant 0 : i32
    %c0_i32_0 = arith.constant 0 : i32
    %c0_i32_1 = arith.constant 0 : i32
    return %c0_i32, %c0_i32_0 : i32, i32
  }
  func.func @transform_3(%arg0: i32, %arg1: memref<2xi32, #tpu.memory_space<smem>>, %arg2: memref<2xi32, #tpu.memory_space<smem>>) -> (i32, i32, i32) {
    %c0_i32 = arith.constant 0 : i32
    %c0_i32_0 = arith.constant 0 : i32
    %c0_i32_1 = arith.constant 0 : i32
    %c0_i32_2 = arith.constant 0 : i32
    return %c0_i32, %c0_i32_0, %c0_i32_1 : i32, i32, i32
  }
  func.func @transform_4(%arg0: i32, %arg1: memref<2xi32, #tpu.memory_space<smem>>, %arg2: memref<2xi32, #tpu.memory_space<smem>>) -> (i32, i32) {
    %c0_i32 = arith.constant 0 : i32
    %c0_i32_0 = arith.constant 0 : i32
    %c0_i32_1 = arith.constant 0 : i32
    return %c0_i32, %c0_i32_0 : i32, i32
  }
  func.func @transform_5(%arg0: i32, %arg1: memref<2xi32, #tpu.memory_space<smem>>, %arg2: memref<2xi32, #tpu.memory_space<smem>>) -> (i32, i32) {
    %c0_i32 = arith.constant 0 : i32
    %c0_i32_0 = arith.constant 0 : i32
    %c0_i32_1 = arith.constant 0 : i32
    return %c0_i32, %c0_i32_0 : i32, i32
  }
  func.func @transform_6(%arg0: i32, %arg1: memref<2xi32, #tpu.memory_space<smem>>, %arg2: memref<2xi32, #tpu.memory_space<smem>>) -> (i32, i32) {
    %c0_i32 = arith.constant 0 : i32
    %c0_i32_0 = arith.constant 0 : i32
    %c0_i32_1 = arith.constant 0 : i32
    return %c0_i32, %c0_i32_0 : i32, i32
  }
}

module attributes {stable_mosaic.version = 11 : i64} {
  func.func @linear_kernel(%arg0: i32, %arg1: memref<2x256xf32, #tpu.memory_space<vmem>>, %arg2: memref<256x4xf32, #tpu.memory_space<vmem>>, %arg3: memref<1x4xf32, #tpu.memory_space<vmem>>, %arg4: memref<2x4xf32, #tpu.memory_space<vmem>>) attributes {dimension_semantics = [#tpu.dimension_semantics<arbitrary>], iteration_bounds = array<i64: 1>, scalar_prefetch = 0 : i64, scratch_operands = 0 : i64, tpu.core_type = #tpu.core_type<tc>, window_params = [{pipeline_mode = #tpu.pipeline_mode<synchronous>, transform_indices = @transform_0, window_bounds = array<i64: 2, 256>}, {pipeline_mode = #tpu.pipeline_mode<synchronous>, transform_indices = @transform_1, window_bounds = array<i64: 256, 4>}, {pipeline_mode = #tpu.pipeline_mode<synchronous>, transform_indices = @transform_2, window_bounds = array<i64: 1, 4>}, {pipeline_mode = #tpu.pipeline_mode<synchronous>, transform_indices = @transform_3, window_bounds = array<i64: 2, 4>}]} {
    %c0 = arith.constant 0 : index
    %c0_0 = arith.constant 0 : index
    %0 = vector.load %arg1[%c0, %c0_0] : memref<2x256xf32, #tpu.memory_space<vmem>>, vector<2x256xf32>
    %c0_1 = arith.constant 0 : index
    %c0_2 = arith.constant 0 : index
    %1 = vector.load %arg2[%c0_1, %c0_2] : memref<256x4xf32, #tpu.memory_space<vmem>>, vector<256x4xf32>
    %cst = arith.constant dense<0.000000e+00> : vector<2x4xf32>
    %2 = tpu.matmul %0, %1, %cst {dimension_numbers = #tpu.dot_dimension_numbers<[1], [0], [0], [1], [0, 0, 1, 1], [], []>} : vector<2x256xf32>, vector<256x4xf32>, vector<2x4xf32> -> vector<2x4xf32>
    %c0_3 = arith.constant 0 : index
    %c0_4 = arith.constant 0 : index
    %3 = vector.load %arg3[%c0_3, %c0_4] : memref<1x4xf32, #tpu.memory_space<vmem>>, vector<1x4xf32>
    %4 = vector.broadcast %3 : vector<1x4xf32> to vector<2x4xf32>
    %5 = arith.addf %2, %4 : vector<2x4xf32>
    %c0_5 = arith.constant 0 : index
    %c0_6 = arith.constant 0 : index
    %6 = vector.load %arg4[%c0_5, %c0_6] : memref<2x4xf32, #tpu.memory_space<vmem>>, vector<2x4xf32>
    tpu.vector_store %arg4[%c0_5, %c0_6], %5 {strides = array<i32>} : memref<2x4xf32, #tpu.memory_space<vmem>>, vector<2x4xf32>,
    return
  }
  func.func @transform_0(%arg0: i32) -> (i32, i32) {
    %c0_i32 = arith.constant 0 : i32
    %c0_i32_0 = arith.constant 0 : i32
    %c0_i32_1 = arith.constant 0 : i32
    return %c0_i32, %c0_i32_0 : i32, i32
  }
  func.func @transform_1(%arg0: i32) -> (i32, i32) {
    %c0_i32 = arith.constant 0 : i32
    %c0_i32_0 = arith.constant 0 : i32
    %c0_i32_1 = arith.constant 0 : i32
    return %c0_i32, %c0_i32_0 : i32, i32
  }
  func.func @transform_2(%arg0: i32) -> (i32, i32) {
    %c0_i32 = arith.constant 0 : i32
    %c0_i32_0 = arith.constant 0 : i32
    %c0_i32_1 = arith.constant 0 : i32
    return %c0_i32, %c0_i32_0 : i32, i32
  }
  func.func @transform_3(%arg0: i32) -> (i32, i32) {
    %c0_i32 = arith.constant 0 : i32
    %c0_i32_0 = arith.constant 0 : i32
    %c0_i32_1 = arith.constant 0 : i32
    return %c0_i32, %c0_i32_0 : i32, i32
  }
}

</mosaic_0001>

<bundles_post_ra>
// kernel: times_model_forward.5
= control target key start
LH: loop header
LB: loop body
LE: loop exit
PB: predicated region body
PF: predicated region fallthrough
CT: control target
= control target key end

     0   :  { %s381_s0 = inlined_call_operand.vmem [shape: f32[2,256], index: 0, kind: input, shape index: {}]   ;;  %s382_s1 = inlined_call_operand.vmem [shape: f32[256,4], index: 1, kind: input, shape index: {}]   ;;  %s383_s2 = inlined_call_operand.vmem [shape: f32[1,4], index: 2, kind: input, shape index: {}]   ;;  %s384_s3 = inlined_call_operand.hbm [shape: f32[2,4], index: 3, kind: output, shape index: {}]  }
   0x1   :  { %v32_v0 = vld [vmem:[%s382_s1 + $0x80] sm:$0xff]  ;;  %v33_v1 = vld [vmem:[%s382_s1 + $0x88] sm:$0xff]  ;;  %v34_v5 = vld [vmem:[%s382_s1 + $0x90] sm:$0xff] }
   0x2   :  { %v16_v2 = vld [vmem:[%s382_s1] sm:$0xff]  ;;  %v189_v3 = vpack.c.bf16 %v33_v1, %v32_v0  ;;  %v17_v4 = vld [vmem:[%s382_s1 + $0x8] sm:$0xff]  ;;  %v35_v6 = vld [vmem:[%s382_s1 + $0x98] sm:$0xff] }
   0x3   :  { %v191_v7 = vpack.c.bf16 %v17_v4, %v16_v2  ;;  %v193_v8 = vpack.c.bf16 %v35_v6, %v34_v5  ;;  %v18_v9 = vld [vmem:[%s382_s1 + $0x10] sm:$0xff]  ;;  %v19_v10 = vld [vmem:[%s382_s1 + $0x18] sm:$0xff]  ;;  %v36_v11 = vld [vmem:[%s382_s1 + $0xa0] sm:$0xff] }
   0x4   :  { %190 = vmatprep.subr.bf16.mxu0 %v189_v3  ;;  %v37_v12 = vld [vmem:[%s382_s1 + $0xa8] sm:$0xff]  ;;  %v195_v13 = vpack.c.bf16 %v19_v10, %v18_v9  ;;  %v20_v15 = vld [vmem:[%s382_s1 + $0x20] sm:$0xff]  ;;  %v38_v17 = vld [vmem:[%s382_s1 + $0xb0] sm:$0xff] }
   0x5   :  { %192 = vmatpush3.bf16.msra.mxu0 %v191_v7  ;;  %v197_v14 = vpack.c.bf16 %v37_v12, %v36_v11  ;;  %v21_v16 = vld [vmem:[%s382_s1 + $0x28] sm:$0xff]  ;;  %v39_v18 = vld [vmem:[%s382_s1 + $0xb8] sm:$0xff]  ;;  %v22_v21 = vld [vmem:[%s382_s1 + $0x30] sm:$0xff] }
   0x6   :  { %194 = vmatprep.subr.bf16.mxu0 %v193_v8  ;;  %v199_v19 = vpack.c.bf16 %v21_v16, %v20_v15  ;;  %v201_v20 = vpack.c.bf16 %v39_v18, %v38_v17  ;;  %v23_v22 = vld [vmem:[%s382_s1 + $0x38] sm:$0xff]  ;;  %v40_v23 = vld [vmem:[%s382_s1 + $0xc0] sm:$0xff]  ;;  %v41_v24 = vld [vmem:[%s382_s1 + $0xc8] sm:$0xff] }
   0x7   :  { %v153_v25 = vld.sshfl [vmem:[%s381_s0] sm:$0x33 pattern:$0x76325410] }
   0x8   :  { %v63_v26 = vcombine.high %v153_v25, %v153_v25 }
   0x9   :  { %196 = vmatpush3.bf16.msra.mxu0 %v195_v13 }
   0xa   :  { %198 = vmatprep.subr.bf16.mxu0 %v197_v14 }
   0xb   :  { %8 = vsyncpa [#allocation3], 0  ;;  %v203_v27 = vpack.c.bf16 %v23_v22, %v22_v21  ;;  %v205_v28 = vpack.c.bf16 %v41_v24, %v40_v23  ;;  %v24_v29 = vld [vmem:[%s382_s1 + $0x40] sm:$0xff]  ;;  %v25_v30 = vld [vmem:[%s382_s1 + $0x48] sm:$0xff]  ;;  %130 = vmatprep.mubr.f32.mxu0 %v63_v26  ;;  %s246_s25 = smov [#allocation2]   ;;  %vm136_vm0 = vcmask 25600  }
   0xc   :  { %v42_v31 = vld [vmem:[%s382_s1 + $0xd0] sm:$0xff]  ;;  %v43_v32 = vld [vmem:[%s382_s1 + $0xd8] sm:$0xff]  ;;  %v207_v33 = vpack.c.bf16 %v25_v30, %v24_v29  ;;  %v44_v37 = vld [vmem:[%s382_s1 + $0xe0] sm:$0xff]  ;;  %s144_s26 = sshll.u32 %s246_s25, 4  ;;  %s145_s26 = int_to_ptr.vmem [resolvable:$true] %s144_s26 }
   0xd   :  { %200 = vmatpush3.bf16.msra.mxu0 %v199_v19  ;;  %v209_v34 = vpack.c.bf16 %v43_v32, %v42_v31  ;;  %v26_v35 = vld [vmem:[%s382_s1 + $0x50] sm:$0xff]  ;;  %v27_v36 = vld [vmem:[%s382_s1 + $0x58] sm:$0xff]  ;;  %v45_v38 = vld [vmem:[%s382_s1 + $0xe8] sm:$0xff]  ;;  %s222_s27 = scalar_lea.vmem %s145_s26, 32  ;;  %p227_p1 = scmp.lt.s32.totalorder %s145_s26, %s145_s26 }
   0xe   :  { %202 = vmatprep.subr.bf16.mxu0 %v201_v20  ;;  %v211_v39 = vpack.c.bf16 %v27_v36, %v26_v35  ;;  %v213_v40 = vpack.c.bf16 %v45_v38, %v44_v37  ;;  %v28_v41 = vld [vmem:[%s382_s1 + $0x60] sm:$0xff]  ;;  %v29_v42 = vld [vmem:[%s382_s1 + $0x68] sm:$0xff]  ;;  %v46_v43 = vld [vmem:[%s382_s1 + $0xf0] sm:$0xff]  ;;  %p223_p0 = scmp.ne.s32.totalorder %s145_s26, %s222_s27  ;;  %p228_p2 = scmp.lt.s32.totalorder %s222_s27, %s222_s27 }
   0xf   :  { %v47_v44 = vld [vmem:[%s382_s1 + $0xf8] sm:$0xff]  ;;  %v215_v45 = vpack.c.bf16 %v29_v42, %v28_v41  ;;  %v30_v47 = vld [vmem:[%s382_s1 + $0x70] sm:$0xff]  ;;  %v152_v51 = vld [vmem:[%s383_s2] ss:$0 sm:$0xff] }
  0x10   :  { %v217_v46 = vpack.c.bf16 %v47_v44, %v46_v43  ;;  %v31_v48 = vld [vmem:[%s382_s1 + $0x78] sm:$0xff]  ;;  %p229_p3 = por %p228_p2, %p227_p1 }
  0x11   :  { %204 = vmatpush3.bf16.msra.mxu0 %v203_v27  ;;  %v219_v49 = vpack.c.bf16 %v31_v48, %v30_v47 }
  0x12   :  { %206 = vmatprep.subr.bf16.mxu0 %v205_v28  ;;  %p230_p4 = pnand %p229_p3, %p223_p0 }
  0x15   :  { %208 = vmatpush3.bf16.msra.mxu0 %v207_v33 }
  0x16   :  { %210 = vmatprep.subr.bf16.mxu0 %v209_v34 }
  0x19   :  { %212 = vmatpush3.bf16.msra.mxu0 %v211_v39 }
  0x1a   :  { %214 = vmatprep.subr.bf16.mxu0 %v213_v40 }
  0x1d   :  { %216 = vmatpush3.bf16.msra.mxu0 %v215_v45 }
  0x1e   :  { %218 = vmatprep.subr.bf16.mxu0 %v217_v46 }
  0x21   :  { %220 = vmatpush3.bf16.msra.mxu0 %v219_v49 }
  0x24   :  { %131 = vmatmul.mubr.f32.vlgmr.msra.gmra.mrb[0].mxu0 %v153_v25 }
  0xf7   :  { %v186_v50 = vpop.f32.mrb[0].mxu0 }
  0xf8   :  { %v187_v52 = vpop.f32.mrb[1].mxu0 }
  0xf9   :  { %v188_v53 = vadd.f32 %v187_v52, %v186_v50 }
  0xfb   :  { %v133_v54 = vadd.f32 %v188_v53, %v152_v51 }
  0xfd   :  { %137 = vst.msk [vmem:[#allocation2] sm:$0x3] %vm136_vm0, %v133_v54 }
  0xfe   :  { %233 = shalt.err (!%p230_p4)
}
  0xff   :  { %s234_s0 = scalar_lea.hbm %s384_s3, 32 }
 0x100   :  { %p235_p5 = scmp.ne.s32.totalorder %s384_s3, %s234_s0  ;;  %p238_p6 = scmp.lt.u32.totalorder %s234_s0, %s384_s3 }
 0x102   :  { %p240_p7 = pnand %p238_p6, %p235_p5 }
 0x104   :  { %243 = shalt.err (!%p240_p7)
}
 0x105   :  { %147 = dma.vmem_to_hbm [thread:$0]  %s145_s26, 32, %s384_s3, [#allocation3]  }
 0x106   :  { %244 = dma.done.wait [#allocation3], 32  }
 0x107   :  { %245 = vsyncadd [#allocation3], 4294967264 }
 0x108   :  { %151 = vsyncpa [#allocation3], 1 }

// kernel: times_model_forward.3
= control target key start
LH: loop header
LB: loop body
LE: loop exit
PB: predicated region body
PF: predicated region fallthrough
CT: control target
= control target key end

     0   :  { %s6499_s0 = inlined_call_operand.vmem [shape: s32[2], index: 0, kind: input, shape index: {}]   ;;  %s6500_s2 = inlined_call_operand.vmem [shape: f32[2,16,16], index: 2, kind: input, shape index: {}]   ;;  %s6501_s3 = inlined_call_operand.vmem [shape: f32[9,16,16], index: 3, kind: input, shape index: {}]   ;;  %s6502_s4 = inlined_call_operand.vmem [shape: f32[1,16], index: 4, kind: input, shape index: {}]   ;;  %s6503_s5 = inlined_call_operand.vmem [shape: f32[9,16,16], index: 5, kind: input, shape index: {}]   ;;  %s6504_s6 = inlined_call_operand.vmem [shape: f32[1,16], index: 6, kind: input, shape index: {}]   ;;  %s6505_s7 = inlined_call_operand.vmem [shape: f32[2,2], index: 7, kind: input, shape index: {}]   ;;  %s6506_s8 = inlined_call_operand.vmem [shape: f32[2,256], index: 8, kind: output, shape index: {}]   ;;  %s6507_s1 = inlined_call_operand.vmem [shape: s32[2], index: 1, kind: input, shape index: {}]  }
   0x1   :  { %s13_s29 = sshll.u32 %s6499_s0, 4  ;;  %s17_s10 = sshll.u32 %s6507_s1, 4  ;;  %s14_s29 = int_to_ptr.vmem [resolvable:$true] %s13_s29  ;;  %s18_s10 = int_to_ptr.vmem [resolvable:$true] %s17_s10 }
   0x2   :  { %s4883_s11 = scalar_lea.vmem %s14_s29, 16  ;;  %p4888_p1 = scmp.lt.s32.totalorder %s14_s29, %s14_s29 }
   0x3   :  { %p4884_p0 = scmp.ne.s32.totalorder %s14_s29, %s4883_s11  ;;  %p4889_p2 = scmp.lt.s32.totalorder %s4883_s11, %s4883_s11 }
   0x5   :  { %p4890_p3 = por %p4889_p2, %p4888_p1 }
   0x7   :  { %p4891_p4 = pnand %p4890_p3, %p4884_p0 }
   0x9   :  { %4894 = shalt.err (!%p4891_p4)  }
   0xa   :  { %s4917_s12 = smov [#allocation6]   ;;  %s4895_s13 = scalar_lea.vmem %s18_s10, 16 }
   0xb   :  { %16 = dma.vmem_to_smem %s14_s29, 16, %s4917_s12, [#allocation5] }
   0xc   :  { %p4896_p5 = scmp.ne.s32.totalorder %s18_s10, %s4895_s13  ;;  %p4900_p6 = scmp.lt.s32.totalorder %s18_s10, %s18_s10 }
   0xd   :  { %p4901_p7 = scmp.lt.s32.totalorder %s4895_s13, %s4895_s13 }
   0xf   :  { %p4902_p8 = por %p4901_p7, %p4900_p6 }
  0x11   :  { %p4903_p9 = pnand %p4902_p8, %p4896_p5 }
  0x13   :  { %4906 = shalt.err (!%p4903_p9)  }
  0x14   :  { %s4918_s0 = smov [#allocation7]  }
  0x15   :  { %20 = dma.vmem_to_smem %s18_s10, 16, %s4918_s0, [#allocation5] }
  0x16   :  { %4911 = dma.done.wait [#allocation5], 32 }
  0x17   :  { %4912 = vsyncadd [#allocation5], 4294967264 }
  0x18   :  { %22 = sfence }
  0x19   :  { %s4982_s1 = smov 0  }
  0x1a LB: > { %s4988_s14 = sadd.s32 4294967295, %s4915_s1   ;;  %p3953_p10 = scmp.ge.s32.totalorder %s4915_s1, 1  ;;  %s4915_s1 = sphi %s4982_s1, %s28_s1  }
  0x1b   : > { %p209_p11 = scmp.lt.s32.totalorder %s4915_s1, 3 }
  0x1d   : > { %p210_p12 = pnand %p3953_p10, %p209_p11 }
  0x1f   : > { %213 = sbr.rel (%p210_p12) target bundleno = 1180 (0x49c), region = 44 }
  0x26   : > { %s4993_s15 = sld [smem:[#allocation6 + %s4988_s14]]  ;;  %p3954_p13 = scmp.ne.s32.totalorder %s4988_s14, 0 }
  0x27   : > { %s4996_s16 = sld [smem:[#allocation7 + %s4988_s14]]  ;;  %vm235_vm0 = vcmask (!%p3954_p13), 130048   ;;  %v264_v0 = vld [vmem:[%s6500_s2] sm:$0xff] (!%p3954_p13)  ;;  %v265_v1 = vld [vmem:[%s6500_s2 + $0x8] sm:$0xff] (!%p3954_p13)  ;;  %v3955_v2 = vld [vmem:[%s6500_s2 + $0x10] sm:$0xff] (!%p3954_p13)  ;;  %v4919_v3 = vmov (!%p3954_p13), 0.0  }
  0x28   : > { %234 = sbr.rel (%p3954_p13) target bundleno = 56 (0x38), region = 48  ;;  %239 = vst.msk [vmem:[#allocation2 + $0x18] sm:$0xff] (!%p3954_p13), %vm235_vm0, %v4919_v3  ;;  %236 = vst.msk [vmem:[#allocation2] sm:$0xff] (!%p3954_p13), %vm235_vm0, %v4919_v3  ;;  %v3956_v4 = vld [vmem:[%s6500_s2 + $0x18] sm:$0xff] (!%p3954_p13) }
  0x29   : > { %237 = vst.msk [vmem:[#allocation2 + $0x8] sm:$0xff] (!%p3954_p13), %vm235_vm0, %v4919_v3  ;;  %238 = vst.msk [vmem:[#allocation2 + $0x10] sm:$0xff] (!%p3954_p13), %vm235_vm0, %v4919_v3 }
  0x2a   : > { %240 = vst.msk [vmem:[#allocation2 + $0x20] sm:$0xff] (!%p3954_p13), %vm235_vm0, %v4919_v3  ;;  %241 = vst.msk [vmem:[#allocation2 + $0x28] sm:$0xff] (!%p3954_p13), %vm235_vm0, %v4919_v3 }
  0x2b   : > { %242 = vst.msk [vmem:[#allocation2 + $0x30] sm:$0xff] (!%p3954_p13), %vm235_vm0, %v4919_v3  ;;  %243 = vst.msk [vmem:[#allocation2 + $0x38] sm:$0xff] (!%p3954_p13), %vm235_vm0, %v4919_v3 }
  0x2c   : > { %244 = vst.msk [vmem:[#allocation2 + $0x40] sm:$0xff] (!%p3954_p13), %vm235_vm0, %v4919_v3  ;;  %245 = vst.msk [vmem:[#allocation2 + $0x48] sm:$0xff] (!%p3954_p13), %vm235_vm0, %v4919_v3 }
  0x2d   : > { %246 = vst.msk [vmem:[#allocation2 + $0x50] sm:$0xff] (!%p3954_p13), %vm235_vm0, %v4919_v3  ;;  %247 = vst.msk [vmem:[#allocation2 + $0x58] sm:$0xff] (!%p3954_p13), %vm235_vm0, %v4919_v3 }
  0x2e   : > { %248 = vst.msk [vmem:[#allocation2 + $0x60] sm:$0xff] (!%p3954_p13), %vm235_vm0, %v4919_v3  ;;  %249 = vst.msk [vmem:[#allocation2 + $0x68] sm:$0xff] (!%p3954_p13), %vm235_vm0, %v4919_v3 }
  0x2f   : > { %250 = vst.msk [vmem:[#allocation3] sm:$0xff] %vm235_vm0, %v4919_v3  ;;  %251 = vst.msk [vmem:[#allocation3 + $0x8] sm:$0xff] %vm235_vm0, %v4919_v3 }
  0x30   : > { %252 = vst.msk [vmem:[#allocation3 + $0x10] sm:$0xff] %vm235_vm0, %v4919_v3  ;;  %253 = vst.msk [vmem:[#allocation3 + $0x18] sm:$0xff] %vm235_vm0, %v4919_v3 }
  0x31   : > { %254 = vst.msk [vmem:[#allocation3 + $0x20] sm:$0xff] %vm235_vm0, %v4919_v3  ;;  %255 = vst.msk [vmem:[#allocation3 + $0x28] sm:$0xff] %vm235_vm0, %v4919_v3 }
  0x32   : > { %256 = vst.msk [vmem:[#allocation3 + $0x30] sm:$0xff] %vm235_vm0, %v4919_v3  ;;  %257 = vst.msk [vmem:[#allocation3 + $0x38] sm:$0xff] %vm235_vm0, %v4919_v3 }
  0x33   : > { %258 = vst.msk [vmem:[#allocation3 + $0x40] sm:$0xff] %vm235_vm0, %v4919_v3  ;;  %259 = vst.msk [vmem:[#allocation3 + $0x48] sm:$0xff] %vm235_vm0, %v4919_v3 }
  0x34   : > { %260 = vst.msk [vmem:[#allocation3 + $0x50] sm:$0xff] %vm235_vm0, %v4919_v3  ;;  %261 = vst.msk [vmem:[#allocation3 + $0x58] sm:$0xff] %vm235_vm0, %v4919_v3 }
  0x35   : > { %262 = vst.msk [vmem:[#allocation3 + $0x60] sm:$0xff] %vm235_vm0, %v4919_v3  ;;  %263 = vst.msk [vmem:[#allocation3 + $0x68] sm:$0xff] %vm235_vm0, %v4919_v3 }
  0x36   : > { %266 = vst.msk [vmem:[#allocation2 + $0x18] sm:$0xff] %vm235_vm0, %v264_v0  ;;  %267 = vst.msk [vmem:[#allocation2 + $0x20] sm:$0xff] %vm235_vm0, %v265_v1 }
  0x37   : > { %271 = vst.msk [vmem:[#allocation2 + $0x38] sm:$0xff] %vm235_vm0, %v3955_v2  ;;  %272 = vst.msk [vmem:[#allocation2 + $0x40] sm:$0xff] %vm235_vm0, %v3956_v4 }
  0x38 PF: > { %v6551_v5 = vlaneseq  ;;  %v5046_v6 = vstv %s4993_s15  ;;  %v4920_v7 = vmov 0   ;;  %v5067_v30 = vstv %s4996_s16  ;;  %v3957_v54 = vld [vmem:[%s6501_s3 + $0x10] sm:$0xff]  ;;  %v3958_v55 = vld [vmem:[%s6501_s3 + $0x18] sm:$0xff]  ;;  %s378_s11 = ssub.s32 24, %s4993_s15  ;;  %s301_s18 = ssub.s32 23, %s4993_s15 }
  0x39   : > { %4864 = vset.pattern.permute.xlu1 %v4920_v7  ;;  %4863 = vset.pattern.permute.xlu0 %v4920_v7  ;;  %v283_v8 = vcvt.s32.f32 %v5046_v6  ;;  %v376_v58 = vld [vmem:[%s6501_s3] sm:$0xff]  ;;  %v377_v59 = vld [vmem:[%s6501_s3 + $0x8] sm:$0xff]  ;;  %v4665_v61 = vpack.c.bf16 %v3958_v55, %v3957_v54  ;;  %s5528_s12 = scalar_lea.vmem [#allocation2], %s378_s11  ;;  %s5586_s19 = scalar_lea.vmem [#allocation2], %s301_s18 }
  0x3a   : > { %v5052_v9 = vshrl.u32 %v6551_v5, 7  ;;  %v5209_v63 = vpack.c.bf16 %v377_v59, %v376_v58  ;;  %s694_s24 = ssub.s32 25, %s4993_s15  ;;  %v3995_v40 = vld [vmem:[%s6501_s3 + $0x40] sm:$0xff]  ;;  %s5820_s23 = scalar_lea.vmem [#allocation2], %s4993_s15 }
  0x3b   : > { %4865 = vrcp.f32 %v283_v8  ;;  %4666 = vmatprep.subr.bf16.mxu0 %v4665_v61  ;;  %s5641_s25 = scalar_lea.vmem [#allocation2], %s694_s24  ;;  %s2582_s9 = scalar_lea.vmem [#allocation3], %s694_s24 }
  0x3c   : > { %6581 = vst [vmem:[#allocation9_spill] sm:$0xff] %v5052_v9  ;;  %v276_v10 = vadd.s32 16, %v5052_v9  ;;  %v277_v11 = vadd.s32 24, %v5052_v9  ;;  %v275_v12 = vadd.s32 8, %v5052_v9  ;;  %v279_v13 = vcvt.s32.f32 %v5052_v9  ;;  %4668 = vmatpush3.bf16.msra.mxu0 %v4665_v61  ;;  %s6353_s28 = scalar_lea.vmem [#allocation3], %s4993_s15 }
  0x3d   : > { %4670 = vmatprep.subr.bf16.mxu0 %v5209_v63 }
  0x3e   : > { %v281_v14 = vcvt.s32.f32 %v276_v10  ;;  %v282_v15 = vcvt.s32.f32 %v277_v11  ;;  %v280_v16 = vcvt.s32.f32 %v275_v12  ;;  %v381_v54 = vld [vmem:[%s5528_s12 + $0x8] sm:$0xff]  ;;  %v384_v61 = vld [vmem:[%s5528_s12 + $0x20] sm:$0xff] }
  0x45   : > { %v4866_v17 = vpop.eup %4865 }
  0x46   : > { %v285_v18 = vmul.f32 %v4866_v17, %v279_v13  ;;  %v287_v19 = vmul.f32 %v4866_v17, %v281_v14  ;;  %v288_v20 = vmul.f32 %v4866_v17, %v282_v15  ;;  %v286_v21 = vmul.f32 %v4866_v17, %v280_v16  ;;  %v3986_v15 = vld [vmem:[%s6501_s3 + $0x38] sm:$0xff] }
  0x48   : > { %v4833_v22 = vtrunc.f32 %v285_v18  ;;  %v4837_v23 = vtrunc.f32 %v287_v19  ;;  %v4839_v24 = vtrunc.f32 %v288_v20  ;;  %v4835_v25 = vtrunc.f32 %v286_v21  ;;  %v305_v19 = vld [vmem:[%s5586_s19 + $0x10] sm:$0xff] }
  0x4a   : > { %v5058_v26 = vcvt.f32.s32 %v4833_v22  ;;  %v5060_v27 = vcvt.f32.s32 %v4837_v23  ;;  %v5062_v28 = vcvt.f32.s32 %v4839_v24  ;;  %v5064_v29 = vcvt.f32.s32 %v4835_v25 }
  0x4c   : > { %v293_v31 = vmul.u32 %v5058_v26, %v5046_v6  ;;  %v311_v32 = vadd.s32 4294967295, %v5058_v26  ;;  %v295_v33 = vmul.u32 %v5060_v27, %v5046_v6  ;;  %v313_v34 = vadd.s32 4294967295, %v5060_v27 }
  0x4d   : > { %v296_v35 = vmul.u32 %v5062_v28, %v5046_v6  ;;  %v314_v36 = vadd.s32 4294967295, %v5062_v28  ;;  %v294_v37 = vmul.u32 %v5064_v29, %v5046_v6  ;;  %v312_v43 = vadd.s32 4294967295, %v5064_v29 }
  0x4e   : > { %v5081_v38 = vsub.s32 %v5052_v9, %v293_v31  ;;  %vm315_vm1 = vcmp.ge.s32.totalorder %v311_v32, 0  ;;  %vm320_vm2 = vcmp.lt.s32.totalorder %v311_v32, %v5067_v30  ;;  %v5084_v39 = vsub.s32 %v276_v10, %v295_v33 }
  0x4f   : > { %vm5086_vm3 = vmand %vm315_vm1, %vm320_vm2  ;;  %vm317_vm4 = vcmp.ge.s32.totalorder %v313_v34, 0  ;;  %vm322_vm5 = vcmp.lt.s32.totalorder %v313_v34, %v5067_v30  ;;  %v5091_v41 = vsub.s32 %v277_v11, %v296_v35  ;;  %vm318_vm13 = vcmp.ge.s32.totalorder %v314_v36, 0 }
  0x50   : > { %vm6515_vm6 = vcmp.ge.s32.totalorder %v5081_v38, 0  ;;  %vm6514_vm7 = vcmp.lt.s32.totalorder %v5081_v38, %v5046_v6  ;;  %vm5096_vm8 = vmand %vm317_vm4, %vm322_vm5  ;;  %vm6511_vm9 = vcmp.ge.s32.totalorder %v5084_v39, 0  ;;  %vm6509_vm11 = vcmp.lt.s32.totalorder %v5084_v39, %v5046_v6 }
  0x51   : > { %vm392_vm10 = vmand %vm5086_vm3, %vm6515_vm6  ;;  %vm323_vm14 = vcmp.lt.s32.totalorder %v314_v36, %v5067_v30  ;;  %v5112_v44 = vsub.s32 %v275_v12, %v294_v37  ;;  %vm6508_vm0 = vcmp.ge.s32.totalorder %v5091_v41, 0  ;;  %vm6510_vm2 = vcmp.lt.s32.totalorder %v5091_v41, %v5046_v6 }
  0x52   : > { %vm400_vm12 = vmand %vm392_vm10, %vm6514_vm7  ;;  %v5126_v46 = vadd.s32 4294967295, %v5081_v38  ;;  %vm316_vm5 = vcmp.ge.s32.totalorder %v312_v43, 0  ;;  %vm321_vm10 = vcmp.lt.s32.totalorder %v312_v43, %v5067_v30  ;;  %v5154_v52 = vadd.s32 4294967295, %v5084_v39  ;;  %v697_v43 = vld [vmem:[%s5641_s25 + $0x8] sm:$0xff] }
  0x53   : > { %v404_v45 = vsel %vm400_vm12, 1, %v4920_v7  ;;  %vm394_vm15 = vmand %vm5096_vm8, %vm6511_vm9  ;;  %v5140_v49 = vadd.s32 4294967295, %v5112_v44  ;;  %v5167_v53 = vadd.s32 4294967295, %v5091_v41  ;;  %v5187_v57 = vadd.s32 1, %v5081_v38 }
  0x54   : > { %409 = vperm.xlu0 %4863, %v404_v45   ;;  %vm402_vm1 = vmand %vm394_vm15, %vm6509_vm11  ;;  %vm6513_vm15 = vcmp.ge.s32.totalorder %v5112_v44, 0  ;;  %vm6516_vm9 = vcmp.ge.s32.totalorder %v5154_v52, 0  ;;  %v5207_v62 = vadd.s32 1, %v5112_v44  ;;  %v5223_v1 = vadd.s32 1, %v5084_v39 }
  0x55   : > { %v406_v47 = vsel %vm402_vm1, 1, %v4920_v7  ;;  %vm5129_vm4 = vmand %vm318_vm13, %vm323_vm14  ;;  %vm6512_vm14 = vcmp.lt.s32.totalorder %v5112_v44, %v5046_v6  ;;  %vm6519_vm7 = vcmp.lt.s32.totalorder %v5167_v53, %v5046_v6  ;;  %vm6520_vm6 = vcmp.ge.s32.totalorder %v5187_v57, 0 }
  0x56   : > { %415 = vperm.xlu1 %4864, %v406_v47   ;;  %vm395_vm12 = vmand %vm5129_vm4, %vm6508_vm0  ;;  %vm6524_vm0 = vcmp.ge.s32.totalorder %v5126_v46, 0  ;;  %v5237_v3 = vadd.s32 1, %v5091_v41  ;;  %v1466_v25 = vadd.s32 1, %v5058_v26 }
  0x57   : > { %vm403_vm13 = vmand %vm395_vm12, %vm6510_vm2  ;;  %vm6525_vm12 = vcmp.lt.s32.totalorder %v5126_v46, %v5046_v6 }
  0x58   : > { %v407_v50 = vsel %vm403_vm13, 1, %v4920_v7  ;;  %vm5148_vm1 = vmand %vm316_vm5, %vm321_vm10  ;;  %vm6527_vm10 = vcmp.ge.s32.totalorder %v5140_v49, 0  ;;  %vm6521_vm13 = vcmp.lt.s32.totalorder %v5140_v49, %v5046_v6 }
  0x59   : > { %vm393_vm11 = vmand %vm5148_vm1, %vm6513_vm15  ;;  %vm6518_vm15 = vcmp.ge.s32.totalorder %v5167_v53, 0 }
  0x5a   : > { %418 = vperm.xlu1 %4864, %v407_v50   ;;  %vm401_vm5 = vmand %vm393_vm11, %vm6512_vm14 }
  0x5b   : > { %v405_v56 = vsel %vm401_vm5, 1, %v4920_v7  ;;  %vm336_vm11 = vmand %vm5086_vm3, %vm6524_vm0 }
  0x5c   : > { %412 = vperm.xlu0 %4863, %v405_v56   ;;  %vm344_vm2 = vmand %vm336_vm11, %vm6525_vm12  ;;  %vm6517_vm11 = vcmp.lt.s32.totalorder %v5154_v52, %v5046_v6 }
  0x5d   : > { %v348_v60 = vsel %vm344_vm2, 1, %v4920_v7  ;;  %vm337_vm5 = vmand %vm5148_vm1, %vm6527_vm10 }
  0x5e   : > { %vm345_vm14 = vmand %vm337_vm5, %vm6521_vm13  ;;  %vm6528_vm13 = vcmp.ge.s32.totalorder %v5237_v3, 0 }
  0x5f   : > { %v349_v0 = vsel %vm345_vm14, 1, %v4920_v7  ;;  %vm338_vm2 = vmand %vm5096_vm8, %vm6516_vm9  ;;  %vm716_vm9 = vcmp.lt.s32.totalorder %v5187_v57, %v5046_v6 }
  0x60   : > { %353 = vperm.xlu0 %4863, %v348_v60   ;;  %356 = vperm.xlu1 %4864, %v349_v0   ;;  %vm346_vm5 = vmand %vm338_vm2, %vm6517_vm11  ;;  %vm709_vm11 = vcmp.ge.s32.totalorder %v5207_v62, 0  ;;  %v383_v60 = vld [vmem:[%s5528_s12 + $0x18] sm:$0xff] }
  0x61   : > { %v350_v2 = vsel %vm346_vm5, 1, %v4920_v7  ;;  %vm339_vm14 = vmand %vm5129_vm4, %vm6518_vm15  ;;  %vm6522_vm15 = vcmp.lt.s32.totalorder %v5207_v62, %v5046_v6 }
  0x62   : > { %vm347_vm2 = vmand %vm339_vm14, %vm6519_vm7  ;;  %vm6523_vm7 = vcmp.ge.s32.totalorder %v5223_v1, 0 }
  0x63   : > { %v351_v4 = vsel %vm347_vm2, 1, %v4920_v7  ;;  %vm712_vm5 = vmand %vm5086_vm3, %vm6520_vm6  ;;  %vm6529_vm3 = vcmp.lt.s32.totalorder %v5223_v1, %v5046_v6 }
  0x64   : > { %359 = vperm.xlu0 %4863, %v350_v2   ;;  %362 = vperm.xlu1 %4864, %v351_v4   ;;  %vm720_vm14 = vmand %vm712_vm5, %vm716_vm9  ;;  %v385_v2 = vld [vmem:[%s5528_s12 + $0x28] sm:$0xff] }
  0x65   : > { %v724_v8 = vsel %vm720_vm14, 1, %v4920_v7  ;;  %vm713_vm2 = vmand %vm5148_vm1, %vm709_vm11  ;;  %vm6526_vm14 = vcmp.lt.s32.totalorder %v5237_v3, %v5046_v6 }
  0x66   : > { %vm721_vm6 = vmand %vm713_vm2, %vm6522_vm15  ;;  %vm900_vm2 = vcmp.ge.s32.totalorder %v5058_v26, 0  ;;  %vm904_vm15 = vcmp.lt.s32.totalorder %v5058_v26, %v5067_v30  ;;  %v1467_v26 = vadd.s32 1, %v5064_v29 }
  0x67   : > { %v725_v10 = vsel %vm721_vm6, 1, %v4920_v7  ;;  %vm714_vm5 = vmand %vm5096_vm8, %vm6523_vm7 }
  0x68   : > { %729 = vperm.xlu0 %4863, %v724_v8   ;;  %732 = vperm.xlu1 %4864, %v725_v10   ;;  %vm722_vm1 = vmand %vm714_vm5, %vm6529_vm3  ;;  %vm901_vm5 = vcmp.ge.s32.totalorder %v5064_v29, 0  ;;  %v387_v10 = vld [vmem:[%s5528_s12 + $0x38] sm:$0xff] }
  0x69   : > { %v726_v11 = vsel %vm722_vm1, 1, %v4920_v7  ;;  %vm715_vm6 = vmand %vm5129_vm4, %vm6528_vm13  ;;  %vm905_vm1 = vcmp.lt.s32.totalorder %v5064_v29, %v5067_v30  ;;  %vm6602_vm13 = vcmp.lt.s32.totalorder %v5167_v53, %v5046_v6  ;;  %v1468_v29 = vadd.s32 1, %v5060_v27 }
  0x6a   : > { %vm723_vm8 = vmand %vm715_vm6, %vm6526_vm14  ;;  %vm6597_vm14 = vcmp.ge.s32.totalorder %v5154_v52, 0 }
  0x6b   : > { %v727_v12 = vsel %vm723_vm8, 1, %v4920_v7  ;;  %vm5284_vm7 = vmand %vm900_vm2, %vm904_vm15  ;;  %vm902_vm2 = vcmp.ge.s32.totalorder %v5060_v27, 0  ;;  %vm906_vm8 = vcmp.lt.s32.totalorder %v5060_v27, %v5067_v30  ;;  %v1469_v27 = vadd.s32 1, %v5062_v28 }
  0x6c   : > { %735 = vperm.xlu0 %4863, %v726_v11   ;;  %738 = vperm.xlu1 %4864, %v727_v12   ;;  %vm912_vm4 = vmand %vm5284_vm7, %vm6524_vm0  ;;  %v303_v11 = vld [vmem:[%s5586_s19] sm:$0xff] }
  0x6d   : > { %vm916_vm6 = vmand %vm912_vm4, %vm6525_vm12  ;;  %vm6594_vm4 = vcmp.lt.s32.totalorder %v5140_v49, %v5046_v6 }
  0x6e   : > { %v920_v14 = vsel %vm916_vm6, 1, %v4920_v7  ;;  %vm5299_vm15 = vmand %vm901_vm5, %vm905_vm1  ;;  %vm903_vm1 = vcmp.ge.s32.totalorder %v5062_v28, 0  ;;  %vm907_vm6 = vcmp.lt.s32.totalorder %v5062_v28, %v5067_v30 }
  0x6f   : > { %vm913_vm0 = vmand %vm5299_vm15, %vm6527_vm10 }
  0x70   : > { %925 = vperm.xlu0 %4863, %v920_v14   ;;  %vm917_vm12 = vmand %vm913_vm0, %vm6594_vm4  ;;  %vm6598_vm0 = vcmp.lt.s32.totalorder %v5154_v52, %v5046_v6  ;;  %v3985_v14 = vld [vmem:[%s6501_s3 + $0x30] sm:$0xff] }
  0x71   : > { %v921_v16 = vsel %vm917_vm12, 1, %v4920_v7  ;;  %vm5314_vm5 = vmand %vm902_vm2, %vm906_vm8  ;;  %vm6601_vm2 = vcmp.ge.s32.totalorder %v5167_v53, 0 }
  0x72   : > { %928 = vperm.xlu1 %4864, %v921_v16   ;;  %vm914_vm10 = vmand %vm5314_vm5, %vm6597_vm14  ;;  %v304_v16 = vld [vmem:[%s5586_s19 + $0x8] sm:$0xff] }
  0x73   : > { %vm918_vm4 = vmand %vm914_vm10, %vm6598_vm0  ;;  %vm6603_vm10 = vcmp.ge.s32.totalorder %v5081_v38, 0 }
  0x74   : > { %v922_v18 = vsel %vm918_vm4, 1, %v4920_v7  ;;  %vm5329_vm12 = vmand %vm903_vm1, %vm907_vm6  ;;  %vm6604_vm6 = vcmp.lt.s32.totalorder %v5081_v38, %v5046_v6  ;;  %vm6605_vm4 = vcmp.ge.s32.totalorder %v5112_v44, 0 }
  0x75   : > { %931 = vperm.xlu0 %4863, %v922_v18   ;;  %vm915_vm8 = vmand %vm5329_vm12, %vm6601_vm2 }
  0x76   : > { %vm919_vm14 = vmand %vm915_vm8, %vm6602_vm13  ;;  %vm6606_vm13 = vcmp.lt.s32.totalorder %v5112_v44, %v5046_v6 }
  0x77   : > { %v923_v20 = vsel %vm919_vm14, 1, %v4920_v7  ;;  %vm1096_vm1 = vmand %vm5284_vm7, %vm6603_vm10  ;;  %vm6607_vm14 = vcmp.ge.s32.totalorder %v5084_v39, 0 }
  0x78   : > { %934 = vperm.xlu1 %4864, %v923_v20   ;;  %vm1100_vm0 = vmand %vm1096_vm1, %vm6604_vm6  ;;  %vm6608_vm1 = vcmp.lt.s32.totalorder %v5084_v39, %v5046_v6  ;;  %v4677_v20 = vpack.c.bf16 %v3986_v15, %v3985_v14  ;;  %v895_v14 = vld [vmem:[#allocation2 + $0x2f] sm:$0xff]  ;;  %v896_v15 = vld [vmem:[#allocation2 + $0x37] sm:$0xff] }
  0x79   : > { %v1104_v21 = vsel %vm1100_vm0, 1, %v4920_v7  ;;  %vm1097_vm2 = vmand %vm5299_vm15, %vm6605_vm4  ;;  %vm6609_vm0 = vcmp.ge.s32.totalorder %v5091_v41, 0 }
  0x7a   : > { %1109 = vperm.xlu0 %4863, %v1104_v21   ;;  %vm1101_vm8 = vmand %vm1097_vm2, %vm6606_vm13  ;;  %vm6610_vm2 = vcmp.lt.s32.totalorder %v5091_v41, %v5046_v6 }
  0x7b   : > { %v1105_v22 = vsel %vm1101_vm8, 1, %v4920_v7  ;;  %vm1098_vm10 = vmand %vm5314_vm5, %vm6607_vm14  ;;  %vm6611_vm8 = vcmp.ge.s32.totalorder %v5187_v57, 0 }
  0x7c   : > { %1112 = vperm.xlu1 %4864, %v1105_v22   ;;  %vm1102_vm6 = vmand %vm1098_vm10, %vm6608_vm1 }
  0x7d   : > { %v1106_v23 = vsel %vm1102_vm6, 1, %v4920_v7  ;;  %vm1099_vm4 = vmand %vm5329_vm12, %vm6609_vm0  ;;  %vm6612_vm6 = vcmp.lt.s32.totalorder %v5207_v62, %v5046_v6 }
  0x7e   : > { %1115 = vperm.xlu0 %4863, %v1106_v23   ;;  %vm1103_vm13 = vmand %vm1099_vm4, %vm6610_vm2  ;;  %v306_v23 = vld [vmem:[%s5586_s19 + $0x18] sm:$0xff] }
  0x7f   : > { %v1107_v24 = vsel %vm1103_vm13, 1, %v4920_v7  ;;  %vm1280_vm14 = vmand %vm5284_vm7, %vm6611_vm8  ;;  %vm6613_vm7 = vcmp.ge.s32.totalorder %v5223_v1, 0  ;;  %vm1474_vm13 = vcmp.lt.s32.totalorder %v1466_v25, %v5067_v30  ;;  %vm6614_vm8 = vcmp.ge.s32.totalorder %v5237_v3, 0 }
  0x80   : > { %1118 = vperm.xlu1 %4864, %v1107_v24   ;;  %vm1284_vm10 = vmand %vm1280_vm14, %vm716_vm9  ;;  %v307_v24 = vld [vmem:[%s5586_s19 + $0x20] sm:$0xff] }
  0x81   : > { %v1288_v31 = vsel %vm1284_vm10, 1, %v4920_v7  ;;  %vm1281_vm1 = vmand %vm5299_vm15, %vm709_vm11  ;;  %vm1470_vm15 = vcmp.ge.s32.totalorder %v1466_v25, 0 }
  0x82   : > { %1293 = vperm.xlu0 %4863, %v1288_v31   ;;  %vm1285_vm0 = vmand %vm1281_vm1, %vm6612_vm6  ;;  %vm1471_vm6 = vcmp.ge.s32.totalorder %v1467_v26, 0 }
  0x83   : > { %v1289_v32 = vsel %vm1285_vm0, 1, %v4920_v7  ;;  %vm1282_vm4 = vmand %vm5314_vm5, %vm6613_vm7  ;;  %vm6615_vm5 = vcmp.lt.s32.totalorder %v5237_v3, %v5046_v6  ;;  %vm1475_vm0 = vcmp.lt.s32.totalorder %v1467_v26, %v5067_v30  ;;  %vm6618_vm7 = vcmp.ge.s32.totalorder %v5126_v46, 0  ;;  %v308_v26 = vld [vmem:[%s5586_s19 + $0x28] sm:$0xff] }
  0x84   : > { %1296 = vperm.xlu1 %4864, %v1289_v32   ;;  %vm1286_vm2 = vmand %vm1282_vm4, %vm6529_vm3  ;;  %vm6619_vm4 = vcmp.lt.s32.totalorder %v5126_v46, %v5046_v6 }
  0x85   : > { %v1290_v33 = vsel %vm1286_vm2, 1, %v4920_v7  ;;  %vm1283_vm14 = vmand %vm5329_vm12, %vm6614_vm8  ;;  %vm1476_vm8 = vcmp.lt.s32.totalorder %v1468_v29, %v5067_v30 }
  0x86   : > { %1299 = vperm.xlu0 %4863, %v1290_v33   ;;  %vm1287_vm10 = vmand %vm1283_vm14, %vm6615_vm5  ;;  %vm6622_vm14 = vcmp.ge.s32.totalorder %v5140_v49, 0  ;;  %v309_v33 = vld [vmem:[%s5586_s19 + $0x30] sm:$0xff] }
  0x87   : > { %v1291_v34 = vsel %vm1287_vm10, 1, %v4920_v7  ;;  %vm5409_vm1 = vmand %vm1470_vm15, %vm1474_vm13  ;;  %vm1472_vm13 = vcmp.ge.s32.totalorder %v1468_v29, 0  ;;  %vm6623_vm10 = vcmp.lt.s32.totalorder %v5140_v49, %v5046_v6  ;;  %v380_v49 = vld [vmem:[%s5528_s12] sm:$0xff] }
  0x88   : > { %1302 = vperm.xlu1 %4864, %v1291_v34   ;;  %vm1482_vm12 = vmand %vm5409_vm1, %vm6618_vm7 }
  0x89   : > { %vm1486_vm2 = vmand %vm1482_vm12, %vm6619_vm4  ;;  %vm6626_vm4 = vcmp.ge.s32.totalorder %v5154_v52, 0 }
  0x8a   : > { %v1490_v36 = vsel %vm1486_vm2, 1, %v4920_v7  ;;  %vm5423_vm15 = vmand %vm1471_vm6, %vm1475_vm0  ;;  %vm1473_vm6 = vcmp.ge.s32.totalorder %v1469_v27, 0  ;;  %vm1477_vm0 = vcmp.lt.s32.totalorder %v1469_v27, %v5067_v30  ;;  %v310_v27 = vld [vmem:[%s5586_s19 + $0x38] sm:$0xff] }
  0x8b   : > { %1495 = vperm.xlu0 %4863, %v1490_v36   ;;  %vm1483_vm5 = vmand %vm5423_vm15, %vm6622_vm14  ;;  %vm6627_vm14 = vcmp.lt.s32.totalorder %v5154_v52, %v5046_v6  ;;  %v3975_v52 = vld [vmem:[%s6501_s3 + $0x20] sm:$0xff] }
  0x8c   : > { %vm1487_vm7 = vmand %vm1483_vm5, %vm6623_vm10  ;;  %vm6631_vm10 = vcmp.lt.s32.totalorder %v5167_v53, %v5046_v6  ;;  %v696_v36 = vld [vmem:[%s5641_s25] sm:$0xff] }
  0x8d   : > { %v1491_v28 = vsel %vm1487_vm7, 1, %v4920_v7  ;;  %vm5436_vm12 = vmand %vm1472_vm13, %vm1476_vm8  ;;  %vm6630_vm13 = vcmp.ge.s32.totalorder %v5167_v53, 0  ;;  %v3976_v53 = vld [vmem:[%s6501_s3 + $0x28] sm:$0xff] }
  0x8e   : > { %1498 = vperm.xlu1 %4864, %v1491_v28   ;;  %vm1484_vm2 = vmand %vm5436_vm12, %vm6626_vm4  ;;  %vm6632_vm4 = vcmp.ge.s32.totalorder %v5081_v38, 0  ;;  %v4673_v58 = vpack.c.bf16 %v3976_v53, %v3975_v52  ;;  %v702_v52 = vld [vmem:[%s5641_s25 + $0x30] sm:$0xff] }
  0x8f   : > { %vm1488_vm3 = vmand %vm1484_vm2, %vm6627_vm14  ;;  %vm6634_vm2 = vcmp.ge.s32.totalorder %v5112_v44, 0 }
  0x90   : > { %v1492_v42 = vsel %vm1488_vm3, 1, %v4920_v7  ;;  %vm5449_vm5 = vmand %vm1473_vm6, %vm1477_vm0  ;;  %vm6633_vm6 = vcmp.lt.s32.totalorder %v5081_v38, %v5046_v6 }
  0x91   : > { %1501 = vperm.xlu0 %4863, %v1492_v42   ;;  %vm1485_vm8 = vmand %vm5449_vm5, %vm6630_vm13  ;;  %vm6635_vm13 = vcmp.lt.s32.totalorder %v5112_v44, %v5046_v6  ;;  %v3996_v42 = vld [vmem:[%s6501_s3 + $0x48] sm:$0xff] }
  0x92   : > { %vm1489_vm7 = vmand %vm1485_vm8, %vm6631_vm10  ;;  %vm6636_vm10 = vcmp.ge.s32.totalorder %v5084_v39, 0 }
  0x93   : > { %v1493_v30 = vsel %vm1489_vm7, 1, %v4920_v7  ;;  %vm1668_vm3 = vmand %vm5409_vm1, %vm6632_vm4  ;;  %vm6637_vm4 = vcmp.lt.s32.totalorder %v5084_v39, %v5046_v6 }
  0x94   : > { %1504 = vperm.xlu1 %4864, %v1493_v30   ;;  %vm1672_vm0 = vmand %vm1668_vm3, %vm6633_vm6  ;;  %vm6638_vm6 = vcmp.ge.s32.totalorder %v5091_v41, 0 }
  0x95   : > { %v1676_v45 = vsel %vm1672_vm0, 1, %v4920_v7  ;;  %vm1669_vm14 = vmand %vm5423_vm15, %vm6634_vm2  ;;  %vm6639_vm2 = vcmp.lt.s32.totalorder %v5091_v41, %v5046_v6 }
  0x96   : > { %1681 = vperm.xlu0 %4863, %v1676_v45   ;;  %vm1673_vm8 = vmand %vm1669_vm14, %vm6635_vm13  ;;  %vm6640_vm13 = vcmp.ge.s32.totalorder %v5187_v57, 0 }
  0x97   : > { %v1677_v46 = vsel %vm1673_vm8, 1, %v4920_v7  ;;  %vm1670_vm7 = vmand %vm5436_vm12, %vm6636_vm10 }
  0x98   : > { %1684 = vperm.xlu1 %4864, %v1677_v46   ;;  %vm1674_vm3 = vmand %vm1670_vm7, %vm6637_vm4  ;;  %vm6641_vm4 = vcmp.lt.s32.totalorder %v5207_v62, %v5046_v6  ;;  %v698_v46 = vld [vmem:[%s5641_s25 + $0x10] sm:$0xff] }
  0x99   : > { %v1678_v38 = vsel %vm1674_vm3, 1, %v4920_v7  ;;  %vm1671_vm0 = vmand %vm5449_vm5, %vm6638_vm6  ;;  %vm6643_vm6 = vcmp.lt.s32.totalorder %v5223_v1, %v5046_v6 }
  0x9a   : > { %1687 = vperm.xlu0 %4863, %v1678_v38   ;;  %vm1675_vm14 = vmand %vm1671_vm0, %vm6639_vm2  ;;  %vm6645_vm2 = vcmp.lt.s32.totalorder %v5237_v3, %v5046_v6  ;;  %v4681_v38 = vpack.c.bf16 %v3996_v42, %v3995_v40  ;;  %v1090_v40 = vld [vmem:[#allocation2 + $0x28] sm:$0xff] }
  0x9b   : > { %v1679_v44 = vsel %vm1675_vm14, 1, %v4920_v7  ;;  %vm1854_vm8 = vmand %vm5409_vm1, %vm6640_vm13  ;;  %vm6642_vm1 = vcmp.ge.s32.totalorder %v5223_v1, 0 }
  0x9c   : > { %1690 = vperm.xlu1 %4864, %v1679_v44   ;;  %vm1858_vm10 = vmand %vm1854_vm8, %vm716_vm9 }
  0x9d   : > { %v1862_v39 = vsel %vm1858_vm10, 1, %v4920_v7  ;;  %vm1855_vm7 = vmand %vm5423_vm15, %vm709_vm11  ;;  %vm6644_vm11 = vcmp.ge.s32.totalorder %v5237_v3, 0 }
  0x9e   : > { %1867 = vperm.xlu0 %4863, %v1862_v39   ;;  %vm1859_vm3 = vmand %vm1855_vm7, %vm6641_vm4 }
  0x9f   : > { %v1863_v41 = vsel %vm1859_vm3, 1, %v4920_v7  ;;  %vm1856_vm9 = vmand %vm5436_vm12, %vm6642_vm1  ;;  %vm435_vm12 = vcmask 130048  }
  0xa0   : > { %1870 = vperm.xlu1 %4864, %v1863_v41   ;;  %vm1860_vm0 = vmand %vm1856_vm9, %vm6643_vm6  ;;  %v699_v41 = vld [vmem:[%s5641_s25 + $0x18] sm:$0xff] }
  0xa1   : > { %v1864_v47 = vsel %vm1860_vm0, 1, %v4920_v7  ;;  %vm1857_vm15 = vmand %vm5449_vm5, %vm6644_vm11 }
  0xa2   : > { %1873 = vperm.xlu0 %4863, %v1864_v47   ;;  %vm1861_vm14 = vmand %vm1857_vm15, %vm6645_vm2  ;;  %v700_v47 = vld [vmem:[%s5641_s25 + $0x20] sm:$0xff] }
  0xa3   : > { %v1865_v48 = vsel %vm1861_vm14, 1, %v4920_v7  ;;  %v382_v7 = vld [vmem:[%s5528_s12 + $0x10] sm:$0xff] }
  0xa4   : > { %1876 = vperm.xlu1 %4864, %v1865_v48  }
  0xd3   : > { %v5531_v50 = vpop.permute.xlu0 %409 }
  0xd4   : > { %vm420_vm5 = vcmp.eq.s32.totalorder %v5531_v50, 1 }
  0xd5   : > { %v5534_v51 = vpop.permute.xlu1 %415  ;;  %v424_v6 = vsel %vm420_vm5, %v380_v49, 0.0  ;;  %v428_v1 = vsel %vm420_vm5, %v384_v61, 0.0 }
  0xd6   : > { %4381 = vmatprep.mubr.msk.f32.mxu0 %vm435_vm12, %v424_v6  ;;  %vm422_vm13 = vcmp.eq.s32.totalorder %v5534_v51, 1  ;;  %v4107_v51 = vld [vmem:[%s6503_s5 + $0x38] sm:$0xff] }
  0xd7   : > { %v426_v57 = vsel %vm422_vm13, %v382_v7, 0.0  ;;  %v701_v7 = vld [vmem:[%s5641_s25 + $0x28] sm:$0xff] }
  0xd9   : > { %v5548_v55 = vpop.permute.xlu1 %418 }
  0xda   : > { %vm423_vm10 = vcmp.eq.s32.totalorder %v5548_v55, 1 }
  0xdb   : > { %v5550_v56 = vpop.permute.xlu0 %412  ;;  %v427_v62 = vsel %vm423_vm10, %v383_v60, 0.0  ;;  %v431_v13 = vsel %vm423_vm10, %v387_v10, 0.0 }
  0xdc   : > { %vm421_vm8 = vcmp.eq.s32.totalorder %v5550_v56, 1  ;;  %v4106_v56 = vld [vmem:[%s6503_s5 + $0x30] sm:$0xff] }
  0xdd   : > { %v425_v59 = vsel %vm421_vm8, %v381_v54, 0.0  ;;  %v429_v4 = vsel %vm421_vm8, %v385_v2, 0.0  ;;  %v893_v2 = vld [vmem:[#allocation2 + $0x1f] sm:$0xff] }
  0xde   : > { %4382 = vmatmul.mubr.msk.f32.vlgmr.msra.gmra.mrb[0].mxu0 %vm435_vm12, %v425_v59  ;;  %v892_v59 = vld [vmem:[#allocation2 + $0x17] sm:$0xff] }
  0xdf   : > { %4672 = vmatpush3.bf16.msra.mxu0 %v5209_v63  ;;  %4384 = vmatprep.mubr.msk.f32.mxu0 %vm435_vm12, %v426_v57  ;;  %v5566_v0 = vpop.permute.xlu0 %353  ;;  %v386_v63 = vld [vmem:[%s5528_s12 + $0x30] sm:$0xff]  ;;  %v5574_v3 = vpop.permute.xlu1 %356 }
  0xe0   : > { %4674 = vmatprep.subr.bf16.mxu0 %v4673_v58  ;;  %v430_v8 = vsel %vm422_vm13, %v386_v63, 0.0  ;;  %vm364_vm7 = vcmp.eq.s32.totalorder %v5566_v0, 1  ;;  %vm365_vm4 = vcmp.eq.s32.totalorder %v5574_v3, 1  ;;  %v4117_v3 = vld [vmem:[%s6503_s5 + $0x48] sm:$0xff] }
  0xe1   : > { %v368_v17 = vsel %vm364_vm7, %v303_v11, 0.0  ;;  %v369_v21 = vsel %vm365_vm4, %v304_v16, 0.0  ;;  %v372_v32 = vsel %vm364_vm7, %v307_v24, 0.0  ;;  %v373_v34 = vsel %vm365_vm4, %v308_v26, 0.0 }
  0xe2   : > { %4385 = vmatmul.mubr.msk.f32.gmra.mrb[2].mxu0 %vm435_vm12, %v427_v62  ;;  %v4005_v62 = vld [vmem:[%s6501_s3 + $0x50] sm:$0xff] }
  0xe3   : > { %4387 = vmatprep.mubr.msk.f32.mxu0 %vm435_vm12, %v428_v1  ;;  %v5589_v12 = vpop.permute.xlu0 %359  ;;  %v5605_v18 = vpop.permute.xlu1 %362  ;;  %v4006_v1 = vld [vmem:[%s6501_s3 + $0x58] sm:$0xff] }
  0xe4   : > { %vm366_vm3 = vcmp.eq.s32.totalorder %v5589_v12, 1  ;;  %vm367_vm1 = vcmp.eq.s32.totalorder %v5605_v18, 1  ;;  %v4685_v10 = vpack.c.bf16 %v4006_v1, %v4005_v62  ;;  %v4042_v62 = vld [vmem:[%s6501_s3 + $0x78] sm:$0xff]  ;;  %v1273_v1 = vld [vmem:[#allocation2 + $0x21] sm:$0xff] }
  0xe5   : > { %v370_v22 = vsel %vm366_vm3, %v305_v19, 0.0  ;;  %v371_v25 = vsel %vm367_vm1, %v306_v23, 0.0  ;;  %v374_v35 = vsel %vm366_vm3, %v309_v33, 0.0  ;;  %v375_v28 = vsel %vm367_vm1, %v310_v27, 0.0  ;;  %v1089_v27 = vld [vmem:[#allocation2 + $0x20] sm:$0xff] }
  0xe6   : > { %4388 = vmatmul.mubr.msk.f32.gmra.mrb[4].mxu0 %vm435_vm12, %v429_v4 }
  0xe7   : > { %4390 = vmatprep.mubr.msk.f32.mxu0 %vm435_vm12, %v430_v8  ;;  %v5621_v31 = vpop.permute.xlu0 %729  ;;  %v5629_v29 = vpop.permute.xlu1 %732  ;;  %v894_v8 = vld [vmem:[#allocation2 + $0x27] sm:$0xff] }
  0xe8   : > { %vm740_vm9 = vcmp.eq.s32.totalorder %v5621_v31, 1  ;;  %vm741_vm6 = vcmp.eq.s32.totalorder %v5629_v29, 1  ;;  %v4127_v29 = vld [vmem:[%s6503_s5 + $0x58] sm:$0xff] }
  0xe9   : > { %v744_v30 = vsel %vm740_vm9, %v696_v36, 0.0  ;;  %v745_v44 = vsel %vm741_vm6, %v697_v43, 0.0  ;;  %v748_v6 = vsel %vm740_vm9, %v700_v47, 0.0  ;;  %v749_v54 = vsel %vm741_vm6, %v701_v7, 0.0  ;;  %v1093_v47 = vld [vmem:[#allocation2 + $0x40] sm:$0xff] }
  0xea   : > { %4391 = vmatmul.mubr.msk.f32.gmra.mrb[6].mxu0 %vm435_vm12, %v431_v13 }
  0xeb   : > { %4397 = vmatprep.mubr.msk.f32.mxu0 %vm435_vm12, %v368_v17  ;;  %v5644_v37 = vpop.permute.xlu0 %735  ;;  %v5660_v45 = vpop.permute.xlu1 %738 }
  0xec   : > { %vm6531_vm0 = vcmp.eq.s32.totalorder %v5644_v37, 1  ;;  %vm6530_vm11 = vcmp.eq.s32.totalorder %v5660_v45, 1 }
  0xed   : > { %v746_v39 = vsel %vm6531_vm0, %v698_v46, 0.0  ;;  %v747_v48 = vsel %vm6530_vm11, %v699_v41, 0.0  ;;  %v750_v57 = vsel %vm6531_vm0, %v702_v52, 0.0  ;;  %v1091_v46 = vld [vmem:[#allocation2 + $0x30] sm:$0xff] }
  0xee   : > { %4398 = vmatmul.mubr.msk.f32.vlgmr.msra.gmra.mrb[0].mxu0 %vm435_vm12, %v369_v21  ;;  %v898_v21 = vld [vmem:[#allocation2 + $0x47] sm:$0xff] }
  0xef   : > { %4676 = vmatpush3.bf16.msra.mxu0 %v4673_v58  ;;  %4400 = vmatprep.mubr.msk.f32.mxu0 %vm435_vm12, %v370_v22  ;;  %v5675_v49 = vpop.permute.xlu0 %925  ;;  %v703_v58 = vld [vmem:[%s5641_s25 + $0x38] sm:$0xff]  ;;  %s2312_s25 = scalar_lea.vmem [#allocation3], %s378_s11  ;;  %s6185_s11 = scalar_lea.vmem [#allocation3], %s301_s18 }
  0xf0   : > { %4678 = vmatprep.subr.bf16.mxu0 %v4677_v20  ;;  %vm6535_vm15 = vcmp.eq.s32.totalorder %v5675_v49, 1  ;;  %v751_v61 = vsel %vm6530_vm11, %v703_v58, 0.0 }
  0xf1   : > { %v5683_v53 = vpop.permute.xlu1 %928  ;;  %v940_v63 = vsel %vm6535_vm15, %v892_v59, 0.0  ;;  %v944_v19 = vsel %vm6535_vm15, %v896_v15, 0.0  ;;  %v1276_v15 = vld [vmem:[#allocation2 + $0x39] sm:$0xff] }
  0xf2   : > { %4401 = vmatmul.mubr.msk.f32.gmra.mrb[2].mxu0 %vm435_vm12, %v371_v25  ;;  %vm6533_vm2 = vcmp.eq.s32.totalorder %v5683_v53, 1  ;;  %v899_v25 = vld [vmem:[#allocation2 + $0x4f] sm:$0xff] }
  0xf3   : > { %4403 = vmatprep.mubr.msk.f32.mxu0 %vm435_vm12, %v372_v32  ;;  %v941_v11 = vsel %vm6533_vm2, %v893_v2, 0.0  ;;  %v1088_v32 = vld [vmem:[#allocation2 + $0x18] sm:$0xff] }
  0xf4   : > { %v5693_v60 = vpop.permute.xlu0 %931 }
  0xf5   : > { %vm6532_vm14 = vcmp.eq.s32.totalorder %v5693_v60, 1 }
  0xf6   : > { %4404 = vmatmul.mubr.msk.f32.gmra.mrb[4].mxu0 %vm435_vm12, %v373_v34  ;;  %v942_v13 = vsel %vm6532_vm14, %v894_v8, 0.0  ;;  %v946_v24 = vsel %vm6532_vm14, %v898_v21, 0.0  ;;  %v4023_v34 = vld [vmem:[%s6501_s3 + $0x60] sm:$0xff]  ;;  %v1274_v8 = vld [vmem:[#allocation2 + $0x29] sm:$0xff] }
  0xf7   : > { %4406 = vmatprep.mubr.msk.f32.mxu0 %vm435_vm12, %v374_v35  ;;  %v5708_v4 = vpop.permute.xlu1 %934  ;;  %v4024_v35 = vld [vmem:[%s6501_s3 + $0x68] sm:$0xff] }
  0xf8   : > { %vm6534_vm11 = vcmp.eq.s32.totalorder %v5708_v4, 1  ;;  %v4689_v42 = vpack.c.bf16 %v4024_v35, %v4023_v34  ;;  %v1277_v21 = vld [vmem:[#allocation2 + $0x41] sm:$0xff]  ;;  %v4015_v34 = vld [vmem:[%s5820_s23 + $0x17] sm:$0xff] }
  0xf9   : > { %v943_v16 = vsel %vm6534_vm11, %v895_v14, 0.0  ;;  %v5720_v17 = vpop.permute.xlu0 %1109  ;;  %v947_v33 = vsel %vm6534_vm11, %v899_v25, 0.0  ;;  %v1275_v14 = vld [vmem:[#allocation2 + $0x31] sm:$0xff] }
  0xfa   : > { %4407 = vmatmul.mubr.msk.f32.gmra.mrb[6].mxu0 %vm435_vm12, %v375_v28  ;;  %vm6539_vm0 = vcmp.eq.s32.totalorder %v5720_v17, 1 }
  0xfb   : > { %4413 = vmatprep.mubr.msk.f32.mxu0 %vm435_vm12, %v744_v30  ;;  %v5726_v22 = vpop.permute.xlu1 %1112  ;;  %v1124_v36 = vsel %vm6539_vm0, %v1088_v32, 0.0 }
  0xfc   : > { %vm6537_vm14 = vcmp.eq.s32.totalorder %v5726_v22, 1 }
  0xfd   : > { %v5735_v26 = vpop.permute.xlu0 %1115  ;;  %v1125_v43 = vsel %vm6537_vm14, %v1089_v27, 0.0  ;;  %v1129_v7 = vsel %vm6537_vm14, %v1093_v47, 0.0  ;;  %v4018_v47 = vld [vmem:[%s5820_s23 + $0x2f] sm:$0xff] }
  0xfe   : > { %4414 = vmatmul.mubr.msk.f32.vlgmr.msra.gmra.mrb[0].mxu0 %vm435_vm12, %v745_v44 }
  0xff   : > { %4680 = vmatpush3.bf16.msra.mxu0 %v4677_v20  ;;  %4416 = vmatprep.mubr.msk.f32.mxu0 %vm435_vm12, %v746_v39  ;;  %v897_v20 = vld [vmem:[#allocation2 + $0x3f] sm:$0xff]  ;;  %v5750_v28 = vpop.permute.xlu1 %1118 }
 0x100   : > { %4682 = vmatprep.subr.bf16.mxu0 %v4681_v38  ;;  %v945_v23 = vsel %vm6533_vm2, %v897_v20, 0.0  ;;  %vm6536_vm2 = vcmp.eq.s32.totalorder %v5735_v26, 1  ;;  %vm6538_vm11 = vcmp.eq.s32.totalorder %v5750_v28, 1 }
 0x101   : > { %v1126_v30 = vsel %vm6536_vm2, %v1090_v40, 0.0  ;;  %v1127_v44 = vsel %vm6538_vm11, %v1091_v46, 0.0  ;;  %v5762_v39 = vpop.permute.xlu0 %1293  ;;  %v4060_v40 = vld [vmem:[%s6501_s3 + $0x88] sm:$0xff] }
 0x102   : > { %4417 = vmatmul.mubr.msk.f32.gmra.mrb[2].mxu0 %vm435_vm12, %v747_v48  ;;  %v1094_v48 = vld [vmem:[#allocation2 + $0x48] sm:$0xff]  ;;  %vm6543_vm15 = vcmp.eq.s32.totalorder %v5762_v39, 1 }
 0x103   : > { %4419 = vmatprep.mubr.msk.f32.mxu0 %vm435_vm12, %v748_v6  ;;  %v5768_v6 = vpop.permute.xlu1 %1296  ;;  %v1130_v52 = vsel %vm6536_vm2, %v1094_v48, 0.0  ;;  %v1312_v20 = vsel %vm6543_vm15, %v1276_v15, 0.0  ;;  %v4017_v46 = vld [vmem:[%s5820_s23 + $0x27] sm:$0xff]  ;;  %v4019_v48 = vld [vmem:[%s5820_s23 + $0x37] sm:$0xff] }
 0x104   : > { %vm6542_vm2 = vcmp.eq.s32.totalorder %v5768_v6, 1 }
 0x105   : > { %v5777_v58 = vpop.permute.xlu0 %1299  ;;  %v1313_v25 = vsel %vm6542_vm2, %v1277_v21, 0.0 }
 0x106   : > { %4420 = vmatmul.mubr.msk.f32.gmra.mrb[4].mxu0 %vm435_vm12, %v749_v54  ;;  %v1095_v54 = vld [vmem:[#allocation2 + $0x50] sm:$0xff]  ;;  %vm6540_vm14 = vcmp.eq.s32.totalorder %v5777_v58, 1 }
 0x107   : > { %4422 = vmatprep.mubr.msk.f32.mxu0 %vm435_vm12, %v750_v57  ;;  %v1272_v57 = vld [vmem:[#allocation2 + $0x19] sm:$0xff]  ;;  %v1131_v59 = vsel %vm6538_vm11, %v1095_v54, 0.0 }
 0x108   : > { %v1308_v2 = vsel %vm6543_vm15, %v1272_v57, 0.0  ;;  %v4020_v57 = vld [vmem:[%s5820_s23 + $0x3f] sm:$0xff] }
 0x10a   : > { %4423 = vmatmul.mubr.msk.f32.gmra.mrb[6].mxu0 %vm435_vm12, %v751_v61  ;;  %v4041_v61 = vld [vmem:[%s6501_s3 + $0x70] sm:$0xff] }
 0x10b   : > { %4429 = vmatprep.mubr.msk.f32.mxu0 %vm435_vm12, %v940_v63  ;;  %v5792_v63 = vpop.permute.xlu1 %1302 }
 0x10c   : > { %6646 = vst [vmem:[#allocation10_spill] sm:$0xff] %v5792_v63  ;;  %vm6541_vm11 = vcmp.eq.s32.totalorder %v5792_v63, 1 }
 0x10e   : > { %4430 = vmatmul.mubr.msk.f32.vlgmr.msra.gmra.mrb[0].mxu0 %vm435_vm12, %v941_v11  ;;  %v1309_v11 = vsel %vm6542_vm2, %v1273_v1, 0.0 }
 0x10f   : > { %4684 = vmatpush3.bf16.msra.mxu0 %v4681_v38  ;;  %4432 = vmatprep.mubr.msk.f32.mxu0 %vm435_vm12, %v942_v13  ;;  %v1092_v38 = vld [vmem:[#allocation2 + $0x38] sm:$0xff]  ;;  %v1310_v13 = vsel %vm6540_vm14, %v1274_v8, 0.0 }
 0x110   : > { %4686 = vmatprep.subr.bf16.mxu0 %v4685_v10  ;;  %v1128_v41 = vsel %vm6539_vm0, %v1092_v38, 0.0  ;;  %v4033_v8 = vld [vmem:[%s5820_s23 + $0x18] sm:$0xff] }
 0x112   : > { %4433 = vmatmul.mubr.msk.f32.gmra.mrb[2].mxu0 %vm435_vm12, %v943_v16  ;;  %v1311_v16 = vsel %vm6541_vm11, %v1275_v14, 0.0 }
 0x113   : > { %4435 = vmatprep.mubr.msk.f32.mxu0 %vm435_vm12, %v944_v19  ;;  %v5804_v19 = vpop.permute.xlu0 %1495 }
 0x114   : > { %6647 = vst [vmem:[#allocation11_spill] sm:$0xff] %v5804_v19  ;;  %vm6547_vm0 = vcmp.eq.s32.totalorder %v5804_v19, 1 }
 0x115   : > { %v1514_v54 = vsel %vm6547_vm0, %v4019_v48, 0.0 }
 0x116   : > { %4436 = vmatmul.mubr.msk.f32.gmra.mrb[4].mxu0 %vm435_vm12, %v945_v23  ;;  %v1278_v23 = vld [vmem:[#allocation2 + $0x49] sm:$0xff] }
 0x117   : > { %4438 = vmatprep.mubr.msk.f32.mxu0 %vm435_vm12, %v946_v24  ;;  %v5810_v24 = vpop.permute.xlu1 %1498  ;;  %v1314_v32 = vsel %vm6540_vm14, %v1278_v23, 0.0  ;;  %v5823_v35 = vpop.permute.xlu0 %1501  ;;  %v4036_v23 = vld [vmem:[%s5820_s23 + $0x30] sm:$0xff] }
 0x118   : > { %6648 = vst [vmem:[#allocation12_spill] sm:$0xff] %v5810_v24  ;;  %6649 = vst [vmem:[#allocation13_spill] sm:$0xff] %v5823_v35  ;;  %vm6544_vm14 = vcmp.eq.s32.totalorder %v5810_v24, 1 }
 0x11a   : > { %4439 = vmatmul.mubr.msk.f32.gmra.mrb[6].mxu0 %vm435_vm12, %v947_v33  ;;  %v1279_v33 = vld [vmem:[#allocation2 + $0x51] sm:$0xff] }
 0x11b   : > { %4445 = vmatprep.mubr.msk.f32.mxu0 %vm435_vm12, %v1124_v36  ;;  %v1315_v27 = vsel %vm6541_vm11, %v1279_v33, 0.0  ;;  %v4059_v36 = vld [vmem:[%s6501_s3 + $0x80] sm:$0xff]  ;;  %vm6545_vm11 = vcmp.eq.s32.totalorder %v5823_v35, 1 }
 0x11c   : > { %v4697_v38 = vpack.c.bf16 %v4060_v40, %v4059_v36  ;;  %v4039_v36 = vld [vmem:[%s5820_s23 + $0x48] sm:$0xff] }
 0x11e   : > { %4446 = vmatmul.mubr.msk.f32.vlgmr.msra.gmra.mrb[0].mxu0 %vm435_vm12, %v1125_v43  ;;  %v1510_v43 = vsel %vm6547_vm0, %v4015_v34, 0.0 }
 0x11f   : > { %4688 = vmatpush3.bf16.msra.mxu0 %v4685_v10  ;;  %4448 = vmatprep.mubr.msk.f32.mxu0 %vm435_vm12, %v1126_v30  ;;  %v4693_v10 = vpack.c.bf16 %v4042_v62, %v4041_v61  ;;  %v5839_v30 = vpop.permute.xlu1 %1504  ;;  %v1515_v62 = vsel %vm6544_vm14, %v4020_v57, 0.0 }
 0x120   : > { %4690 = vmatprep.subr.bf16.mxu0 %v4689_v42  ;;  %6650 = vst [vmem:[#allocation14_spill] sm:$0xff] %v5839_v30  ;;  %vm6546_vm2 = vcmp.eq.s32.totalorder %v5839_v30, 1 }
 0x122   : > { %4449 = vmatmul.mubr.msk.f32.gmra.mrb[2].mxu0 %vm435_vm12, %v1127_v44 }
 0x123   : > { %4451 = vmatprep.mubr.msk.f32.mxu0 %vm435_vm12, %v1128_v41  ;;  %v1512_v41 = vsel %vm6545_vm11, %v4017_v46, 0.0  ;;  %v5862_v61 = vpop.permute.xlu1 %1684  ;;  %v4040_v46 = vld [vmem:[%s5820_s23 + $0x50] sm:$0xff] }
 0x124   : > { %6652 = vst [vmem:[#allocation16_spill] sm:$0xff] %v5862_v61 }
 0x126   : > { %4452 = vmatmul.mubr.msk.f32.gmra.mrb[4].mxu0 %vm435_vm12, %v1129_v7  ;;  %v1513_v7 = vsel %vm6546_vm2, %v4018_v47, 0.0  ;;  %v4052_v47 = vld [vmem:[%s5820_s23 + $0x21] sm:$0xff] }
 0x127   : > { %4454 = vmatprep.mubr.msk.f32.mxu0 %vm435_vm12, %v1130_v52  ;;  %v5854_v52 = vpop.permute.xlu0 %1681  ;;  %v5883_v15 = vpop.permute.xlu1 %1690 }
 0x128   : > { %6651 = vst [vmem:[#allocation15_spill] sm:$0xff] %v5854_v52  ;;  %vm1692_vm15 = vcmp.eq.s32.totalorder %v5854_v52, 1  ;;  %6654 = vst [vmem:[#allocation18_spill] sm:$0xff] %v5883_v15 }
 0x129   : > { %v1696_v14 = vsel %vm1692_vm15, %v4033_v8, 0.0 }
 0x12a   : > { %4455 = vmatmul.mubr.msk.f32.gmra.mrb[6].mxu0 %vm435_vm12, %v1131_v59  ;;  %v4021_v59 = vld [vmem:[%s5820_s23 + $0x47] sm:$0xff] }
 0x12b   : > { %4461 = vmatprep.mubr.msk.f32.mxu0 %vm435_vm12, %v1308_v2  ;;  %v1516_v1 = vsel %vm6545_vm11, %v4021_v59, 0.0  ;;  %v4022_v2 = vld [vmem:[%s5820_s23 + $0x4f] sm:$0xff]  ;;  %v5906_v40 = vpop.permute.xlu1 %1870 }
 0x12c   : > { %6656 = vst [vmem:[#allocation20_spill] sm:$0xff] %v5906_v40 }
 0x12e   : > { %4462 = vmatmul.mubr.msk.f32.vlgmr.msra.gmra.mrb[0].mxu0 %vm435_vm12, %v1309_v11  ;;  %v1517_v11 = vsel %vm6546_vm2, %v4022_v2, 0.0  ;;  %vm6550_vm2 = vcmp.eq.s32.totalorder %v5883_v15, 1 }
 0x12f   : > { %4692 = vmatpush3.bf16.msra.mxu0 %v4689_v42  ;;  %4464 = vmatprep.mubr.msk.f32.mxu0 %vm435_vm12, %v1310_v13  ;;  %v4016_v42 = vld [vmem:[%s5820_s23 + $0x1f] sm:$0xff] }
 0x130   : > { %4694 = vmatprep.subr.bf16.mxu0 %v4693_v10  ;;  %v1511_v44 = vsel %vm6544_vm14, %v4016_v42, 0.0  ;;  %v4034_v13 = vld [vmem:[%s5820_s23 + $0x20] sm:$0xff]  ;;  %vm6548_vm14 = vcmp.eq.s32.totalorder %v5862_v61, 1 }
 0x132   : > { %4465 = vmatmul.mubr.msk.f32.gmra.mrb[2].mxu0 %vm435_vm12, %v1311_v16  ;;  %v4035_v16 = vld [vmem:[%s5820_s23 + $0x28] sm:$0xff] }
 0x133   : > { %4467 = vmatprep.mubr.msk.f32.mxu0 %vm435_vm12, %v1312_v20  ;;  %v1697_v20 = vsel %vm6548_vm14, %v4034_v13, 0.0  ;;  %v4057_v13 = vld [vmem:[%s5820_s23 + $0x49] sm:$0xff] }
 0x136   : > { %4468 = vmatmul.mubr.msk.f32.gmra.mrb[4].mxu0 %vm435_vm12, %v1313_v25  ;;  %v4037_v25 = vld [vmem:[%s5820_s23 + $0x38] sm:$0xff] }
 0x137   : > { %4470 = vmatprep.mubr.msk.f32.mxu0 %vm435_vm12, %v1314_v32  ;;  %v1699_v32 = vsel %vm6550_vm2, %v4036_v23, 0.0  ;;  %v1700_v34 = vsel %vm1692_vm15, %v4037_v25, 0.0  ;;  %v4078_v23 = vld [vmem:[%s6503_s5 + $0x10] sm:$0xff]  ;;  %v4079_v25 = vld [vmem:[%s6503_s5 + $0x18] sm:$0xff] }
 0x13a   : > { %4471 = vmatmul.mubr.msk.f32.gmra.mrb[6].mxu0 %vm435_vm12, %v1315_v27  ;;  %v4038_v27 = vld [vmem:[%s5820_s23 + $0x40] sm:$0xff] }
 0x13b   : > { %4477 = vmatprep.mubr.msk.f32.mxu0 %vm435_vm12, %v1510_v43  ;;  %v1701_v42 = vsel %vm6548_vm14, %v4038_v27, 0.0  ;;  %vm1879_vm14 = vcmp.eq.s32.totalorder %v5906_v40, 1  ;;  %v2311_v27 = vld [vmem:[%s6503_s5 + $0x8] sm:$0xff] }
 0x13c   : > { %v1883_v57 = vsel %vm1879_vm14, %v4052_v47, 0.0 }
 0x13e   : > { %4478 = vmatmul.mubr.msk.f32.vlgmr.msra.gmra.mrb[0].mxu0 %vm435_vm12, %v1511_v44 }
 0x13f   : > { %4696 = vmatpush3.bf16.msra.mxu0 %v4693_v10  ;;  %4480 = vmatprep.mubr.msk.f32.mxu0 %vm435_vm12, %v1512_v41  ;;  %v5873_v10 = vpop.permute.xlu0 %1687  ;;  %v1703_v41 = vsel %vm6550_vm2, %v4040_v46, 0.0 }
 0x140   : > { %4698 = vmatprep.subr.bf16.mxu0 %v4697_v38  ;;  %6653 = vst [vmem:[#allocation17_spill] sm:$0xff] %v5873_v10  ;;  %vm6549_vm11 = vcmp.eq.s32.totalorder %v5873_v10, 1 }
 0x141   : > { %v1698_v21 = vsel %vm6549_vm11, %v4035_v16, 0.0  ;;  %v1702_v43 = vsel %vm6549_vm11, %v4039_v36, 0.0 }
 0x142   : > { %4481 = vmatmul.mubr.msk.f32.gmra.mrb[2].mxu0 %vm435_vm12, %v1513_v7  ;;  %v5927_v7 = vpop.permute.xlu1 %1876 }
 0x143   : > { %4483 = vmatprep.mubr.msk.f32.mxu0 %vm435_vm12, %v1514_v54  ;;  %v5898_v33 = vpop.permute.xlu0 %1867  ;;  %6658 = vst [vmem:[#allocation22_spill] sm:$0xff] %v5927_v7  ;;  %v4053_v54 = vld [vmem:[%s5820_s23 + $0x29] sm:$0xff]  ;;  %vm1881_vm2 = vcmp.eq.s32.totalorder %v5927_v7, 1 }
 0x144   : > { %6655 = vst [vmem:[#allocation19_spill] sm:$0xff] %v5898_v33  ;;  %vm1878_vm0 = vcmp.eq.s32.totalorder %v5898_v33, 1 }
 0x146   : > { %4484 = vmatmul.mubr.msk.f32.gmra.mrb[4].mxu0 %vm435_vm12, %v1515_v62  ;;  %v4054_v62 = vld [vmem:[%s5820_s23 + $0x31] sm:$0xff] }
 0x147   : > { %4486 = vmatprep.mubr.msk.f32.mxu0 %vm435_vm12, %v1516_v1  ;;  %v5917_v44 = vpop.permute.xlu0 %1873  ;;  %v4055_v1 = vld [vmem:[%s5820_s23 + $0x39] sm:$0xff]  ;;  %v1885_v2 = vsel %vm1881_vm2, %v4054_v62, 0.0 }
 0x148   : > { %6657 = vst [vmem:[#allocation21_spill] sm:$0xff] %v5917_v44  ;;  %vm1880_vm11 = vcmp.eq.s32.totalorder %v5917_v44, 1  ;;  %v1886_v8 = vsel %vm1878_vm0, %v4055_v1, 0.0 }
 0x149   : > { %v1884_v59 = vsel %vm1880_vm11, %v4053_v54, 0.0  ;;  %v1888_v16 = vsel %vm1880_vm11, %v4057_v13, 0.0 }
 0x14a   : > { %4487 = vmatmul.mubr.msk.f32.gmra.mrb[6].mxu0 %vm435_vm12, %v1517_v11  ;;  %v4056_v11 = vld [vmem:[%s5820_s23 + $0x41] sm:$0xff] }
 0x14b   : > { %4493 = vmatprep.mubr.msk.f32.mxu0 %vm435_vm12, %v1696_v14  ;;  %v1887_v14 = vsel %vm1879_vm14, %v4056_v11, 0.0 }
 0x14e   : > { %4494 = vmatmul.mubr.msk.f32.vlgmr.msra.gmra.mrb[0].mxu0 %vm435_vm12, %v1697_v20  ;;  %v4058_v20 = vld [vmem:[%s5820_s23 + $0x51] sm:$0xff] }
 0x14f   : > { %4700 = vmatpush3.bf16.msra.mxu0 %v4697_v38  ;;  %4496 = vmatprep.mubr.msk.f32.mxu0 %vm435_vm12, %v1698_v21  ;;  %v4051_v38 = vld [vmem:[%s5820_s23 + $0x19] sm:$0xff]  ;;  %v1889_v21 = vsel %vm1881_vm2, %v4058_v20, 0.0 }
 0x150   : > { %v1882_v48 = vsel %vm1878_vm0, %v4051_v38, 0.0 }
 0x152   : > { %4497 = vmatmul.mubr.msk.f32.gmra.mrb[2].mxu0 %vm435_vm12, %v1699_v32  ;;  %v4701_v32 = vpack.c.bf16 %v4079_v25, %v4078_v23 }
 0x153   : > { %4499 = vmatprep.mubr.msk.f32.mxu0 %vm435_vm12, %v1700_v34  ;;  %v2310_v34 = vld [vmem:[%s6503_s5] sm:$0xff] }
 0x154   : > { %4702 = vmatprep.subr.bf16.mxu1 %v4701_v32  ;;  %v5970_v36 = vpack.c.bf16 %v2311_v27, %v2310_v34 }
 0x155   : > { %4704 = vmatpush3.bf16.msra.mxu1 %v4701_v32 }
 0x156   : > { %4500 = vmatmul.mubr.msk.f32.gmra.mrb[4].mxu0 %vm435_vm12, %v1701_v42  ;;  %4706 = vmatprep.subr.bf16.mxu1 %v5970_v36  ;;  %v5976_v42 = vld [vmem:[%s6502_s4] ss:$0 sm:$0xff] }
 0x157   : > { %4502 = vmatprep.mubr.msk.f32.mxu0 %vm435_vm12, %v1702_v43 }
 0x15a   : > { %4503 = vmatmul.mubr.msk.f32.gmra.mrb[6].mxu0 %vm435_vm12, %v1703_v41 }
 0x15b   : > { %4509 = vmatprep.mubr.msk.f32.mxu0 %vm435_vm12, %v1882_v48 }
 0x15e   : > { %4510 = vmatmul.mubr.msk.f32.vlgmr.msra.gmra.mrb[0].mxu0 %vm435_vm12, %v1883_v57 }
 0x15f   : > { %4512 = vmatprep.mubr.msk.f32.mxu0 %vm435_vm12, %v1884_v59 }
 0x162   : > { %4513 = vmatmul.mubr.msk.f32.gmra.mrb[2].mxu0 %vm435_vm12, %v1885_v2 }
 0x163   : > { %4515 = vmatprep.mubr.msk.f32.mxu0 %vm435_vm12, %v1886_v8 }
 0x166   : > { %4516 = vmatmul.mubr.msk.f32.gmra.mrb[4].mxu0 %vm435_vm12, %v1887_v14 }
 0x167   : > { %4518 = vmatprep.mubr.msk.f32.mxu0 %vm435_vm12, %v1888_v16 }
 0x16a   : > { %4519 = vmatmul.mubr.msk.f32.gmra.mrb[6].mxu0 %vm435_vm12, %v1889_v21 }
 0x231   : > { %v4511_v43 = vpop.f32.mrb[0].mxu0 }
 0x232   : > { %v2038_v46 = vadd.f32 %v4511_v43, %v5976_v42  ;;  %v1983_v38 = vpop.f32.mrb[1].mxu0 }
 0x233   : > { %v2037_v41 = vadd.f32 %v5976_v42, %v1983_v38 }
 0x234   : > { %v2046_v47 = vmul.f32 0.70710677, %v2038_v46  ;;  %v5992_v13 = vmul.f32 0.5, %v2038_v46 }
 0x235   : > { %v2045_v48 = vmul.f32 0.70710677, %v2037_v41  ;;  %v4514_v54 = vpop.f32.mrb[2].mxu0  ;;  %v6008_v46 = vmul.f32 0.5, %v2037_v41 }
 0x236   : > { %v5980_v57 = vclamps-f32 %v2046_v47, 4.0  ;;  %v2040_v59 = vadd.f32 %v4514_v54, %v5976_v42  ;;  %v1993_v62 = vpop.f32.mrb[3].mxu0 }
 0x237   : > { %v5983_v1 = vclamps-f32 %v2045_v48, 4.0  ;;  %v5986_v2 = vadd.f32 %v5976_v42, %v1993_v62 }
 0x238   : > { %v5990_v8 = vmul.f32 %v5980_v57, %v5980_v57  ;;  %v2048_v11 = vmul.f32 0.70710677, %v2040_v59  ;;  %v6019_v5 = vmul.f32 0.5, %v2040_v59 }
 0x239   : > { %v5996_v14 = vmul.f32 %v5983_v1, %v5983_v1  ;;  %v2047_v16 = vmul.f32 0.70710677, %v5986_v2  ;;  %v4517_v20 = vpop.f32.mrb[4].mxu0 }
 0x23a   : > { %v2078_v21 = vmul.f32 -2.7261424e-10, %v5990_v8  ;;  %v2174_v23 = vmul.f32 -1.45660715e-05, %v5990_v8  ;;  %v6001_v25 = vclamps-f32 %v2048_v11, 4.0  ;;  %v6004_v32 = vadd.f32 %v4517_v20, %v5976_v42  ;;  %v2003_v34 = vpop.f32.mrb[5].mxu0 }
 0x23b   : > { %v2077_v27 = vmul.f32 -2.7261424e-10, %v5996_v14  ;;  %v2173_v43 = vmul.f32 -1.45660715e-05, %v5996_v14  ;;  %v6010_v38 = vclamps-f32 %v2047_v16, 4.0 }
 0x23c   : > { %v2086_v47 = vadd.f32 2.7706815e-08, %v2078_v21  ;;  %v2182_v48 = vadd.f32 -0.00021337405, %v2174_v23  ;;  %v6014_v54 = vmul.f32 %v6001_v25, %v6001_v25  ;;  %v6017_v62 = vmul.f32 0.70710677, %v6004_v32 }
 0x23d   : > { %v2085_v11 = vadd.f32 2.7706815e-08, %v2077_v27  ;;  %v2181_v20 = vadd.f32 -0.00021337405, %v2173_v43  ;;  %v6023_v9 = vmul.f32 %v6010_v38, %v6010_v38  ;;  %v4520_v41 = vpop.f32.mrb[6].mxu0 }
 0x23e   : > { %v2094_v16 = vmul.f32 %v2086_v47, %v5990_v8  ;;  %v2190_v21 = vmul.f32 %v2182_v48, %v5990_v8  ;;  %v2080_v23 = vmul.f32 -2.7261424e-10, %v6014_v54  ;;  %v2176_v7 = vmul.f32 -1.45660715e-05, %v6014_v54  ;;  %v6029_v44 = vpop.f32.mrb[7].mxu0 }
 0x23f   : > { %v2093_v27 = vmul.f32 %v2085_v11, %v5996_v14  ;;  %v2189_v59 = vmul.f32 %v2181_v20, %v5996_v14  ;;  %v2079_v43 = vmul.f32 -2.7261424e-10, %v6023_v9  ;;  %v2175_v40 = vmul.f32 -1.45660715e-05, %v6023_v9 }
 0x240   : > { %v2102_v33 = vadd.f32 -2.101024e-06, %v2094_v16  ;;  %v2198_v15 = vadd.f32 -0.001682827, %v2190_v21  ;;  %v2088_v10 = vadd.f32 2.7706815e-08, %v2080_v23  ;;  %v6036_v47 = vadd.f32 %v5976_v42, %v2003_v34 }
 0x241   : > { %v2101_v48 = vadd.f32 -2.101024e-06, %v2093_v27  ;;  %v2197_v61 = vadd.f32 -0.001682827, %v2189_v59  ;;  %v2184_v52 = vadd.f32 -0.00021337405, %v2176_v7  ;;  %v6039_v30 = vadd.f32 %v4520_v41, %v5976_v42 }
 0x242   : > { %v2110_v11 = vmul.f32 %v2102_v33, %v5990_v8  ;;  %v2206_v20 = vmul.f32 %v2198_v15, %v5990_v8  ;;  %v2096_v35 = vmul.f32 %v2088_v10, %v6014_v54  ;;  %v2087_v24 = vadd.f32 2.7706815e-08, %v2079_v43 }
 0x243   : > { %v2109_v16 = vmul.f32 %v2101_v48, %v5996_v14  ;;  %v2205_v21 = vmul.f32 %v2197_v61, %v5996_v14  ;;  %v2192_v34 = vmul.f32 %v2184_v52, %v6014_v54  ;;  %v2183_v23 = vadd.f32 -0.00021337405, %v2175_v40 }
 0x244   : > { %v2118_v27 = vadd.f32 -5.6925062e-05, %v2110_v11  ;;  %v2214_v59 = vadd.f32 -0.0073733293, %v2206_v20  ;;  %v2104_v7 = vadd.f32 -2.101024e-06, %v2096_v35  ;;  %v2095_v41 = vmul.f32 %v2087_v24, %v6023_v9 }
 0x245   : > { %v2117_v19 = vadd.f32 -5.6925062e-05, %v2109_v16  ;;  %v2213_v63 = vadd.f32 -0.0073733293, %v2205_v21  ;;  %v2200_v33 = vadd.f32 -0.001682827, %v2192_v34  ;;  %v2191_v15 = vmul.f32 %v2183_v23, %v6023_v9 }
 0x246   : > { %v2126_v10 = vmul.f32 %v2118_v27, %v5990_v8  ;;  %v2222_v43 = vmul.f32 %v2214_v59, %v5990_v8  ;;  %v2112_v48 = vmul.f32 %v2104_v7, %v6014_v54  ;;  %v2103_v61 = vadd.f32 -2.101024e-06, %v2095_v41 }
 0x247   : > { %v2125_v52 = vmul.f32 %v2117_v19, %v5996_v14  ;;  %v2221_v40 = vmul.f32 %v2213_v63, %v5996_v14  ;;  %v2208_v35 = vmul.f32 %v2200_v33, %v6014_v54  ;;  %v2199_v11 = vadd.f32 -0.001682827, %v2191_v15 }
 0x248   : > { %v2134_v24 = vadd.f32 -0.00073499064, %v2126_v10  ;;  %v2230_v20 = vadd.f32 -0.014264739, %v2222_v43  ;;  %v2120_v16 = vadd.f32 -5.6925062e-05, %v2112_v48  ;;  %v2111_v21 = vmul.f32 %v2103_v61, %v6023_v9 }
 0x249   : > { %v2133_v34 = vadd.f32 -0.00073499064, %v2125_v52  ;;  %v2229_v23 = vadd.f32 -0.014264739, %v2221_v40  ;;  %v2216_v27 = vadd.f32 -0.0073733293, %v2208_v35  ;;  %v2207_v59 = vmul.f32 %v2199_v11, %v6023_v9 }
 0x24a   : > { %v2142_v7 = vmul.f32 %v2134_v24, %v5990_v8  ;;  %4867 = vrcp.f32 %v2230_v20  ;;  %v2128_v19 = vmul.f32 %v2120_v16, %v6014_v54  ;;  %v2119_v41 = vadd.f32 -5.6925062e-05, %v2111_v21 }
 0x24b   : > { %v2141_v63 = vmul.f32 %v2133_v34, %v5996_v14  ;;  %4869 = vrcp.f32 %v2229_v23  ;;  %v2224_v33 = vmul.f32 %v2216_v27, %v6014_v54  ;;  %v2215_v15 = vadd.f32 -0.0073733293, %v2207_v59 }
 0x24c   : > { %v2150_v10 = vadd.f32 -0.0029546, %v2142_v7  ;;  %v2136_v43 = vadd.f32 -0.00073499064, %v2128_v19  ;;  %v2127_v48 = vmul.f32 %v2119_v41, %v6023_v9  ;;  %v6063_v61 = vclamps-f32 %v6017_v62, 4.0 }
 0x24d   : > { %v2149_v52 = vadd.f32 -0.0029546, %v2141_v63  ;;  %v2232_v40 = vadd.f32 -0.014264739, %v2224_v33  ;;  %v2223_v35 = vmul.f32 %v2215_v15, %v6023_v9  ;;  %v2049_v11 = vmul.f32 0.70710677, %v6036_v47 }
 0x24e   : > { %v2158_v24 = vmul.f32 %v2150_v10, %v5990_v8  ;;  %v2144_v20 = vmul.f32 %v2136_v43, %v6014_v54  ;;  %v2135_v16 = vadd.f32 -0.00073499064, %v2127_v48  ;;  %v6071_v21 = vmul.f32 %v6063_v61, %v6063_v61 }
 0x24f   : > { %v2157_v34 = vmul.f32 %v2149_v52, %v5996_v14  ;;  %4871 = vrcp.f32 %v2232_v40  ;;  %v2231_v62 = vadd.f32 -0.014264739, %v2223_v35  ;;  %v6074_v23 = vclamps-f32 %v2049_v11, 4.0 }
 0x250   : > { %v2166_v27 = vadd.f32 -0.016096033, %v2158_v24  ;;  %v2152_v59 = vadd.f32 -0.0029546, %v2144_v20  ;;  %v2143_v7 = vmul.f32 %v2135_v16, %v6023_v9  ;;  %v2082_v19 = vmul.f32 -2.7261424e-10, %v6071_v21 }
 0x251   : > { %v2165_v8 = vadd.f32 -0.016096033, %v2157_v34  ;;  %4873 = vrcp.f32 %v2231_v62  ;;  %v2178_v41 = vmul.f32 -1.45660715e-05, %v6071_v21  ;;  %v6081_v63 = vmul.f32 %v6074_v23, %v6074_v23 }
 0x252   : > { %v2238_v14 = vmul.f32 %v5980_v57, %v2166_v27  ;;  %v2160_v33 = vmul.f32 %v2152_v59, %v6014_v54  ;;  %v2151_v15 = vadd.f32 -0.0029546, %v2143_v7  ;;  %v2090_v10 = vadd.f32 2.7706815e-08, %v2082_v19 }
 0x253   : > { %v2237_v43 = vmul.f32 %v5983_v1, %v2165_v8  ;;  %v2186_v48 = vadd.f32 -0.00021337405, %v2178_v41  ;;  %v2081_v52 = vmul.f32 -2.7261424e-10, %v6081_v63  ;;  %v2177_v40 = vmul.f32 -1.45660715e-05, %v6081_v63 }
 0x254   : > { %v4868_v35 = vpop.eup %4867  ;;  %v2168_v11 = vadd.f32 -0.016096033, %v2160_v33  ;;  %v2159_v24 = vmul.f32 %v2151_v15, %v6023_v9  ;;  %v2098_v20 = vmul.f32 %v2090_v10, %v6071_v21  ;;  %v6092_v57 = vadd.f32 %v5976_v42, %v6029_v44 }
 0x255   : > { %v4870_v54 = vpop.eup %4869  ;;  %v2248_v16 = vmul.f32 %v4868_v35, %v2238_v14  ;;  %v2194_v34 = vmul.f32 %v2186_v48, %v6071_v21  ;;  %v2089_v1 = vadd.f32 2.7706815e-08, %v2081_v52  ;;  %v2185_v62 = vadd.f32 -0.00021337405, %v2177_v40 }
 0x256   : > { %v2246_v27 = vmul.f32 %v4870_v54, %v2237_v43  ;;  %v2240_v59 = vmul.f32 %v6001_v25, %v2168_v11  ;;  %v2167_v7 = vadd.f32 -0.016096033, %v2159_v24  ;;  %v2106_v19 = vadd.f32 -2.101024e-06, %v2098_v20 }
 0x257   : > { %v2270_v8 = vadd.f32 1.0, %v2248_v16  ;;  %v2202_v41 = vadd.f32 -0.001682827, %v2194_v34  ;;  %v2097_v9 = vmul.f32 %v2089_v1, %v6081_v63  ;;  %v2193_v33 = vmul.f32 %v2185_v62, %v6081_v63 }
 0x258   : > { %v2269_v15 = vadd.f32 1.0, %v2246_v27  ;;  %v2239_v44 = vmul.f32 %v6010_v38, %v2167_v7  ;;  %v2114_v42 = vmul.f32 %v2106_v19, %v6071_v21  ;;  %v2052_v14 = vmul.f32 0.70710677, %v6039_v30 }
 0x259   : > { %v4872_v10 = vpop.eup %4871  ;;  %v2278_v43 = vmul.f32 %v2270_v8, %v5992_v13  ;;  %v2210_v25 = vmul.f32 %v2202_v41, %v6071_v21  ;;  %v2105_v48 = vadd.f32 -2.101024e-06, %v2097_v9  ;;  %v2201_v52 = vadd.f32 -0.001682827, %v2193_v33 }
 0x25a   : > { %v2277_v40 = vmul.f32 %v2269_v15, %v6008_v46  ;;  %v2252_v35 = vmul.f32 %v4872_v10, %v2240_v59  ;;  %v2122_v11 = vadd.f32 -5.6925062e-05, %v2114_v42  ;;  %v6104_v24 = vclamps-f32 %v2052_v14, 4.0 }
 0x25b   : > { %v4874_v20 = vpop.eup %4873  ;;  %2286 = vst.msk [vmem:[#allocation3 + $0x20] sm:$0xff] %vm435_vm12, %v2278_v43  ;;  %v2263_v38 = vmul.f32 0.5, %v5986_v2  ;;  %v2218_v54 = vadd.f32 -0.0073733293, %v2210_v25  ;;  %v2113_v16 = vmul.f32 %v2105_v48, %v6081_v63  ;;  %v2209_v13 = vmul.f32 %v2201_v52, %v6081_v63 }
 0x25c   : > { %2285 = vst.msk [vmem:[#allocation3 + $0x18] sm:$0xff] %vm435_vm12, %v2277_v40  ;;  %v2272_v34 = vadd.f32 1.0, %v2252_v35  ;;  %v2250_v1 = vmul.f32 %v4874_v20, %v2239_v44  ;;  %v2130_v46 = vmul.f32 %v2122_v11, %v6071_v21  ;;  %v6114_v62 = vmul.f32 %v6104_v24, %v6104_v24 }
 0x25d   : > { %v2226_v27 = vmul.f32 %v2218_v54, %v6071_v21  ;;  %v2121_v59 = vadd.f32 -5.6925062e-05, %v2113_v16  ;;  %v2217_v7 = vadd.f32 -0.0073733293, %v2209_v13  ;;  %v2051_v2 = vmul.f32 0.70710677, %v6092_v57 }
 0x25e   : > { %v2280_v19 = vmul.f32 %v2272_v34, %v6019_v5  ;;  %v2271_v8 = vadd.f32 1.0, %v2250_v1  ;;  %v2138_v41 = vadd.f32 -0.00073499064, %v2130_v46  ;;  %v2084_v9 = vmul.f32 -2.7261424e-10, %v6114_v62 }
 0x25f   : > { %v2234_v33 = vadd.f32 -0.014264739, %v2226_v27  ;;  %v2129_v15 = vmul.f32 %v2121_v59, %v6081_v63  ;;  %v2225_v44 = vmul.f32 %v2217_v7, %v6081_v63  ;;  %v2180_v42 = vmul.f32 -1.45660715e-05, %v6114_v62 }
 0x260   : > { %2288 = vst.msk [vmem:[#allocation3 + $0x30] sm:$0xff] %vm435_vm12, %v2280_v19  ;;  %v2279_v14 = vmul.f32 %v2271_v8, %v2263_v38  ;;  %v2146_v10 = vmul.f32 %v2138_v41, %v6071_v21  ;;  %v2092_v43 = vadd.f32 2.7706815e-08, %v2084_v9  ;;  %v6125_v25 = vclamps-f32 %v2051_v2, 4.0 }
 0x261   : > { %4875 = vrcp.f32 %v2234_v33  ;;  %v2137_v5 = vadd.f32 -0.00073499064, %v2129_v15  ;;  %v2233_v48 = vadd.f32 -0.014264739, %v2225_v44  ;;  %v2188_v52 = vadd.f32 -0.00021337405, %v2180_v42 }
 0x262   : > { %2287 = vst.msk [vmem:[#allocation3 + $0x28] sm:$0xff] %vm435_vm12, %v2279_v14  ;;  %v2154_v40 = vadd.f32 -0.0029546, %v2146_v10  ;;  %v2100_v35 = vmul.f32 %v2092_v43, %v6114_v62  ;;  %v2075_v11 = vmul.f32 %v6125_v25, %v6125_v25 }
 0x263   : > { %v2145_v20 = vmul.f32 %v2137_v5, %v6081_v63  ;;  %4877 = vrcp.f32 %v2233_v48  ;;  %v2196_v38 = vmul.f32 %v2188_v52, %v6114_v62 }
 0x264   : > { %v2162_v54 = vmul.f32 %v2154_v40, %v6071_v21  ;;  %v2108_v16 = vadd.f32 -2.101024e-06, %v2100_v35  ;;  %v2083_v13 = vmul.f32 -2.7261424e-10, %v2075_v11  ;;  %v2179_v46 = vmul.f32 -1.45660715e-05, %v2075_v11 }
 0x265   : > { %v2153_v34 = vadd.f32 -0.0029546, %v2145_v20  ;;  %v2204_v1 = vadd.f32 -0.001682827, %v2196_v38 }
 0x266   : > { %v2170_v27 = vadd.f32 -0.016096033, %v2162_v54  ;;  %v2116_v59 = vmul.f32 %v2108_v16, %v6114_v62  ;;  %v2091_v7 = vadd.f32 2.7706815e-08, %v2083_v13  ;;  %v2187_v8 = vadd.f32 -0.00021337405, %v2179_v46 }
 0x267   : > { %v2161_v2 = vmul.f32 %v2153_v34, %v6081_v63  ;;  %v2212_v19 = vmul.f32 %v2204_v1, %v6114_v62  ;;  %v2265_v1 = vmul.f32 0.5, %v6036_v47 }
 0x268   : > { %v2242_v41 = vmul.f32 %v6063_v61, %v2170_v27  ;;  %v2124_v9 = vadd.f32 -5.6925062e-05, %v2116_v59  ;;  %v2099_v33 = vmul.f32 %v2091_v7, %v2075_v11  ;;  %v2195_v44 = vmul.f32 %v2187_v8, %v2075_v11 }
 0x269   : > { %v2169_v15 = vadd.f32 -0.016096033, %v2161_v2  ;;  %v2220_v21 = vadd.f32 -0.0073733293, %v2212_v19  ;;  %v2266_v61 = vmul.f32 0.5, %v6004_v32 }
 0x26a   : > { %v2132_v42 = vmul.f32 %v2124_v9, %v6114_v62  ;;  %v2107_v14 = vadd.f32 -2.101024e-06, %v2099_v33  ;;  %v2203_v48 = vadd.f32 -0.001682827, %v2195_v44 }
 0x26b   : > { %v4876_v10 = vpop.eup %4875  ;;  %v2241_v43 = vmul.f32 %v6074_v23, %v2169_v15  ;;  %v2228_v5 = vmul.f32 %v2220_v21, %v6114_v62 }
 0x26c   : > { %v2256_v63 = vmul.f32 %v4876_v10, %v2242_v41  ;;  %v2140_v52 = vadd.f32 -0.00073499064, %v2132_v42  ;;  %v2115_v40 = vmul.f32 %v2107_v14, %v2075_v11  ;;  %v2211_v38 = vmul.f32 %v2203_v48, %v2075_v11 }
 0x26d   : > { %v4878_v35 = vpop.eup %4877  ;;  %v2236_v20 = vadd.f32 -0.014264739, %v2228_v5  ;;  %v2268_v10 = vmul.f32 0.5, %v6039_v30  ;;  %v4097_v30 = vld [vmem:[%s6503_s5 + $0x28] sm:$0xff] }
 0x26e   : > { %v2274_v54 = vadd.f32 1.0, %v2256_v63  ;;  %v2254_v16 = vmul.f32 %v4878_v35, %v2241_v43  ;;  %v2148_v13 = vmul.f32 %v2140_v52, %v6114_v62  ;;  %v2123_v34 = vadd.f32 -5.6925062e-05, %v2115_v40 }
 0x26f   : > { %4879 = vrcp.f32 %v2236_v20  ;;  %v2219_v23 = vadd.f32 -0.0073733293, %v2211_v38  ;;  %v2267_v52 = vmul.f32 0.5, %v6092_v57 }
 0x270   : > { %v2282_v46 = vmul.f32 %v2274_v54, %v2266_v61  ;;  %v2273_v27 = vadd.f32 1.0, %v2254_v16  ;;  %v2156_v59 = vadd.f32 -0.0029546, %v2148_v13  ;;  %v2131_v7 = vmul.f32 %v2123_v34, %v2075_v11 }
 0x271   : > { %v2227_v2 = vmul.f32 %v2219_v23, %v2075_v11 }
 0x272   : > { %2290 = vst.msk [vmem:[#allocation3 + $0x40] sm:$0xff] %vm435_vm12, %v2282_v46  ;;  %v2281_v19 = vmul.f32 %v2273_v27, %v2265_v1  ;;  %v2164_v32 = vmul.f32 %v2156_v59, %v6114_v62  ;;  %v2139_v8 = vadd.f32 -0.00073499064, %v2131_v7 }
 0x273   : > { %v2235_v41 = vadd.f32 -0.014264739, %v2227_v2 }
 0x274   : > { %2289 = vst.msk [vmem:[#allocation3 + $0x38] sm:$0xff] %vm435_vm12, %v2281_v19  ;;  %v2172_v9 = vadd.f32 -0.016096033, %v2164_v32  ;;  %v2147_v33 = vmul.f32 %v2139_v8, %v2075_v11  ;;  %v3635_v32 = vstv %s4988_s14  ;;  %v6659_v8 = vlaneseq }
 0x275   : > { %4881 = vrcp.f32 %v2235_v41 }
 0x276   : > { %v2244_v47 = vmul.f32 %v6104_v24, %v2172_v9  ;;  %v2155_v15 = vadd.f32 -0.0029546, %v2147_v33  ;;  %v3634_v41 = vand.u32 127, %v6659_v8  ;;  %v4713_v9 = vpack.c.bf16 %v4107_v51, %v4106_v56  ;;  %v3637_v33 = vld [vmem:[%s6505_s7] sm:$0x3] }
 0x278   : > { %v2163_v21 = vmul.f32 %v2155_v15, %v2075_v11  ;;  %v4096_v11 = vld [vmem:[%s6503_s5 + $0x20] sm:$0xff] }
 0x279   : > { %v4880_v44 = vpop.eup %4879  ;;  %v4709_v20 = vpack.c.bf16 %v4097_v30, %v4096_v11 }
 0x27a   : > { %v2260_v42 = vmul.f32 %v4880_v44, %v2244_v47  ;;  %v2171_v14 = vadd.f32 -0.016096033, %v2163_v21 }
 0x27b   : > { %v2735_v56 = vld [vmem:[#allocation3 + $0x37] sm:$0xff] }
 0x27c   : > { %v2276_v43 = vadd.f32 1.0, %v2260_v42  ;;  %v2243_v62 = vmul.f32 %v6125_v25, %v2171_v14 }
 0x27e   : > { %v2284_v5 = vmul.f32 %v2276_v43, %v2268_v10 }
 0x27f   : > { %v4882_v48 = vpop.eup %4881 }
 0x280   : > { %2292 = vst.msk [vmem:[#allocation3 + $0x50] sm:$0xff] %vm435_vm12, %v2284_v5  ;;  %v2258_v63 = vmul.f32 %v4882_v48, %v2243_v62 }
 0x282   : > { %v2275_v40 = vadd.f32 1.0, %v2258_v63 }
 0x284   : > { %v2283_v24 = vmul.f32 %v2275_v40, %v2267_v52 }
 0x286   : > { %2291 = vst.msk [vmem:[#allocation3 + $0x48] sm:$0xff] %vm435_vm12, %v2283_v24  ;;  %v4116_v24 = vld [vmem:[%s6503_s5 + $0x40] sm:$0xff] }
 0x28d   : > { %v2313_v25 = vld [vmem:[%s2312_s25] sm:$0xff]  ;;  %v2314_v61 = vld [vmem:[%s2312_s25 + $0x8] sm:$0xff]  ;;  %v2315_v57 = vld [vmem:[%s2312_s25 + $0x10] sm:$0xff] }
 0x28e   : > { %v2321_v35 = vsel %vm420_vm5, %v2313_v25, 0.0  ;;  %v2322_v38 = vsel %vm421_vm8, %v2314_v61, 0.0  ;;  %v2323_v54 = vsel %vm422_vm13, %v2315_v57, 0.0  ;;  %v2316_v16 = vld [vmem:[%s2312_s25 + $0x18] sm:$0xff]  ;;  %v2317_v13 = vld [vmem:[%s2312_s25 + $0x20] sm:$0xff]  ;;  %v2318_v23 = vld [vmem:[%s2312_s25 + $0x28] sm:$0xff]  ;;  %v4717_v25 = vpack.c.bf16 %v4117_v3, %v4116_v24 }
 0x28f   : > { %4525 = vmatprep.mubr.msk.f32.mxu1 %vm435_vm12, %v2321_v35  ;;  %v2324_v34 = vsel %vm423_vm10, %v2316_v16, 0.0  ;;  %v2325_v1 = vsel %vm420_vm5, %v2317_v13, 0.0  ;;  %v2319_v46 = vld [vmem:[%s2312_s25 + $0x30] sm:$0xff]  ;;  %v2320_v59 = vld [vmem:[%s2312_s25 + $0x38] sm:$0xff]  ;;  %v2294_v50 = vld [vmem:[%s6185_s11] sm:$0xff]  ;;  %vm3639_vm5 = vcmask 9216  }
 0x290   : > { %4526 = vmatmul.mubr.msk.f32.vlgmr.msra.gmra.mrb[0].mxu1 %vm435_vm12, %v2322_v38  ;;  %v2327_v27 = vsel %vm422_vm13, %v2319_v46, 0.0  ;;  %v2328_v7 = vsel %vm423_vm10, %v2320_v59, 0.0  ;;  %v2295_v2 = vld [vmem:[%s6185_s11 + $0x8] sm:$0xff]  ;;  %v2302_v19 = vsel %vm364_vm7, %v2294_v50, 0.0  ;;  %v2296_v55 = vld [vmem:[%s6185_s11 + $0x10] sm:$0xff]  ;;  %vm3636_vm13 = vcmp.eq.s32.totalorder %v3634_v41, %v3635_v32  ;;  %v2297_v21 = vld [vmem:[%s6185_s11 + $0x18] sm:$0xff] }
 0x291   : > { %4708 = vmatpush3.bf16.msra.mxu1 %v5970_v36  ;;  %4528 = vmatprep.mubr.msk.f32.mxu1 %vm435_vm12, %v2323_v54  ;;  %v2326_v36 = vsel %vm421_vm8, %v2318_v23, 0.0  ;;  %v2303_v47 = vsel %vm365_vm4, %v2295_v2, 0.0  ;;  %v2304_v15 = vsel %vm366_vm3, %v2296_v55, 0.0  ;;  %v3638_v44 = vsel %vm3636_vm13, %v3637_v33, 0.0  ;;  %v2298_v42 = vld [vmem:[%s6185_s11 + $0x20] sm:$0xff]  ;;  %v2299_v62 = vld [vmem:[%s6185_s11 + $0x28] sm:$0xff] }
 0x292   : > { %4710 = vmatprep.subr.bf16.mxu1 %v4709_v20  ;;  %v3640_v14 = vsel %vm3639_vm5, %v3638_v44, 0.0  ;;  %v2305_v10 = vsel %vm367_vm1, %v2297_v21, 0.0  ;;  %v2306_v43 = vsel %vm364_vm7, %v2298_v42, 0.0  ;;  %v2300_v5 = vld [vmem:[%s6185_s11 + $0x30] sm:$0xff]  ;;  %v2307_v48 = vsel %vm365_vm4, %v2299_v62, 0.0  ;;  %v2301_v52 = vld [vmem:[%s6185_s11 + $0x38] sm:$0xff] }
 0x293   : > { %3641 = vadd.xlane.f32.xlu0 %v3640_v14  ;;  %v2308_v63 = vsel %vm366_vm3, %v2300_v5, 0.0  ;;  %v2583_v40 = vld [vmem:[%s2582_s9] sm:$0xff]  ;;  %v2309_v0 = vsel %vm367_vm1, %v2301_v52, 0.0  ;;  %v2584_v11 = vld [vmem:[%s2582_s9 + $0x8] sm:$0xff]  ;;  %v2585_v30 = vld [vmem:[%s2582_s9 + $0x10] sm:$0xff]  ;;  %vm6660_vm8 = vcmp.eq.s32.totalorder %v5644_v37, 1 }
 0x294   : > { %4529 = vmatmul.mubr.msk.f32.gmra.mrb[2].mxu1 %vm435_vm12, %v2324_v34  ;;  %v2591_v12 = vsel %vm740_vm9, %v2583_v40, 0.0  ;;  %v2592_v18 = vsel %vm741_vm6, %v2584_v11, 0.0  ;;  %v2593_v35 = vsel %vm6660_vm8, %v2585_v30, 0.0  ;;  %v2586_v61 = vld [vmem:[%s2582_s9 + $0x18] sm:$0xff]  ;;  %v2587_v57 = vld [vmem:[%s2582_s9 + $0x20] sm:$0xff]  ;;  %vm6661_vm10 = vcmp.eq.s32.totalorder %v5660_v45, 1  ;;  %vm6662_vm7 = vmmov %vm6660_vm8 }
 0x295   : > { %4531 = vmatprep.mubr.msk.f32.mxu1 %vm435_vm12, %v2325_v1  ;;  %v2595_v38 = vsel %vm740_vm9, %v2587_v57, 0.0  ;;  %v2588_v54 = vld [vmem:[%s2582_s9 + $0x28] sm:$0xff]  ;;  %v2589_v16 = vld [vmem:[%s2582_s9 + $0x30] sm:$0xff]  ;;  %v2590_v1 = vld [vmem:[%s2582_s9 + $0x38] sm:$0xff]  ;;  %vm6664_vm3 = vcmp.eq.s32.totalorder %v5675_v49, 1  ;;  %vm6665_vm1 = vcmp.eq.s32.totalorder %v5683_v53, 1 }
 0x296   : > { %v2596_v13 = vsel %vm741_vm6, %v2588_v54, 0.0  ;;  %v2597_v34 = vsel %vm6662_vm7, %v2589_v16, 0.0  ;;  %v2731_v23 = vld [vmem:[#allocation3 + $0x17] sm:$0xff]  ;;  %vm6663_vm4 = vmmov %vm6661_vm10  ;;  %v4126_v46 = vld [vmem:[%s6503_s5 + $0x50] sm:$0xff]  ;;  %vm6666_vm9 = vcmp.eq.s32.totalorder %v5693_v60, 1  ;;  %vm6667_vm6 = vcmp.eq.s32.totalorder %v5708_v4, 1 }
 0x297   : > { %v2598_v31 = vsel %vm6663_vm4, %v2590_v1, 0.0  ;;  %v2739_v37 = vsel %vm6664_vm3, %v2731_v23, 0.0  ;;  %v4721_v59 = vpack.c.bf16 %v4127_v29, %v4126_v46  ;;  %vm6668_vm5 = vmmov %vm6664_vm3  ;;  %v2737_v32 = vld [vmem:[#allocation3 + $0x47] sm:$0xff]  ;;  %v2738_v41 = vld [vmem:[#allocation3 + $0x4f] sm:$0xff]  ;;  %vm6672_vm7 = vcmp.eq.s32.totalorder %v5720_v17, 1 }
 0x298   : > { %4532 = vmatmul.mubr.msk.f32.gmra.mrb[4].mxu1 %vm435_vm12, %v2326_v36  ;;  %v2732_v36 = vld [vmem:[#allocation3 + $0x1f] sm:$0xff]  ;;  %v2743_v2 = vsel %vm6668_vm5, %v2735_v56, 0.0  ;;  %vm6669_vm13 = vmmov %vm6665_vm1  ;;  %v4144_v33 = vld [vmem:[%s6503_s5 + $0x60] sm:$0xff]  ;;  %vm6673_vm4 = vcmp.eq.s32.totalorder %v5726_v22, 1  ;;  %vm6674_vm3 = vcmp.eq.s32.totalorder %v5735_v26, 1 }
 0x299   : > { %4534 = vmatprep.mubr.msk.f32.mxu1 %vm435_vm12, %v2327_v27  ;;  %v2733_v27 = vld [vmem:[#allocation3 + $0x27] sm:$0xff]  ;;  %v2740_v45 = vsel %vm6665_vm1, %v2732_v36, 0.0  ;;  %vm6670_vm8 = vmmov %vm6666_vm9  ;;  %v4145_v53 = vld [vmem:[%s6503_s5 + $0x68] sm:$0xff]  ;;  %vm6675_vm1 = vcmp.eq.s32.totalorder %v5750_v28, 1 }
 0x29a   : > { %v2741_v50 = vsel %vm6666_vm9, %v2733_v27, 0.0  ;;  %v2745_v8 = vsel %vm6670_vm8, %v2737_v32, 0.0  ;;  %v4725_v21 = vpack.c.bf16 %v4145_v53, %v4144_v33  ;;  %v2882_v42 = vld [vmem:[#allocation3 + $0x30] sm:$0xff]  ;;  %v2883_v14 = vld [vmem:[#allocation3 + $0x38] sm:$0xff]  ;;  %vm6676_vm9 = vmmov %vm6672_vm7  ;;  %vm6680_vm8 = vcmp.eq.s32.totalorder %v5762_v39, 1 }
 0x29b   : > { %v2884_v62 = vld [vmem:[#allocation3 + $0x40] sm:$0xff]  ;;  %v2885_v5 = vld [vmem:[#allocation3 + $0x48] sm:$0xff]  ;;  %vm6678_vm5 = vmmov %vm6674_vm3 }
 0x29c   : > { %4535 = vmatmul.mubr.msk.f32.gmra.mrb[6].mxu1 %vm435_vm12, %v2328_v7  ;;  %v2734_v7 = vld [vmem:[#allocation3 + $0x2f] sm:$0xff]  ;;  %v3027_v40 = vld [vmem:[#allocation3 + $0x19] sm:$0xff]  ;;  %v3028_v24 = vld [vmem:[#allocation3 + $0x21] sm:$0xff] }
 0x29d   : > { %4541 = vmatprep.mubr.msk.f32.mxu1 %vm435_vm12, %v2302_v19  ;;  %v2742_v51 = vsel %vm6667_vm6, %v2734_v7, 0.0  ;;  %v2736_v19 = vld [vmem:[#allocation3 + $0x3f] sm:$0xff]  ;;  %v2886_v52 = vld [vmem:[#allocation3 + $0x50] sm:$0xff]  ;;  %v4163_v22 = vld [vmem:[%s6503_s5 + $0x78] sm:$0xff]  ;;  %v3035_v26 = vsel %vm6680_vm8, %v3027_v40, 0.0 }
 0x29e   : > { %v2744_v55 = vsel %vm6669_vm13, %v2736_v19, 0.0  ;;  %vm6679_vm13 = vmmov %vm6675_vm1  ;;  %v3029_v3 = vld [vmem:[#allocation3 + $0x29] sm:$0xff]  ;;  %v3030_v30 = vld [vmem:[#allocation3 + $0x31] sm:$0xff] }
 0x29f   : > { %v2894_v17 = vsel %vm6679_vm13, %v2886_v52, 0.0  ;;  %v3032_v57 = vld [vmem:[#allocation3 + $0x41] sm:$0xff]  ;;  %v3034_v16 = vld [vmem:[#allocation3 + $0x51] sm:$0xff]  ;;  %v4172_v52 = vld [vmem:[%s6353_s28 + $0x19] sm:$0xff] }
 0x2a0   : > { %4542 = vmatmul.mubr.msk.f32.vlgmr.msra.gmra.mrb[0].mxu1 %vm435_vm12, %v2303_v47  ;;  %v2880_v47 = vld [vmem:[#allocation3 + $0x20] sm:$0xff]  ;;  %v6691_v29 = vld [vmem:[#allocation12_spill] sm:$0xff]  ;;  %v4156_v53 = vld [vmem:[%s6353_s28 + $0x28] sm:$0xff] }
 0x2a1   : > { %4712 = vmatpush3.bf16.msra.mxu1 %v4709_v20  ;;  %4544 = vmatprep.mubr.msk.f32.mxu1 %vm435_vm12, %v2304_v15  ;;  %v2594_v20 = vsel %vm6661_vm10, %v2586_v61, 0.0  ;;  %vm6671_vm10 = vmmov %vm6667_vm6  ;;  %v2881_v15 = vld [vmem:[#allocation3 + $0x28] sm:$0xff]  ;;  %v2888_v4 = vsel %vm6673_vm4, %v2880_v47, 0.0  ;;  %v6689_v1 = vld [vmem:[#allocation11_spill] sm:$0xff]  ;;  %vm6692_vm13 = vcmp.eq.s32.totalorder %v6691_v29, 1 }
 0x2a2   : > { %4714 = vmatprep.subr.bf16.mxu1 %v4713_v9  ;;  %v2746_v49 = vsel %vm6671_vm10, %v2738_v41, 0.0  ;;  %v2889_v44 = vsel %vm6674_vm3, %v2881_v15, 0.0  ;;  %vm6677_vm6 = vmmov %vm6673_vm4  ;;  %vm6681_vm10 = vcmp.eq.s32.totalorder %v5768_v6, 1  ;;  %v4136_v39 = vld [vmem:[%s6353_s28 + $0x17] sm:$0xff]  ;;  %v6704_v15 = vld [vmem:[#allocation17_spill] sm:$0xff] }
 0x2a3   : > { %v3036_v28 = vsel %vm6681_vm10, %v3028_v24, 0.0  ;;  %vm6685_vm3 = vmmov %vm6680_vm8  ;;  %v6702_v47 = vld [vmem:[#allocation16_spill] sm:$0xff]  ;;  %v4174_v24 = vld [vmem:[%s6353_s28 + $0x29] sm:$0xff] }
 0x2a4   : > { %4545 = vmatmul.mubr.msk.f32.gmra.mrb[8].mxu1 %vm435_vm12, %v2305_v10  ;;  %v2890_v10 = vsel %vm6675_vm1, %v2882_v42, 0.0  ;;  %vm6686_vm1 = vmmov %vm6681_vm10  ;;  %v6706_v42 = vld [vmem:[#allocation18_spill] sm:$0xff] }
 0x2a5   : > { %4547 = vmatprep.mubr.msk.f32.mxu1 %vm435_vm12, %v2306_v43  ;;  %v2891_v43 = vsel %vm6676_vm9, %v2883_v14, 0.0 }
 0x2a8   : > { %4548 = vmatmul.mubr.msk.f32.gmra.mrb[4].mxu1 %vm435_vm12, %v2307_v48  ;;  %v2892_v48 = vsel %vm6677_vm6, %v2884_v62, 0.0  ;;  %v4160_v62 = vld [vmem:[%s6353_s28 + $0x48] sm:$0xff] }
 0x2a9   : > { %4550 = vmatprep.mubr.msk.f32.mxu1 %vm435_vm12, %v2308_v63  ;;  %v2893_v63 = vsel %vm6678_vm5, %v2885_v5, 0.0  ;;  %vm6690_vm5 = vcmp.eq.s32.totalorder %v6689_v1, 1 }
 0x2aa   : > { %v3184_v23 = vsel %vm6690_vm5, %v4136_v39, 0.0 }
 0x2ac   : > { %4551 = vmatmul.mubr.msk.f32.gmra.mrb[10].mxu1 %vm435_vm12, %v2309_v0  ;;  %v4162_v0 = vld [vmem:[%s6503_s5 + $0x70] sm:$0xff] }
 0x2ad   : > { %4557 = vmatprep.mubr.msk.f32.mxu1 %vm435_vm12, %v2591_v12  ;;  %v4729_v11 = vpack.c.bf16 %v4163_v22, %v4162_v0  ;;  %v3482_v22 = vsel %vm1878_vm0, %v4172_v52, 0.0 }
 0x2b0   : > { %4558 = vmatmul.mubr.msk.f32.vlgmr.msra.gmra.mrb[0].mxu1 %vm435_vm12, %v2592_v18  ;;  %v6683_v18 = vld [vmem:[#allocation10_spill] sm:$0xff] }
 0x2b1   : > { %4716 = vmatpush3.bf16.msra.mxu1 %v4713_v9  ;;  %4560 = vmatprep.mubr.msk.f32.mxu1 %vm435_vm12, %v2593_v35  ;;  %v2879_v9 = vld [vmem:[#allocation3 + $0x18] sm:$0xff]  ;;  %vm6684_vm4 = vcmp.eq.s32.totalorder %v6683_v18, 1 }
 0x2b2   : > { %4718 = vmatprep.subr.bf16.mxu1 %v4717_v25  ;;  %v2887_v60 = vsel %vm6672_vm7, %v2879_v9, 0.0  ;;  %vm6682_vm7 = vcmp.eq.s32.totalorder %v5777_v58, 1  ;;  %v3038_v35 = vsel %vm6684_vm4, %v3030_v30, 0.0  ;;  %vm6688_vm6 = vmmov %vm6684_vm4  ;;  %v4181_v58 = vld [vmem:[%s6503_s5 + $0x88] sm:$0xff]  ;;  %v4155_v9 = vld [vmem:[%s6353_s28 + $0x20] sm:$0xff] }
 0x2b3   : > { %v3037_v12 = vsel %vm6682_vm7, %v3029_v3, 0.0  ;;  %vm6687_vm9 = vmmov %vm6682_vm7  ;;  %v3042_v6 = vsel %vm6688_vm6, %v3034_v16, 0.0  ;;  %vm6705_vm6 = vcmp.eq.s32.totalorder %v6704_v15, 1  ;;  %v4176_v30 = vld [vmem:[%s6353_s28 + $0x39] sm:$0xff] }
 0x2b4   : > { %4561 = vmatmul.mubr.msk.f32.gmra.mrb[12].mxu1 %vm435_vm12, %v2594_v20  ;;  %v3033_v20 = vld [vmem:[#allocation3 + $0x49] sm:$0xff]  ;;  %vm6697_vm7 = vmmov %vm6690_vm5  ;;  %vm6707_vm5 = vcmp.eq.s32.totalorder %v6706_v42, 1 }
 0x2b5   : > { %4563 = vmatprep.mubr.msk.f32.mxu1 %vm435_vm12, %v2595_v38  ;;  %v3040_v38 = vsel %vm6686_vm1, %v3032_v57, 0.0  ;;  %v3041_v54 = vsel %vm6687_vm9, %v3033_v20, 0.0  ;;  %vm6698_vm4 = vmmov %vm6692_vm13  ;;  %vm6703_vm9 = vcmp.eq.s32.totalorder %v6702_v47, 1  ;;  %v4178_v57 = vld [vmem:[%s6353_s28 + $0x49] sm:$0xff]  ;;  %v4190_v42 = vld [vmem:[%s6504_s6] ss:$0 sm:$0xff] }
 0x2b8   : > { %4564 = vmatmul.mubr.msk.f32.gmra.mrb[4].mxu1 %vm435_vm12, %v2596_v13  ;;  %v4180_v13 = vld [vmem:[%s6503_s5 + $0x80] sm:$0xff] }
 0x2b9   : > { %4566 = vmatprep.mubr.msk.f32.mxu1 %vm435_vm12, %v2597_v34  ;;  %v4137_v34 = vld [vmem:[%s6353_s28 + $0x1f] sm:$0xff]  ;;  %v4733_v46 = vpack.c.bf16 %v4181_v58, %v4180_v13 }
 0x2ba   : > { %v3185_v36 = vsel %vm6692_vm13, %v4137_v34, 0.0  ;;  %vm6708_vm13 = vmmov %vm6703_vm9 }
 0x2bc   : > { %4567 = vmatmul.mubr.msk.f32.gmra.mrb[14].mxu1 %vm435_vm12, %v2598_v31  ;;  %v4138_v31 = vld [vmem:[%s6353_s28 + $0x27] sm:$0xff] }
 0x2bd   : > { %4573 = vmatprep.mubr.msk.f32.mxu1 %vm435_vm12, %v2739_v37  ;;  %v6693_v37 = vld [vmem:[#allocation13_spill] sm:$0xff] }
 0x2be   : > { %vm6694_vm8 = vcmp.eq.s32.totalorder %v6693_v37, 1 }
 0x2bf   : > { %v3186_v27 = vsel %vm6694_vm8, %v4138_v31, 0.0 }
 0x2c0   : > { %4574 = vmatmul.mubr.msk.f32.vlgmr.msra.gmra.mrb[0].mxu1 %vm435_vm12, %v2740_v45  ;;  %v4140_v45 = vld [vmem:[%s6353_s28 + $0x37] sm:$0xff] }
 0x2c1   : > { %4720 = vmatpush3.bf16.msra.mxu1 %v4717_v25  ;;  %4576 = vmatprep.mubr.msk.f32.mxu1 %vm435_vm12, %v2741_v50  ;;  %v3031_v25 = vld [vmem:[#allocation3 + $0x39] sm:$0xff]  ;;  %v3188_v56 = vsel %vm6697_vm7, %v4140_v45, 0.0 }
 0x2c2   : > { %4722 = vmatprep.subr.bf16.mxu1 %v4721_v59  ;;  %v3039_v61 = vsel %vm6685_vm3, %v3031_v25, 0.0  ;;  %v6695_v50 = vld [vmem:[#allocation14_spill] sm:$0xff]  ;;  %vm6699_vm3 = vmmov %vm6694_vm8  ;;  %v3661_v25 = vld [vmem:[%s6500_s2] sm:$0xff] (!%p3954_p13) }
 0x2c3   : > { %vm6696_vm10 = vcmp.eq.s32.totalorder %v6695_v50, 1  ;;  %vm6709_vm8 = vmmov %vm6705_vm6 }
 0x2c4   : > { %4577 = vmatmul.mubr.msk.f32.gmra.mrb[16].mxu1 %vm435_vm12, %v2742_v51  ;;  %v4141_v51 = vld [vmem:[%s6353_s28 + $0x3f] sm:$0xff]  ;;  %vm6700_vm1 = vmmov %vm6696_vm10 }
 0x2c5   : > { %4579 = vmatprep.mubr.msk.f32.mxu1 %vm435_vm12, %v2743_v2  ;;  %v4142_v2 = vld [vmem:[%s6353_s28 + $0x47] sm:$0xff]  ;;  %v3189_v19 = vsel %vm6698_vm4, %v4141_v51, 0.0 }
 0x2c6   : > { %v3190_v32 = vsel %vm6699_vm3, %v4142_v2, 0.0 }
 0x2c8   : > { %4580 = vmatmul.mubr.msk.f32.gmra.mrb[4].mxu1 %vm435_vm12, %v2744_v55  ;;  %v4143_v55 = vld [vmem:[%s6353_s28 + $0x4f] sm:$0xff] }
 0x2c9   : > { %4582 = vmatprep.mubr.msk.f32.mxu1 %vm435_vm12, %v2745_v8  ;;  %v4154_v8 = vld [vmem:[%s6353_s28 + $0x18] sm:$0xff]  ;;  %v3191_v41 = vsel %vm6700_vm1, %v4143_v55, 0.0 }
 0x2ca   : > { %v3333_v33 = vsel %vm1692_vm15, %v4154_v8, 0.0 }
 0x2cc   : > { %4583 = vmatmul.mubr.msk.f32.gmra.mrb[18].mxu1 %vm435_vm12, %v2746_v49 }
 0x2cd   : > { %4589 = vmatprep.mubr.msk.f32.mxu1 %vm435_vm12, %v2887_v60  ;;  %v3334_v60 = vsel %vm6703_vm9, %v4155_v9, 0.0 }
 0x2d0   : > { %4590 = vmatmul.mubr.msk.f32.vlgmr.msra.gmra.mrb[0].mxu1 %vm435_vm12, %v2888_v4  ;;  %v4157_v4 = vld [vmem:[%s6353_s28 + $0x30] sm:$0xff] }
 0x2d1   : > { %4724 = vmatpush3.bf16.msra.mxu1 %v4721_v59  ;;  %4592 = vmatprep.mubr.msk.f32.mxu1 %vm435_vm12, %v2889_v44  ;;  %v4139_v59 = vld [vmem:[%s6353_s28 + $0x2f] sm:$0xff]  ;;  %v4158_v44 = vld [vmem:[%s6353_s28 + $0x38] sm:$0xff]  ;;  %v3336_v14 = vsel %vm6707_vm5, %v4157_v4, 0.0 }
 0x2d2   : > { %4726 = vmatprep.subr.bf16.mxu1 %v4725_v21  ;;  %v3187_v7 = vsel %vm6696_vm10, %v4139_v59, 0.0 }
 0x2d4   : > { %4593 = vmatmul.mubr.msk.f32.gmra.mrb[20].mxu1 %vm435_vm12, %v2890_v10  ;;  %v3337_v10 = vsel %vm1692_vm15, %v4158_v44, 0.0  ;;  %vm6710_vm15 = vmmov %vm6707_vm5 }
 0x2d5   : > { %4595 = vmatprep.mubr.msk.f32.mxu1 %vm435_vm12, %v2891_v43  ;;  %v4159_v43 = vld [vmem:[%s6353_s28 + $0x40] sm:$0xff] }
 0x2d6   : > { %v3338_v5 = vsel %vm6708_vm13, %v4159_v43, 0.0 }
 0x2d8   : > { %4596 = vmatmul.mubr.msk.f32.gmra.mrb[4].mxu1 %vm435_vm12, %v2892_v48  ;;  %v3339_v48 = vsel %vm6709_vm8, %v4160_v62, 0.0 }
 0x2d9   : > { %4598 = vmatprep.mubr.msk.f32.mxu1 %vm435_vm12, %v2893_v63  ;;  %v4161_v63 = vld [vmem:[%s6353_s28 + $0x50] sm:$0xff] }
 0x2da   : > { %v3340_v40 = vsel %vm6710_vm15, %v4161_v63, 0.0 }
 0x2dc   : > { %4599 = vmatmul.mubr.msk.f32.gmra.mrb[22].mxu1 %vm435_vm12, %v2894_v17  ;;  %v4173_v17 = vld [vmem:[%s6353_s28 + $0x21] sm:$0xff] }
 0x2dd   : > { %4605 = vmatprep.mubr.msk.f32.mxu1 %vm435_vm12, %v3035_v26  ;;  %v3483_v3 = vsel %vm1879_vm14, %v4173_v17, 0.0 }
 0x2e0   : > { %4606 = vmatmul.mubr.msk.f32.vlgmr.msra.gmra.mrb[0].mxu1 %vm435_vm12, %v3036_v28  ;;  %v3484_v28 = vsel %vm1880_vm11, %v4174_v24, 0.0 }
 0x2e1   : > { %4728 = vmatpush3.bf16.msra.mxu1 %v4725_v21  ;;  %4608 = vmatprep.mubr.msk.f32.mxu1 %vm435_vm12, %v3037_v12  ;;  %v3335_v21 = vsel %vm6705_vm6, %v4156_v53, 0.0  ;;  %v4175_v12 = vld [vmem:[%s6353_s28 + $0x31] sm:$0xff] }
 0x2e2   : > { %4730 = vmatprep.subr.bf16.mxu1 %v4729_v11  ;;  %v3485_v18 = vsel %vm1881_vm2, %v4175_v12, 0.0 }
 0x2e4   : > { %4609 = vmatmul.mubr.msk.f32.gmra.mrb[24].mxu1 %vm435_vm12, %v3038_v35  ;;  %v3486_v35 = vsel %vm1878_vm0, %v4176_v30, 0.0 }
 0x2e5   : > { %4611 = vmatprep.mubr.msk.f32.mxu1 %vm435_vm12, %v3039_v61  ;;  %v4177_v61 = vld [vmem:[%s6353_s28 + $0x41] sm:$0xff] }
 0x2e6   : > { %v3487_v20 = vsel %vm1879_vm14, %v4177_v61, 0.0 }
 0x2e8   : > { %4612 = vmatmul.mubr.msk.f32.gmra.mrb[4].mxu1 %vm435_vm12, %v3040_v38  ;;  %v3488_v38 = vsel %vm1880_vm11, %v4178_v57, 0.0 }
 0x2e9   : > { %4614 = vmatprep.mubr.msk.f32.mxu1 %vm435_vm12, %v3041_v54  ;;  %v4179_v54 = vld [vmem:[%s6353_s28 + $0x51] sm:$0xff] }
 0x2ea   : > { %v3489_v16 = vsel %vm1881_vm2, %v4179_v54, 0.0 }
 0x2ec   : > { %4615 = vmatmul.mubr.msk.f32.gmra.mrb[26].mxu1 %vm435_vm12, %v3042_v6 }
 0x2ed   : > { %4621 = vmatprep.mubr.msk.f32.mxu1 %vm435_vm12, %v3184_v23 }
 0x2f0   : > { %4622 = vmatmul.mubr.msk.f32.vlgmr.msra.gmra.mrb[0].mxu1 %vm435_vm12, %v3185_v36 }
 0x2f1   : > { %4732 = vmatpush3.bf16.msra.mxu1 %v4729_v11  ;;  %4624 = vmatprep.mubr.msk.f32.mxu1 %vm435_vm12, %v3186_v27 }
 0x2f2   : > { %4734 = vmatprep.subr.bf16.mxu1 %v4733_v46 }
 0x2f4   : > { %4625 = vmatmul.mubr.msk.f32.gmra.mrb[28].mxu1 %vm435_vm12, %v3187_v7 }
 0x2f5   : > { %4627 = vmatprep.mubr.msk.f32.mxu1 %vm435_vm12, %v3188_v56 }
 0x2f8   : > { %4628 = vmatmul.mubr.msk.f32.gmra.mrb[4].mxu1 %vm435_vm12, %v3189_v19 }
 0x2f9   : > { %4630 = vmatprep.mubr.msk.f32.mxu1 %vm435_vm12, %v3190_v32 }
 0x2fc   : > { %4631 = vmatmul.mubr.msk.f32.gmra.mrb[30].mxu1 %vm435_vm12, %v3191_v41 }
 0x2fd   : > { %4637 = vmatprep.mubr.msk.f32.mxu1 %vm435_vm12, %v3333_v33 }
 0x300   : > { %4638 = vmatmul.mubr.msk.f32.vlgmr.msra.gmra.mrb[0].mxu1 %vm435_vm12, %v3334_v60  ;;  %v6715_v60 = vld [vmem:[#allocation9_spill] sm:$0xff] }
 0x301   : > { %4736 = vmatpush3.bf16.msra.mxu1 %v4733_v46  ;;  %4640 = vmatprep.mubr.msk.f32.mxu1 %vm435_vm12, %v3335_v21  ;;  %v3646_v15 = vsub.s32 0, %v6715_v60 }
 0x304   : > { %4641 = vmatmul.mubr.msk.f32.gmra.mrb[32].mxu1 %vm435_vm12, %v3336_v14 }
 0x305   : > { %4643 = vmatprep.mubr.msk.f32.mxu1 %vm435_vm12, %v3337_v10 }
 0x308   : > { %4644 = vmatmul.mubr.msk.f32.gmra.mrb[4].mxu1 %vm435_vm12, %v3338_v5 }
 0x309   : > { %4646 = vmatprep.mubr.msk.f32.mxu1 %vm435_vm12, %v3339_v48  ;;  %v3650_v48 = vsub.s32 1, %v6715_v60 }
 0x30c   : > { %4647 = vmatmul.mubr.msk.f32.gmra.mrb[34].mxu1 %vm435_vm12, %v3340_v40 }
 0x30d   : > { %4653 = vmatprep.mubr.msk.f32.mxu1 %vm435_vm12, %v3482_v22 }
 0x310   : > { %4654 = vmatmul.mubr.msk.f32.vlgmr.msra.gmra.mrb[0].mxu1 %vm435_vm12, %v3483_v3 }
 0x311   : > { %4656 = vmatprep.mubr.msk.f32.mxu1 %vm435_vm12, %v3484_v28 }
 0x314   : > { %4657 = vmatmul.mubr.msk.f32.gmra.mrb[36].mxu1 %vm435_vm12, %v3485_v18  ;;  %v3662_v18 = vld [vmem:[%s6500_s2 + $0x8] sm:$0xff] (!%p3954_p13) }
 0x315   : > { %4659 = vmatprep.mubr.msk.f32.mxu1 %vm435_vm12, %v3486_v35  ;;  %v3663_v35 = vld [vmem:[%s6500_s2 + $0x10] sm:$0xff] (!%p3954_p13) }
 0x318   : > { %4660 = vmatmul.mubr.msk.f32.gmra.mrb[4].mxu1 %vm435_vm12, %v3487_v20 }
 0x319   : > { %4662 = vmatprep.mubr.msk.f32.mxu1 %vm435_vm12, %v3488_v38  ;;  %v3664_v38 = vld [vmem:[%s6500_s2 + $0x18] sm:$0xff] (!%p3954_p13) }
 0x31c   : > { %4663 = vmatmul.mubr.msk.f32.gmra.mrb[38].mxu1 %vm435_vm12, %v3489_v16 }
 0x320   : > { %v3642_v4 = vpop.xlane.xlu0 %3641 }
 0x321   : > { %v3647_v14 = vrot.slane %v3642_v4, %v3646_v15  ;;  %v3651_v0 = vrot.slane %v3642_v4, %v3650_v48 }
 0x367   : > { %v4530_v39 = vpop.f32.mrb[2].mxu1 }
 0x368   : > { %v2432_v6 = vpop.f32.mrb[3].mxu1 }
 0x36f   : > { %v4536_v13 = vpop.f32.mrb[6].mxu1 }
 0x370   : > { %v2450_v58 = vpop.f32.mrb[7].mxu1 }
 0x377   : > { %v4546_v34 = vpop.f32.mrb[8].mxu1 }
 0x378   : > { %v2557_v1 = vpop.f32.mrb[9].mxu1 }
 0x37f   : > { %v4552_v23 = vpop.f32.mrb[10].mxu1 }
 0x380   : > { %v2575_v31 = vpop.f32.mrb[11].mxu1 }
 0x387   : > { %v4562_v46 = vpop.f32.mrb[12].mxu1 }
 0x388   : > { %v2702_v29 = vpop.f32.mrb[13].mxu1 }
 0x38f   : > { %v4568_v36 = vpop.f32.mrb[14].mxu1 }
 0x390   : > { %v2720_v37 = vpop.f32.mrb[15].mxu1 }
 0x397   : > { %v4578_v27 = vpop.f32.mrb[16].mxu1 }
 0x398   : > { %v2850_v59 = vpop.f32.mrb[17].mxu1 }
 0x39f   : > { %v4584_v45 = vpop.f32.mrb[18].mxu1 }
 0x3a0   : > { %v2868_v50 = vpop.f32.mrb[19].mxu1 }
 0x3a7   : > { %v4594_v7 = vpop.f32.mrb[20].mxu1 }
 0x3a8   : > { %v2998_v56 = vpop.f32.mrb[21].mxu1 }
 0x3af   : > { %v4600_v51 = vpop.f32.mrb[22].mxu1 }
 0x3b0   : > { %v3016_v2 = vpop.f32.mrb[23].mxu1 }
 0x3b7   : > { %v4610_v19 = vpop.f32.mrb[24].mxu1 }
 0x3b8   : > { %v3146_v32 = vpop.f32.mrb[25].mxu1 }
 0x3bf   : > { %v4616_v55 = vpop.f32.mrb[26].mxu1 }
 0x3c0   : > { %v3164_v8 = vpop.f32.mrb[27].mxu1 }
 0x3c7   : > { %v4626_v41 = vpop.f32.mrb[28].mxu1 }
 0x3c8   : > { %v3295_v9 = vpop.f32.mrb[29].mxu1 }
 0x3cf   : > { %v4632_v49 = vpop.f32.mrb[30].mxu1 }
 0x3d0   : > { %v3313_v33 = vpop.f32.mrb[31].mxu1 }
 0x3d7   : > { %v4642_v53 = vpop.f32.mrb[32].mxu1 }
 0x3d8   : > { %v3444_v47 = vpop.f32.mrb[33].mxu1 }
 0x3df   : > { %v4648_v21 = vpop.f32.mrb[34].mxu1 }
 0x3e0   : > { %v3462_v44 = vpop.f32.mrb[35].mxu1 }
 0x3e3   : > { %v4655_v10 = vpop.f32.mrb[0].mxu1 }
 0x3e4   : > { %v3630_v43 = vadd.f32 %v4655_v10, %v4190_v42  ;;  %v3583_v62 = vpop.f32.mrb[1].mxu1 }
 0x3e5   : > { %v3629_v5 = vadd.f32 %v4190_v42, %v3583_v62 }
 0x3e6   : > { %v3655_v63 = vmul.f32 %v3647_v14, %v3630_v43 }
 0x3e7   : > { %v3654_v52 = vmul.f32 %v3647_v14, %v3629_v5  ;;  %v4658_v40 = vpop.f32.mrb[36].mxu1 }
 0x3e8   : > { %v3593_v17 = vpop.f32.mrb[37].mxu1  ;;  %v3666_v57 = vadd.f32 (!%p3954_p13), %v3662_v18, %v3655_v63 }
 0x3e9   : > { %v3665_v61 = vadd.f32 (!%p3954_p13), %v3661_v25, %v3654_v52 }
 0x3ea   : > { %3660 = sbr.rel (%p3954_p13) target bundleno = 1012 (0x3f4), region = 52  ;;  %3670 = vst.msk [vmem:[#allocation4 + $0x8] sm:$0xff] (!%p3954_p13), %vm435_vm12, %v3666_v57 }
 0x3eb   : > { %v4661_v22 = vpop.f32.mrb[4].mxu1  ;;  %3669 = vst.msk [vmem:[#allocation4] sm:$0xff] (!%p3954_p13), %vm435_vm12, %v3665_v61 }
 0x3ec   : > { %v3632_v24 = vadd.f32 %v4661_v22, %v4190_v42  ;;  %v3601_v26 = vpop.f32.mrb[5].mxu1 }
 0x3ed   : > { %v3631_v3 = vadd.f32 %v4190_v42, %v3601_v26 }
 0x3ee   : > { %v3657_v11 = vmul.f32 %v3651_v0, %v3632_v24 }
 0x3ef   : > { %v3656_v28 = vmul.f32 %v3651_v0, %v3631_v3  ;;  %v4664_v12 = vpop.f32.mrb[38].mxu1 }
 0x3f0   : > { %v3611_v30 = vpop.f32.mrb[39].mxu1  ;;  %v3668_v54 = vadd.f32 (!%p3954_p13), %v3664_v38, %v3657_v11 }
 0x3f1   : > { %v3667_v20 = vadd.f32 %v3663_v35, %v3656_v28 }
 0x3f2   : > { %3672 = vst.msk [vmem:[#allocation4 + $0x18] sm:$0xff] %vm435_vm12, %v3668_v54 }
 0x3f3   : > { %3671 = vst.msk [vmem:[#allocation4 + $0x10] sm:$0xff] %vm435_vm12, %v3667_v20 }
 0x3f4 PF: > { %p4192_p0 = scmp.le.s32.totalorder %s4988_s14, 0 }
 0x3f5   : > { %v3677_v16 = vld [vmem:[#allocation4] sm:$0xff] (!%p4192_p0)  ;;  %v3678_v39 = vld [vmem:[#allocation4 + $0x8] sm:$0xff] (!%p4192_p0) }
 0x3f6   : > { %3676 = sbr.rel (%p4192_p0) target bundleno = 1022 (0x3fe), region = 56  ;;  %v3681_v13 = vadd.f32 (!%p4192_p0), %v3677_v16, %v3654_v52  ;;  %v3682_v58 = vadd.f32 (!%p4192_p0), %v3678_v39, %v3655_v63 }
 0x3f8   : > { %3685 = vst.msk [vmem:[#allocation4] sm:$0xff] (!%p4192_p0), %vm435_vm12, %v3681_v13  ;;  %3686 = vst.msk [vmem:[#allocation4 + $0x8] sm:$0xff] (!%p4192_p0), %vm435_vm12, %v3682_v58 }
 0x3f9   : > { %v3680_v1 = vld [vmem:[#allocation4 + $0x18] sm:$0xff] (!%p4192_p0) }
 0x3fa   : > { %v3679_v6 = vld [vmem:[#allocation4 + $0x10] sm:$0xff] (!%p4192_p0)  ;;  %v3684_v23 = vadd.f32 (!%p4192_p0), %v3680_v1, %v3657_v11 }
 0x3fb   : > { %v3683_v34 = vadd.f32 (!%p4192_p0), %v3679_v6, %v3656_v28 }
 0x3fc   : > { %3688 = vst.msk [vmem:[#allocation4 + $0x18] sm:$0xff] (!%p4192_p0), %vm435_vm12, %v3684_v23 }
 0x3fd   : > { %3687 = vst.msk [vmem:[#allocation4 + $0x10] sm:$0xff] %vm435_vm12, %v3683_v34 }
 0x3fe PF: > { %p4193_p1 = scmp.ne.s32.totalorder %s4988_s14, 1 }
 0x3ff   : > { %v4921_v29 = vmov (!%p4193_p1), 1983009808   ;;  %v4922_v37 = vmov (!%p4193_p1), 1934713408   ;;  %v4923_v45 = vmov (!%p4193_p1), 0.0   ;;  %v6716_v55 = vld [vmem:[#allocation9_spill] sm:$0xff] (!%p4193_p1) }
 0x400   : > { %3692 = sbr.rel (%p4193_p1) target bundleno = 1180 (0x49c), region = 60  ;;  %v3693_v31 = vld [vmem:[#allocation4] sm:$0xff] (!%p4193_p1)  ;;  %v3699_v36 = vunpack.c.l.s4 (!%p4193_p1), %v4921_v29  ;;  %v3730_v27 = vunpack.c.l.s4 (!%p4193_p1), %v4922_v37  ;;  %v3694_v56 = vld [vmem:[#allocation4 + $0x8] sm:$0xff] (!%p4193_p1)  ;;  %s4924_s14 = smov (!%p4193_p1), 32   ;;  %vm3886_vm0 = vcmask (!%p4193_p1), 261120   ;;  %vm3888_vm11 = vcmask (!%p4193_p1), 392192  }
 0x401   : > { %v3697_v50 = vcombine.high (!%p4193_p1), %v3693_v31, %v4923_v45  ;;  %v3763_v19 = vcombine.high (!%p4193_p1), %v3694_v56, %v4923_v45  ;;  %s4925_s21 = smov (!%p4193_p1), 64   ;;  %s4926_s22 = smov (!%p4193_p1), 16   ;;  %vm3890_vm2 = vcmask (!%p4193_p1), 523264   ;;  %vm3892_vm14 = vcmask (!%p4193_p1), 654336  }
 0x402   : > { %v3700_v59 = vunpack.c.0.s8 (!%p4193_p1), %v3699_v36  ;;  %v3731_v2 = vunpack.c.0.s8 (!%p4193_p1), %v3730_v27  ;;  %s4927_s23 = smov (!%p4193_p1), 48   ;;  %s4928_s25 = smov (!%p4193_p1), 80   ;;  %vm3894_vm10 = vcmask (!%p4193_p1), 785408   ;;  %vm3896_vm7 = vcmask (!%p4193_p1), 916480  }
 0x403   : > { %s4929_s11 = smov (!%p4193_p1), 96   ;;  %s4930_s26 = smov (!%p4193_p1), 112  }
 0x404   : > { %v3695_v46 = vld [vmem:[#allocation4 + $0x10] sm:$0xff] (!%p4193_p1)  ;;  %v3696_v51 = vld [vmem:[#allocation4 + $0x18] sm:$0xff] (!%p4193_p1)  ;;  %v3703_v8 = vsub.s32 (!%p4193_p1), %v3700_v59, %v6716_v55  ;;  %v3734_v41 = vsub.s32 (!%p4193_p1), %v3731_v2, %v6716_v55 }
 0x405   : > { %v3712_v7 = vcombine.high (!%p4193_p1), %v3695_v46, %v4923_v45  ;;  %v3778_v32 = vcombine.high (!%p4193_p1), %v3696_v51, %v4923_v45 }
 0x406   : > { %v3704_v9 = vrot.slane (!%p4193_p1), %v3693_v31, %v3703_v8  ;;  %v3719_v49 = vrot.slane (!%p4193_p1), %v3695_v46, %v3703_v8  ;;  %v3711_v33 = vrot.slane (!%p4193_p1), %v3697_v50, %v3703_v8  ;;  %v3770_v47 = vrot.slane (!%p4193_p1), %v3694_v56, %v3703_v8 }
 0x407   : > { %v3726_v53 = vrot.slane %v3712_v7, %v3703_v8  ;;  %v3785_v60 = vrot.slane %v3696_v51, %v3703_v8  ;;  %v3777_v15 = vrot.slane %v3763_v19, %v3703_v8  ;;  %v3792_v21 = vrot.slane %v3778_v32, %v3703_v8 }
 0x408   : > { %v3728_v4 = vcombine.high %v3704_v9, %v3719_v49  ;;  %v3727_v44 = vcombine.low %v3704_v9, %v3719_v49 }
 0x409   : > { %v3743_v42 = vcombine.low %v3711_v33, %v3726_v53  ;;  %v3794_v14 = vcombine.high %v3770_v47, %v3785_v60  ;;  %v3793_v10 = vcombine.low %v3770_v47, %v3785_v60  ;;  %v3809_v48 = vcombine.low %v3777_v15, %v3792_v21 }
 0x40a   : > { %v3742_v43 = vrot.slane %v3728_v4, %v3734_v41  ;;  %v3735_v5 = vrot.slane %v3727_v44, %v3734_v41  ;;  %v3744_v26 = vcombine.high %v3711_v33, %v3726_v53  ;;  %v3810_v28 = vcombine.high %v3777_v15, %v3792_v21 }
 0x40b   : > { %v3751_v62 = vrot.slane %v3743_v42, %v3734_v41  ;;  %v3808_v63 = vrot.slane %v3794_v14, %v3734_v41  ;;  %v3801_v40 = vrot.slane %v3793_v10, %v3734_v41  ;;  %v3817_v17 = vrot.slane %v3809_v48, %v3734_v41 }
 0x40c   : > { %3834 = vrot.lane.b32.xlu1 %v3742_v43, %s4924_s14  ;;  %v3759_v52 = vcombine.high %v3735_v5, %v4923_v45  ;;  %v3760_v22 = vcombine.high %v3742_v43, %v4923_v45  ;;  %v3824_v12 = vrot.slane %v3810_v28, %v3734_v41  ;;  %v3758_v30 = vrot.slane %v3744_v26, %v3734_v41 }
 0x40d   : > { %3842 = vrot.lane.b32.xlu0 %v3751_v62, %s4925_s21  ;;  %v3825_v0 = vcombine.high %v3801_v40, %v4923_v45  ;;  %v3826_v24 = vcombine.high %v3808_v63, %v4923_v45  ;;  %v3761_v3 = vcombine.high %v3751_v62, %v4923_v45  ;;  %v3827_v11 = vcombine.high %v3817_v17, %v4923_v45 }
 0x40e   : > { %v3828_v25 = vcombine.high %v3824_v12, %v4923_v45  ;;  %v3762_v18 = vcombine.high %v3758_v30, %v4923_v45 }
 0x410   : > { %3862 = vrot.lane.b32.xlu1 %v3808_v63, %s4924_s14 }
 0x411   : > { %3830 = vrot.lane.b32.xlu0 %v3759_v52, %s4926_s22 }
 0x414   : > { %3870 = vrot.lane.b32.xlu1 %v3817_v17, %s4925_s21 }
 0x415   : > { %3858 = vrot.lane.b32.xlu0 %v3825_v0, %s4926_s22 }
 0x418   : > { %3866 = vrot.lane.b32.xlu1 %v3826_v24, %s4927_s23 }
 0x419   : > { %3838 = vrot.lane.b32.xlu0 %v3760_v22, %s4927_s23 }
 0x41c   : > { %3874 = vrot.lane.b32.xlu1 %v3827_v11, %s4928_s25 }
 0x41d   : > { %3846 = vrot.lane.b32.xlu0 %v3761_v3, %s4928_s25 }
 0x420   : > { %3878 = vrot.lane.b32.xlu1 %v3824_v12, %s4929_s11 }
 0x421   : > { %3850 = vrot.lane.b32.xlu0 %v3758_v30, %s4929_s11 }
 0x424   : > { %3882 = vrot.lane.b32.xlu1 %v3828_v25, %s4930_s26 }
 0x425   : > { %3854 = vrot.lane.b32.xlu0 %v3762_v18, %s4930_s26 }
 0x47e   : > { %v3835_v35 = vpop.permute.xlu1 %3834 }
 0x47f   : > { %v3843_v61 = vpop.permute.xlu0 %3842 }
 0x482   : > { %v3863_v57 = vpop.permute.xlu1 %3862 }
 0x483   : > { %v3831_v20 = vpop.permute.xlu0 %3830 }
 0x484   : > { %v3885_v6 = vsel %vm435_vm12, %v3735_v5, %v3831_v20 }
 0x485   : > { %v3887_v1 = vsel %vm3886_vm0, %v3885_v6, %v3835_v35 }
 0x486   : > { %v3871_v38 = vpop.permute.xlu1 %3870 }
 0x487   : > { %v3859_v54 = vpop.permute.xlu0 %3858 }
 0x488   : > { %v3898_v13 = vsel %vm435_vm12, %v3801_v40, %v3859_v54 }
 0x489   : > { %v3899_v23 = vsel %vm3886_vm0, %v3898_v13, %v3863_v57 }
 0x48a   : > { %v3867_v16 = vpop.permute.xlu1 %3866 }
 0x48b   : > { %v3839_v39 = vpop.permute.xlu0 %3838  ;;  %v3900_v31 = vsel %vm3888_vm11, %v3899_v23, %v3867_v16 }
 0x48c   : > { %v3889_v46 = vsel %vm3888_vm11, %v3887_v1, %v3839_v39  ;;  %v3901_v37 = vsel %vm3890_vm2, %v3900_v31, %v3871_v38 }
 0x48d   : > { %v3891_v27 = vsel %vm3890_vm2, %v3889_v46, %v3843_v61 }
 0x48e   : > { %v3875_v58 = vpop.permute.xlu1 %3874 }
 0x48f   : > { %v3847_v34 = vpop.permute.xlu0 %3846  ;;  %v3902_v59 = vsel %vm3892_vm14, %v3901_v37, %v3875_v58 }
 0x490   : > { %v3893_v45 = vsel %vm3892_vm14, %v3891_v27, %v3847_v34 }
 0x492   : > { %v3879_v29 = vpop.permute.xlu1 %3878 }
 0x493   : > { %v3851_v36 = vpop.permute.xlu0 %3850  ;;  %v3903_v50 = vsel %vm3894_vm10, %v3902_v59, %v3879_v29 }
 0x494   : > { %v3895_v7 = vsel %vm3894_vm10, %v3893_v45, %v3851_v36 }
 0x496   : > { %v3883_v56 = vpop.permute.xlu1 %3882 }
 0x497   : > { %v3855_v51 = vpop.permute.xlu0 %3854  ;;  %v3904_v2 = vsel %vm3896_vm7, %v3903_v50, %v3883_v56 }
 0x498   : > { %v3897_v19 = vsel %vm3896_vm7, %v3895_v7, %v3855_v51 }
 0x499   : > { %v3907_v32 = vcombine.low %v3897_v19, %v3904_v2 }
 0x49b   : > { %4194 = vst.sshfl [vmem:[%s6506_s8] sm:$0x33 pattern:$0x76325410] %v3907_v32 }
 0x49c PF: > { %s28_s1 = sadd.s32 1, %s4915_s1  }
 0x49d   : > { %p25_p2 = scmp.ge.s32.totalorder %s28_s1, 4  }
 0x49f   :  { %27 = sbr.rel (!%p25_p2) target bundleno = 26 (0x1a), region = 112 }

</bundles_post_ra>
